<compile_context>
chip_gen: v7x
topology: tpu7x:2x2x1
jax: 0.10.0
libtpu: 0.0.40
codegen_flags: <defaults>
</compile_context>

<pallas_src>
import math

import jax
import jax.numpy as jnp
import numpy as np
from jax.experimental import pallas as pl
from jax.experimental.pallas import tpu as pltpu

LANE = 128      # lane width (last dim)
SUBLANE = 8     # sublane width (second-to-last dim)


def _identity(x):
    return x


def _round_up(v, m):
    return ((v + m - 1) // m) * m


# ----------------------------------------------------------------------------
# Kernel
# ----------------------------------------------------------------------------
def _make_mlp_kernel(n_hidden_layers, activation, compute_dtype):
    """Fused-MLP kernel body. Omegas are already folded into weights/biases."""
    act = activation if activation is not None else _identity

    def mlp_kernel(x_ref, w0_ref, b0_ref, wh_ref, bh_ref, wl_ref, bl_ref, o_ref):
        # First layer: (TM, Fin) @ (Fin, Hp); accumulate in f32 on the MXU.
        h = jnp.dot(x_ref[...].astype(compute_dtype), w0_ref[...],
                    preferred_element_type=jnp.float32)
        h = act(h + b0_ref[...])                      # f32 epilogue

        # Hidden layers.
        if n_hidden_layers <= 8:
            # Small L: static unroll (demo case).
            for l in range(n_hidden_layers):
                h = jnp.dot(h.astype(compute_dtype), wh_ref[l],
                            preferred_element_type=jnp.float32)
                h = act(h + bh_ref[l])
        else:
            # Large L: bounded live ranges via fori_loop with small unroll.
            def body(l, h):
                hh = jnp.dot(h.astype(compute_dtype), wh_ref[l],
                             preferred_element_type=jnp.float32)
                return act(hh + bh_ref[l])
            h = jax.lax.fori_loop(0, n_hidden_layers, body, h, unroll=2)

        # Last layer: identity activation (omega folded into wl/bl).
        out = jnp.dot(h.astype(compute_dtype), wl_ref[...],
                      preferred_element_type=jnp.float32)
        o_ref[...] = (out + bl_ref[...]).astype(o_ref.dtype)

    return mlp_kernel


# ----------------------------------------------------------------------------
# Parameter preparation: pad to lane-dense shapes, fold omegas, cast to bf16.
# (One-time transformation, done once per model, not per forward call.)
# ----------------------------------------------------------------------------
def prepare_params(params, *, first_omega_0=1.0, hidden_omega_0=1.0,
                   weight_dtype=jnp.bfloat16, lane=LANE):
    w0, b0 = params["w0"], params["b0"]
    wh, bh = params["wh"], params["bh"]
    wl, bl = params["wl"], params["bl"]

    fin, H = w0.shape
    L = wh.shape[0]
    fout = wl.shape[1]
    Hp = _round_up(H, lane)
    Fp = _round_up(fout, lane)

    def pad2(a, rows, cols):
        return jnp.pad(a, ((0, rows - a.shape[0]), (0, cols - a.shape[1])))

    w0p = pad2(first_omega_0 * w0, fin, Hp)
    b0p = pad2(first_omega_0 * b0, 1, Hp)

    if L == 0:
        # Dummy (never read: kernel skips the hidden loop).
        whp = jnp.zeros((1, Hp, Hp), w0.dtype)
        bhp = jnp.zeros((1, 1, Hp), w0.dtype)
    else:
        whp = jnp.pad(hidden_omega_0 * wh, ((0, 0), (0, Hp - H), (0, Hp - H)))
        bhp = jnp.pad(hidden_omega_0 * bh, ((0, 0), (0, 0), (0, Hp - H)))

    wlp = pad2(hidden_omega_0 * wl, Hp, Fp)
    blp = pad2(hidden_omega_0 * bl, 1, Fp)

    return {
        # MXU operands in bf16; biases stay f32 for the f32 epilogue.
        "w0": w0p.astype(weight_dtype), "b0": b0p.astype(jnp.float32),
        "wh": whp.astype(weight_dtype), "bh": bhp.astype(jnp.float32),
        "wl": wlp.astype(weight_dtype), "bl": blp.astype(jnp.float32),
        "n_hidden_layers": L, "in_features": fin, "out_features": fout,
    }


# ----------------------------------------------------------------------------
# Wrapper
# ----------------------------------------------------------------------------
def mlp_forward(x, prepared, *, activation=None, block_m=512,
                vmem_limit_bytes=None, single_buffer_weights=True,
                interpret=False):
    """Fused MLP forward as a single Pallas TPU kernel (batch-tiled grid)."""
    w0, b0 = prepared["w0"], prepared["b0"]
    wh, bh = prepared["wh"], prepared["bh"]
    wl, bl = prepared["wl"], prepared["bl"]
    L = prepared["n_hidden_layers"]
    fout = prepared["out_features"]

    N, fin = x.shape
    assert fin == w0.shape[0], "x feature dim must match prepared params"
    Hp = w0.shape[1]
    Fp = wl.shape[1]
    Ls = wh.shape[0]            # stacked size (>= 1 even when L == 0)
    compute_dtype = w0.dtype

    # Batch tile: large (amortize per-step overhead), sublane-aligned.
    tm = max(SUBLANE, min(int(block_m), _round_up(N, SUBLANE)))
    tm = _round_up(tm, SUBLANE)
    Np = _round_up(N, tm)
    if Np != N:
        x = jnp.pad(x, ((0, Np - N), (0, 0)))
    grid = (Np // tm,)

    kernel = _make_mlp_kernel(L, activation, compute_dtype)

    # Advisory cost estimate for XLA's scheduler.
    flops = 2 * Np * (fin * Hp + L * Hp * Hp + Hp * Fp)
    transcendentals = 0 if activation is None else Np * (L + 1) * Hp
    bytes_accessed = int(
        x.size * x.dtype.itemsize
        + sum(int(a.size) * a.dtype.itemsize for a in (w0, b0, wh, bh, wl, bl))
        + Np * Fp * 4)
    cost = pl.CostEstimate(flops=int(flops),
                           transcendentals=int(transcendentals),
                           bytes_accessed=bytes_accessed)

    def const_spec(shape, use_single_buffer):
        # Grid-invariant block: single-buffer it when supported (halves the
        # weight VMEM footprint; these blocks never change across the grid).
        index_map = lambda i, _shape=shape: (0,) * len(_shape)
        if use_single_buffer and hasattr(pl, "Buffered"):
            try:
                return pl.BlockSpec(shape, index_map,
                                    pipeline_mode=pl.Buffered(1))
            except TypeError:
                pass
        return pl.BlockSpec(shape, index_map)

    def build(use_single_buffer):
        grid_spec = pltpu.PrefetchScalarGridSpec(
            num_scalar_prefetch=0,
            grid=grid,
            in_specs=[
                pl.BlockSpec((tm, fin), lambda i: (i, 0)),     # x tile
                const_spec((fin, Hp), use_single_buffer),      # w0
                const_spec((1, Hp), use_single_buffer),        # b0
                const_spec((Ls, Hp, Hp), use_single_buffer),   # stacked hidden W
                const_spec((Ls, 1, Hp), use_single_buffer),    # stacked hidden b
                const_spec((Hp, Fp), use_single_buffer),       # last W
                const_spec((1, Fp), use_single_buffer),        # last b
            ],
            out_specs=pl.BlockSpec((tm, Fp), lambda i: (i, 0)),  # lane-dense out
        )
        return pl.pallas_call(
            kernel,
            out_shape=jax.ShapeDtypeStruct((Np, Fp), jnp.float32),
            grid_spec=grid_spec,
            compiler_params=pltpu.CompilerParams(
                dimension_semantics=("parallel",),
                vmem_limit_bytes=vmem_limit_bytes),
            cost_estimate=cost,
            interpret=interpret,
        )

    args = (x, w0, b0, wh, bh, wl, bl)
    try:
        out = build(single_buffer_weights)(*args)
    except Exception:
        # Fallback for jax/Mosaic versions that reject Buffered(1) specs.
        out = build(False)(*args)

    # NOTE: for very large L*Hp*Hp (v7x 64 MiB VMEM) the weight stack should be
    # layer-tiled over a grid axis instead of kept fully resident; not needed
    # at these shapes.
    return out[:N, :fout]


# ----------------------------------------------------------------------------
# Init + references
# ----------------------------------------------------------------------------
def init_mlp_params(key, in_features, hidden_features, hidden_layers,
                    out_features, hidden_omega_0=1.0, dtype=jnp.float32):
    """Deterministic init mirroring MLP.__init__ (init_weights=True):
       - first-layer weight ~ U(-1/in, 1/in)
       - other weights      ~ U(-sqrt(6/H)/hidden_omega_0, +...)
       - biases keep nn.Linear's default U(-1/sqrt(fan_in), +1/sqrt(fan_in)).
    Weights are stored pre-transposed to (in, out)."""
    keys = jax.random.split(key, 6)

    w0_bound = 1.0 / in_features
    w0 = jax.random.uniform(keys[0], (in_features, hidden_features),
                            dtype, -w0_bound, w0_bound)
    b0 = jax.random.uniform(keys[1], (1, hidden_features), dtype,
                            -1.0 / math.sqrt(in_features),
                            1.0 / math.sqrt(in_features))

    wh_bound = math.sqrt(6.0 / hidden_features) / hidden_omega_0
    bh_bound = 1.0 / math.sqrt(hidden_features)
    L = max(hidden_layers, 0)
    wh = jax.random.uniform(keys[2], (L, hidden_features, hidden_features),
                            dtype, -wh_bound, wh_bound)
    bh = jax.random.uniform(keys[3], (L, 1, hidden_features), dtype,
                            -bh_bound, bh_bound)

    wl = jax.random.uniform(keys[4], (hidden_features, out_features),
                            dtype, -wh_bound, wh_bound)
    bl = jax.random.uniform(keys[5], (1, out_features), dtype,
                            -bh_bound, bh_bound)

    return {"w0": w0, "b0": b0, "wh": wh, "bh": bh, "wl": wl, "bl": bl}


def mlp_reference(x, params, activation=None, first_omega_0=1.0,
                  hidden_omega_0=1.0):
    """Pure-JAX f32 reference matching the PyTorch forward exactly."""
    act = activation if activation is not None else _identity
    h = act(first_omega_0 * (x @ params["w0"] + params["b0"]))
    for l in range(params["wh"].shape[0]):
        h = act(hidden_omega_0 * (h @ params["wh"][l] + params["bh"][l]))
    return hidden_omega_0 * (h @ params["wl"] + params["bl"])


def mlp_reference_prepared(x, prepared, activation=None):
    """Pure-JAX reference using the SAME padded/folded bf16 params + f32 acc
    (numerically matched to the kernel)."""
    act = activation if activation is not None else _identity
    cd = prepared["w0"].dtype
    h = jnp.dot(x.astype(cd), prepared["w0"], preferred_element_type=jnp.float32)
    h = act(h + prepared["b0"])
    for l in range(prepared["n_hidden_layers"]):
        h = jnp.dot(h.astype(cd), prepared["wh"][l],
                    preferred_element_type=jnp.float32)
        h = act(h + prepared["bh"][l])
    out = jnp.dot(h.astype(cd), prepared["wl"],
                  preferred_element_type=jnp.float32) + prepared["bl"]
    return out[:, :prepared["out_features"]]


# ----------------------------------------------------------------------------
# Demo / self-test
# ----------------------------------------------------------------------------
if __name__ == "__main__":
    # MLP(in=4, hidden=32, layers=2, out=4) — module defaults:
    # activation_function=None (identity), first_omega_0=1.0, hidden_omega_0=1.0.
    in_features, hidden_features, hidden_layers, out_features = 4, 32, 2, 4
    first_omega_0, hidden_omega_0 = 1.0, 1.0
    activation = None        # pass e.g. jnp.sin for a SIREN
    N = 2048                 # batch of coordinate-like samples (4 grid steps @ tm=512)

    key = jax.random.PRNGKey(0)
    kx, kp = jax.random.split(key)
    x = jax.random.normal(kx, (N, in_features), jnp.float32)

    params = init_mlp_params(kp, in_features, hidden_features, hidden_layers,
                             out_features, hidden_omega_0=hidden_omega_0)
    prepared = prepare_params(params, first_omega_0=first_omega_0,
                              hidden_omega_0=hidden_omega_0,
                              weight_dtype=jnp.bfloat16)

    out = mlp_forward(x, prepared, activation=activation, block_m=512)
    out = jax.block_until_ready(out)

    # 1) Numerically-matched reference (same bf16 weights, f32 accumulation).
    ref_matched = mlp_reference_prepared(x, prepared, activation=activation)
    np.testing.assert_allclose(np.asarray(out), np.asarray(ref_matched),
                               rtol=1e-4, atol=1e-4)

    # 2) Loose check against true f32 module semantics (bf16 MXU tolerance).
    ref_f32 = mlp_reference(x, params, activation=activation,
                            first_omega_0=first_omega_0,
                            hidden_omega_0=hidden_omega_0)
    np.testing.assert_allclose(np.asarray(out), np.asarray(ref_f32),
                               rtol=5e-2, atol=5e-2)

    print("KERNEL_OK")
</pallas_src>

<mosaic_0001>
module attributes {stable_mosaic.version = 11 : i64} {
  func.func @mlp_kernel(%arg0: i32, %arg1: memref<512x4xf32, #tpu.memory_space<vmem>>, %arg2: memref<4x128xbf16, #tpu.memory_space<vmem>>, %arg3: memref<1x128xf32, #tpu.memory_space<vmem>>, %arg4: memref<2x128x128xbf16, #tpu.memory_space<vmem>>, %arg5: memref<2x1x128xf32, #tpu.memory_space<vmem>>, %arg6: memref<128x128xbf16, #tpu.memory_space<vmem>>, %arg7: memref<1x128xf32, #tpu.memory_space<vmem>>, %arg8: memref<512x128xf32, #tpu.memory_space<vmem>>) attributes {dimension_semantics = [#tpu.dimension_semantics<parallel>], iteration_bounds = array<i64: 4>, scalar_prefetch = 0 : i64, scratch_operands = 0 : i64, tpu.core_type = #tpu.core_type<tc>, window_params = [{transform_indices = @transform_0, window_bounds = array<i64: 512, 4>}, {pipeline_mode = #tpu.pipeline_mode<synchronous>, transform_indices = @transform_1, window_bounds = array<i64: 4, 128>}, {pipeline_mode = #tpu.pipeline_mode<synchronous>, transform_indices = @transform_2, window_bounds = array<i64: 1, 128>}, {pipeline_mode = #tpu.pipeline_mode<synchronous>, transform_indices = @transform_3, window_bounds = array<i64: 2, 128, 128>}, {pipeline_mode = #tpu.pipeline_mode<synchronous>, transform_indices = @transform_4, window_bounds = array<i64: 2, 1, 128>}, {pipeline_mode = #tpu.pipeline_mode<synchronous>, transform_indices = @transform_5, window_bounds = array<i64: 128, 128>}, {pipeline_mode = #tpu.pipeline_mode<synchronous>, transform_indices = @transform_6, window_bounds = array<i64: 1, 128>}, {transform_indices = @transform_7, window_bounds = array<i64: 512, 128>}]} {
    %c0 = arith.constant 0 : index
    %c0_0 = arith.constant 0 : index
    %0 = vector.load %arg1[%c0, %c0_0] : memref<512x4xf32, #tpu.memory_space<vmem>>, vector<512x4xf32>
    %1 = arith.truncf %0 : vector<512x4xf32> to vector<512x4xbf16>
    %c0_1 = arith.constant 0 : index
    %c0_2 = arith.constant 0 : index
    %2 = vector.load %arg2[%c0_1, %c0_2] : memref<4x128xbf16, #tpu.memory_space<vmem>>, vector<4x128xbf16>
    %cst = arith.constant dense<0.000000e+00> : vector<512x128xf32>
    %3 = tpu.matmul %1, %2, %cst {dimension_numbers = #tpu.dot_dimension_numbers<[1], [0], [0], [1], [0, 0, 1, 1], [], []>} : vector<512x4xbf16>, vector<4x128xbf16>, vector<512x128xf32> -> vector<512x128xf32>
    %c0_3 = arith.constant 0 : index
    %c0_4 = arith.constant 0 : index
    %4 = vector.load %arg3[%c0_3, %c0_4] : memref<1x128xf32, #tpu.memory_space<vmem>>, vector<1x128xf32>
    %5 = vector.broadcast %4 : vector<1x128xf32> to vector<512x128xf32>
    %6 = arith.addf %3, %5 : vector<512x128xf32>
    %7 = arith.truncf %6 : vector<512x128xf32> to vector<512x128xbf16>
    %c0_5 = arith.constant 0 : index
    %c0_6 = arith.constant 0 : index
    %c0_7 = arith.constant 0 : index
    %8 = vector.load %arg4[%c0_5, %c0_6, %c0_7] : memref<2x128x128xbf16, #tpu.memory_space<vmem>>, vector<1x128x128xbf16>
    %9 = vector.shape_cast %8 : vector<1x128x128xbf16> to vector<128x128xbf16>
    %cst_8 = arith.constant dense<0.000000e+00> : vector<512x128xf32>
    %10 = tpu.matmul %7, %9, %cst_8 {dimension_numbers = #tpu.dot_dimension_numbers<[1], [0], [0], [1], [0, 0, 1, 1], [], []>} : vector<512x128xbf16>, vector<128x128xbf16>, vector<512x128xf32> -> vector<512x128xf32>
    %c0_9 = arith.constant 0 : index
    %c0_10 = arith.constant 0 : index
    %c0_11 = arith.constant 0 : index
    %11 = vector.load %arg5[%c0_9, %c0_10, %c0_11] : memref<2x1x128xf32, #tpu.memory_space<vmem>>, vector<1x1x128xf32>
    %12 = vector.shape_cast %11 : vector<1x1x128xf32> to vector<1x128xf32>
    %13 = vector.broadcast %12 : vector<1x128xf32> to vector<512x128xf32>
    %14 = arith.addf %10, %13 : vector<512x128xf32>
    %15 = arith.truncf %14 : vector<512x128xf32> to vector<512x128xbf16>
    %c1 = arith.constant 1 : index
    %c0_12 = arith.constant 0 : index
    %c0_13 = arith.constant 0 : index
    %16 = vector.load %arg4[%c1, %c0_12, %c0_13] : memref<2x128x128xbf16, #tpu.memory_space<vmem>>, vector<1x128x128xbf16>
    %17 = vector.shape_cast %16 : vector<1x128x128xbf16> to vector<128x128xbf16>
    %cst_14 = arith.constant dense<0.000000e+00> : vector<512x128xf32>
    %18 = tpu.matmul %15, %17, %cst_14 {dimension_numbers = #tpu.dot_dimension_numbers<[1], [0], [0], [1], [0, 0, 1, 1], [], []>} : vector<512x128xbf16>, vector<128x128xbf16>, vector<512x128xf32> -> vector<512x128xf32>
    %c1_15 = arith.constant 1 : index
    %c0_16 = arith.constant 0 : index
    %c0_17 = arith.constant 0 : index
    %19 = vector.load %arg5[%c1_15, %c0_16, %c0_17] : memref<2x1x128xf32, #tpu.memory_space<vmem>>, vector<1x1x128xf32>
    %20 = vector.shape_cast %19 : vector<1x1x128xf32> to vector<1x128xf32>
    %21 = vector.broadcast %20 : vector<1x128xf32> to vector<512x128xf32>
    %22 = arith.addf %18, %21 : vector<512x128xf32>
    %23 = arith.truncf %22 : vector<512x128xf32> to vector<512x128xbf16>
    %c0_18 = arith.constant 0 : index
    %c0_19 = arith.constant 0 : index
    %24 = vector.load %arg6[%c0_18, %c0_19] : memref<128x128xbf16, #tpu.memory_space<vmem>>, vector<128x128xbf16>
    %cst_20 = arith.constant dense<0.000000e+00> : vector<512x128xf32>
    %25 = tpu.matmul %23, %24, %cst_20 {dimension_numbers = #tpu.dot_dimension_numbers<[1], [0], [0], [1], [0, 0, 1, 1], [], []>} : vector<512x128xbf16>, vector<128x128xbf16>, vector<512x128xf32> -> vector<512x128xf32>
    %c0_21 = arith.constant 0 : index
    %c0_22 = arith.constant 0 : index
    %26 = vector.load %arg7[%c0_21, %c0_22] : memref<1x128xf32, #tpu.memory_space<vmem>>, vector<1x128xf32>
    %27 = vector.broadcast %26 : vector<1x128xf32> to vector<512x128xf32>
    %28 = arith.addf %25, %27 : vector<512x128xf32>
    %c0_23 = arith.constant 0 : index
    %c0_24 = arith.constant 0 : index
    %29 = vector.load %arg8[%c0_23, %c0_24] : memref<512x128xf32, #tpu.memory_space<vmem>>, vector<512x128xf32>
    tpu.vector_store %arg8[%c0_23, %c0_24], %28 {strides = array<i32>} : memref<512x128xf32, #tpu.memory_space<vmem>>, vector<512x128xf32>,
    return
  }
  func.func @transform_0(%arg0: i32) -> (i32, i32) {
    %c0_i32 = arith.constant 0 : i32
    %c0_i32_0 = arith.constant 0 : i32
    return %arg0, %c0_i32 : i32, i32
  }
  func.func @transform_1(%arg0: i32) -> (i32, i32) {
    %c0_i32 = arith.constant 0 : i32
    %c0_i32_0 = arith.constant 0 : i32
    %c0_i32_1 = arith.constant 0 : i32
    return %c0_i32, %c0_i32_0 : i32, i32
  }
  func.func @transform_2(%arg0: i32) -> (i32, i32) {
    %c0_i32 = arith.constant 0 : i32
    %c0_i32_0 = arith.constant 0 : i32
    %c0_i32_1 = arith.constant 0 : i32
    return %c0_i32, %c0_i32_0 : i32, i32
  }
  func.func @transform_3(%arg0: i32) -> (i32, i32, i32) {
    %c0_i32 = arith.constant 0 : i32
    %c0_i32_0 = arith.constant 0 : i32
    %c0_i32_1 = arith.constant 0 : i32
    %c0_i32_2 = arith.constant 0 : i32
    return %c0_i32, %c0_i32_0, %c0_i32_1 : i32, i32, i32
  }
  func.func @transform_4(%arg0: i32) -> (i32, i32, i32) {
    %c0_i32 = arith.constant 0 : i32
    %c0_i32_0 = arith.constant 0 : i32
    %c0_i32_1 = arith.constant 0 : i32
    %c0_i32_2 = arith.constant 0 : i32
    return %c0_i32, %c0_i32_0, %c0_i32_1 : i32, i32, i32
  }
  func.func @transform_5(%arg0: i32) -> (i32, i32) {
    %c0_i32 = arith.constant 0 : i32
    %c0_i32_0 = arith.constant 0 : i32
    %c0_i32_1 = arith.constant 0 : i32
    return %c0_i32, %c0_i32_0 : i32, i32
  }
  func.func @transform_6(%arg0: i32) -> (i32, i32) {
    %c0_i32 = arith.constant 0 : i32
    %c0_i32_0 = arith.constant 0 : i32
    %c0_i32_1 = arith.constant 0 : i32
    return %c0_i32, %c0_i32_0 : i32, i32
  }
  func.func @transform_7(%arg0: i32) -> (i32, i32) {
    %c0_i32 = arith.constant 0 : i32
    %c0_i32_0 = arith.constant 0 : i32
    return %arg0, %c0_i32 : i32, i32
  }
}

module attributes {stable_mosaic.version = 11 : i64} {
  func.func @mlp_kernel(%arg0: i32, %arg1: memref<512x4xf32, #tpu.memory_space<vmem>>, %arg2: memref<4x128xbf16, #tpu.memory_space<vmem>>, %arg3: memref<1x128xf32, #tpu.memory_space<vmem>>, %arg4: memref<2x128x128xbf16, #tpu.memory_space<vmem>>, %arg5: memref<2x1x128xf32, #tpu.memory_space<vmem>>, %arg6: memref<128x128xbf16, #tpu.memory_space<vmem>>, %arg7: memref<1x128xf32, #tpu.memory_space<vmem>>, %arg8: memref<512x128xf32, #tpu.memory_space<vmem>>) attributes {dimension_semantics = [#tpu.dimension_semantics<parallel>], iteration_bounds = array<i64: 4>, scalar_prefetch = 0 : i64, scratch_operands = 0 : i64, tpu.core_type = #tpu.core_type<tc>, window_params = [{transform_indices = @transform_0, window_bounds = array<i64: 512, 4>}, {pipeline_mode = #tpu.pipeline_mode<synchronous>, transform_indices = @transform_1, window_bounds = array<i64: 4, 128>}, {pipeline_mode = #tpu.pipeline_mode<synchronous>, transform_indices = @transform_2, window_bounds = array<i64: 1, 128>}, {pipeline_mode = #tpu.pipeline_mode<synchronous>, transform_indices = @transform_3, window_bounds = array<i64: 2, 128, 128>}, {pipeline_mode = #tpu.pipeline_mode<synchronous>, transform_indices = @transform_4, window_bounds = array<i64: 2, 1, 128>}, {pipeline_mode = #tpu.pipeline_mode<synchronous>, transform_indices = @transform_5, window_bounds = array<i64: 128, 128>}, {pipeline_mode = #tpu.pipeline_mode<synchronous>, transform_indices = @transform_6, window_bounds = array<i64: 1, 128>}, {transform_indices = @transform_7, window_bounds = array<i64: 512, 128>}]} {
    %c0 = arith.constant 0 : index
    %c0_0 = arith.constant 0 : index
    %0 = vector.load %arg1[%c0, %c0_0] : memref<512x4xf32, #tpu.memory_space<vmem>>, vector<512x4xf32>
    %1 = arith.truncf %0 : vector<512x4xf32> to vector<512x4xbf16>
    %c0_1 = arith.constant 0 : index
    %c0_2 = arith.constant 0 : index
    %2 = vector.load %arg2[%c0_1, %c0_2] : memref<4x128xbf16, #tpu.memory_space<vmem>>, vector<4x128xbf16>
    %cst = arith.constant dense<0.000000e+00> : vector<512x128xf32>
    %3 = tpu.matmul %1, %2, %cst {dimension_numbers = #tpu.dot_dimension_numbers<[1], [0], [0], [1], [0, 0, 1, 1], [], []>} : vector<512x4xbf16>, vector<4x128xbf16>, vector<512x128xf32> -> vector<512x128xf32>
    %c0_3 = arith.constant 0 : index
    %c0_4 = arith.constant 0 : index
    %4 = vector.load %arg3[%c0_3, %c0_4] : memref<1x128xf32, #tpu.memory_space<vmem>>, vector<1x128xf32>
    %5 = vector.broadcast %4 : vector<1x128xf32> to vector<512x128xf32>
    %6 = arith.addf %3, %5 : vector<512x128xf32>
    %7 = arith.truncf %6 : vector<512x128xf32> to vector<512x128xbf16>
    %c0_5 = arith.constant 0 : index
    %c0_6 = arith.constant 0 : index
    %c0_7 = arith.constant 0 : index
    %8 = vector.load %arg4[%c0_5, %c0_6, %c0_7] : memref<2x128x128xbf16, #tpu.memory_space<vmem>>, vector<1x128x128xbf16>
    %9 = vector.shape_cast %8 : vector<1x128x128xbf16> to vector<128x128xbf16>
    %cst_8 = arith.constant dense<0.000000e+00> : vector<512x128xf32>
    %10 = tpu.matmul %7, %9, %cst_8 {dimension_numbers = #tpu.dot_dimension_numbers<[1], [0], [0], [1], [0, 0, 1, 1], [], []>} : vector<512x128xbf16>, vector<128x128xbf16>, vector<512x128xf32> -> vector<512x128xf32>
    %c0_9 = arith.constant 0 : index
    %c0_10 = arith.constant 0 : index
    %c0_11 = arith.constant 0 : index
    %11 = vector.load %arg5[%c0_9, %c0_10, %c0_11] : memref<2x1x128xf32, #tpu.memory_space<vmem>>, vector<1x1x128xf32>
    %12 = vector.shape_cast %11 : vector<1x1x128xf32> to vector<1x128xf32>
    %13 = vector.broadcast %12 : vector<1x128xf32> to vector<512x128xf32>
    %14 = arith.addf %10, %13 : vector<512x128xf32>
    %15 = arith.truncf %14 : vector<512x128xf32> to vector<512x128xbf16>
    %c1 = arith.constant 1 : index
    %c0_12 = arith.constant 0 : index
    %c0_13 = arith.constant 0 : index
    %16 = vector.load %arg4[%c1, %c0_12, %c0_13] : memref<2x128x128xbf16, #tpu.memory_space<vmem>>, vector<1x128x128xbf16>
    %17 = vector.shape_cast %16 : vector<1x128x128xbf16> to vector<128x128xbf16>
    %cst_14 = arith.constant dense<0.000000e+00> : vector<512x128xf32>
    %18 = tpu.matmul %15, %17, %cst_14 {dimension_numbers = #tpu.dot_dimension_numbers<[1], [0], [0], [1], [0, 0, 1, 1], [], []>} : vector<512x128xbf16>, vector<128x128xbf16>, vector<512x128xf32> -> vector<512x128xf32>
    %c1_15 = arith.constant 1 : index
    %c0_16 = arith.constant 0 : index
    %c0_17 = arith.constant 0 : index
    %19 = vector.load %arg5[%c1_15, %c0_16, %c0_17] : memref<2x1x128xf32, #tpu.memory_space<vmem>>, vector<1x1x128xf32>
    %20 = vector.shape_cast %19 : vector<1x1x128xf32> to vector<1x128xf32>
    %21 = vector.broadcast %20 : vector<1x128xf32> to vector<512x128xf32>
    %22 = arith.addf %18, %21 : vector<512x128xf32>
    %23 = arith.truncf %22 : vector<512x128xf32> to vector<512x128xbf16>
    %c0_18 = arith.constant 0 : index
    %c0_19 = arith.constant 0 : index
    %24 = vector.load %arg6[%c0_18, %c0_19] : memref<128x128xbf16, #tpu.memory_space<vmem>>, vector<128x128xbf16>
    %cst_20 = arith.constant dense<0.000000e+00> : vector<512x128xf32>
    %25 = tpu.matmul %23, %24, %cst_20 {dimension_numbers = #tpu.dot_dimension_numbers<[1], [0], [0], [1], [0, 0, 1, 1], [], []>} : vector<512x128xbf16>, vector<128x128xbf16>, vector<512x128xf32> -> vector<512x128xf32>
    %c0_21 = arith.constant 0 : index
    %c0_22 = arith.constant 0 : index
    %26 = vector.load %arg7[%c0_21, %c0_22] : memref<1x128xf32, #tpu.memory_space<vmem>>, vector<1x128xf32>
    %27 = vector.broadcast %26 : vector<1x128xf32> to vector<512x128xf32>
    %28 = arith.addf %25, %27 : vector<512x128xf32>
    %c0_23 = arith.constant 0 : index
    %c0_24 = arith.constant 0 : index
    %29 = vector.load %arg8[%c0_23, %c0_24] : memref<512x128xf32, #tpu.memory_space<vmem>>, vector<512x128xf32>
    tpu.vector_store %arg8[%c0_23, %c0_24], %28 {strides = array<i32>} : memref<512x128xf32, #tpu.memory_space<vmem>>, vector<512x128xf32>,
    return
  }
  func.func @transform_0(%arg0: i32) -> (i32, i32) {
    %c0_i32 = arith.constant 0 : i32
    %c0_i32_0 = arith.constant 0 : i32
    return %arg0, %c0_i32 : i32, i32
  }
  func.func @transform_1(%arg0: i32) -> (i32, i32) {
    %c0_i32 = arith.constant 0 : i32
    %c0_i32_0 = arith.constant 0 : i32
    %c0_i32_1 = arith.constant 0 : i32
    return %c0_i32, %c0_i32_0 : i32, i32
  }
  func.func @transform_2(%arg0: i32) -> (i32, i32) {
    %c0_i32 = arith.constant 0 : i32
    %c0_i32_0 = arith.constant 0 : i32
    %c0_i32_1 = arith.constant 0 : i32
    return %c0_i32, %c0_i32_0 : i32, i32
  }
  func.func @transform_3(%arg0: i32) -> (i32, i32, i32) {
    %c0_i32 = arith.constant 0 : i32
    %c0_i32_0 = arith.constant 0 : i32
    %c0_i32_1 = arith.constant 0 : i32
    %c0_i32_2 = arith.constant 0 : i32
    return %c0_i32, %c0_i32_0, %c0_i32_1 : i32, i32, i32
  }
  func.func @transform_4(%arg0: i32) -> (i32, i32, i32) {
    %c0_i32 = arith.constant 0 : i32
    %c0_i32_0 = arith.constant 0 : i32
    %c0_i32_1 = arith.constant 0 : i32
    %c0_i32_2 = arith.constant 0 : i32
    return %c0_i32, %c0_i32_0, %c0_i32_1 : i32, i32, i32
  }
  func.func @transform_5(%arg0: i32) -> (i32, i32) {
    %c0_i32 = arith.constant 0 : i32
    %c0_i32_0 = arith.constant 0 : i32
    %c0_i32_1 = arith.constant 0 : i32
    return %c0_i32, %c0_i32_0 : i32, i32
  }
  func.func @transform_6(%arg0: i32) -> (i32, i32) {
    %c0_i32 = arith.constant 0 : i32
    %c0_i32_0 = arith.constant 0 : i32
    %c0_i32_1 = arith.constant 0 : i32
    return %c0_i32, %c0_i32_0 : i32, i32
  }
  func.func @transform_7(%arg0: i32) -> (i32, i32) {
    %c0_i32 = arith.constant 0 : i32
    %c0_i32_0 = arith.constant 0 : i32
    return %arg0, %c0_i32 : i32, i32
  }
}

</mosaic_0001>

<bundles_post_ra>
// kernel: tpu_custom_call.1
= control target key start
LH: loop header
LB: loop body
LE: loop exit
PB: predicated region body
PF: predicated region fallthrough
CT: control target
= control target key end

     0   :  { %12 = vsyncpa [#allocation3], 0  ;;  %s3453_s0 = inlined_call_operand.vmem [shape: f32[2048,4], index: 0, kind: input, shape index: {}]   ;;  %s3454_s1 = inlined_call_operand.vmem [shape: bf16[4,128], index: 1, kind: input, shape index: {}]   ;;  %s3455_s2 = inlined_call_operand.vmem [shape: f32[1,128], index: 2, kind: input, shape index: {}]   ;;  %s3456_s3 = inlined_call_operand.vmem [shape: bf16[2,128,128], index: 3, kind: input, shape index: {}]   ;;  %s3457_s4 = inlined_call_operand.vmem [shape: f32[2,1,128], index: 4, kind: input, shape index: {}]   ;;  %s3458_s5 = inlined_call_operand.vmem [shape: bf16[128,128], index: 5, kind: input, shape index: {}]   ;;  %s3459_s6 = inlined_call_operand.vmem [shape: f32[1,128], index: 6, kind: input, shape index: {}]   ;;  %s3460_s7 = inlined_call_operand.hbm [shape: f32[2048,128], index: 7, kind: output, shape index: {}]  }
   0x1   :  { %14 = vsyncpa [#allocation3 + $0x1], 0  ;;  %s2831_s24 = smov 0   ;;  %s2833_s25 = smov 0  }
   0x2   :  { %s2835_s26 = smov 0   ;;  %s2837_s27 = smov 0  }
   0x3 LB: > { %s2852_s28 = sadd.s32 4294967295, %s2786_s27   ;;  %s2093_s29 = sadd.s32 4294967294, %s2786_s27   ;;  %s2786_s27 = sphi %s2837_s27, %s3466_s27   ;;  %s2782_s26 = sphi %s2835_s26, %s3465_s26   ;;  %s2778_s25 = sphi %s2833_s25, %s3464_s25   ;;  %s2774_s24 = sphi %s2831_s24, %s3463_s24  }
   0x4   : > { %s2856_s30 = sadd.s32 1, %s2786_s27   ;;  %s179_s8 = sadd.s32 1, %s2782_s26 }
   0x5   : > { %s176_s9 = ssub.s32 %s2786_s27, %s2856_s30  ;;  %p189_p0 = scmp.ne.s32.totalorder %s2782_s26, %s2778_s25 }
   0x6   : > { %p177_p1 = scmp.eq.s32.totalorder %s176_s9, 0  ;;  %p190_p2 = scmp.eq.s32.totalorder %s2852_s28, 3 }
   0x7   : > { %p195_p3 = scmp.ne.s32.totalorder %s2778_s25, %s2774_s24  ;;  %p196_p4 = scmp.eq.s32.totalorder %s2093_s29, 3 }
   0x8   : > { %s2867_s10 = scalar_select %p177_p1, %s2782_s26, %s179_s8  }
   0x9   : > { %p2869_p5 = por %p190_p2, %p189_p0  ;;  %p2873_p6 = por %p196_p4, %p195_p3 }
   0xa   : > { %p2096_p7 = scmp.ge.s32.totalorder %s2786_s27, 1  ;;  %p241_p8 = scmp.lt.s32.totalorder %s2786_s27, 5 }
   0xc   : > { %p242_p9 = pnand %p2096_p7, %p241_p8 }
   0xd   : > { %v377_v0 = vld [vmem:[%s3454_s1] sm:$0x3] (!%p242_p9)  ;;  %vm482_vm0 = vcmask (!%p242_p9), 1041408   ;;  %s2098_s15 = sshll.u32 (!%p242_p9), %s2852_s28, 6  ;;  %v2701_v3 = vld [vmem:[%s3456_s3 + $0x8] sm:$0xff] (!%p242_p9)   ;;  %v2702_v4 = vld [vmem:[%s3456_s3 + $0x10] sm:$0xff] (!%p242_p9)  }
   0xe   : > { %245 = sbr.rel (%p242_p9) target bundleno = 1040 (0x410), region = 48  ;;  %2658 = vmatprep.subr.msk.bf16.mxu0 (!%p242_p9), %vm482_vm0, %v377_v0  ;;  %v484_v1 = vsel (!%p242_p9), %vm482_vm0, %v377_v0, 0  ;;  %p274_p10 = scmp.lt.s32.totalorder (!%p242_p9), %s2098_s15, 255  ;;  %v2700_v2 = vld [vmem:[%s3456_s3] sm:$0xff] (!%p242_p9)   ;;  %vm385_vm1 = vcmask (!%p242_p9), 31744   ;;  %v2703_v14 = vld [vmem:[%s3456_s3 + $0x18] sm:$0xff] (!%p242_p9)  }
   0xf   : > { %2337 = vmatpush3.bf16.msra.mxu0 (!%p242_p9), %v484_v1  ;;  %2402 = vmatprep.subr.bf16.mxu1 (!%p242_p9), %v2700_v2  ;;  %v2704_v20 = vld [vmem:[%s3456_s3 + $0x20] sm:$0xff] (!%p242_p9)   ;;  %v2705_v32 = vld [vmem:[%s3456_s3 + $0x28] sm:$0xff] (!%p242_p9)   ;;  %s270_s18 = sand.u32 (!%p242_p9), 1, %s2778_s25   ;;  %s2182_s29 = sshll.u32 (!%p242_p9), %s2852_s28, 13 }
  0x10   : > { %2403 = vmatpush3.bf16.msra.mxu1 (!%p242_p9), %v2700_v2  ;;  %s2097_s19 = sshll.u32 (!%p242_p9), %s270_s18, 9  ;;  %s3402_s14 = scalar_lea.hbm (!%p242_p9), %s3460_s7, %s2182_s29 }
  0x11   : > { %2404 = vmatprep.subr.bf16.mxu1 (!%p242_p9), %v2701_v3  ;;  %s3273_s22 = scalar_lea.vmem (!%p242_p9), [#allocation2], %s2097_s19  ;;  %s3412_s28 = scalar_lea.sflag (!%p242_p9), [#allocation3], %s270_s18 }
  0x12   : > { %s2031_s8 = sshll.u32 (!%p242_p9), %s3273_s22, 4  ;;  %s3404_s8 = int_to_ptr.vmem [resolvable:$true] %s2031_s8 }
  0x14   : > { %2405 = vmatpush3.bf16.msra.mxu1 (!%p242_p9), %v2701_v3 }
  0x15   : > { %s3468_s15 = smov (!%p274_p10, %s2098_s15), 255  ;;  %2406 = vmatprep.subr.bf16.mxu1 %v2702_v4 }
  0x16   : > { %s2099_s20 = sshll.u32 %s3468_s15, 3  ;;  %s2788_s15 = smov [#allocation2]  }
  0x17   : > { %s2892_s23 = scalar_lea.vmem %s3453_s0, %s2099_s20  ;;  %s2728_s16 = sshll.u32 %s2788_s15, 4  ;;  %s2729_s16 = int_to_ptr.vmem [resolvable:$false] %s2728_s16 }
  0x18   : > { %v281_v5 = vld [vmem:[%s2892_s23] sm:$0xff]  ;;  %v282_v6 = vld [vmem:[%s2892_s23 + $0x8] sm:$0xff]  ;;  %v283_v7 = vld [vmem:[%s2892_s23 + $0x10] sm:$0xff]  ;;  %2407 = vmatpush3.bf16.msra.mxu1 %v2702_v4  ;;  %s2730_s17 = scalar_lea.vmem %s2729_s16, 16384  ;;  %p2731_p0 = scmp.lt.s32.totalorder %s3404_s8, %s2729_s16 }
  0x19   : > { %v345_v8 = vpack.c.bf16 %v282_v6, %v281_v5  ;;  %v284_v9 = vld [vmem:[%s2892_s23 + $0x18] sm:$0xff]  ;;  %v285_v10 = vld [vmem:[%s2892_s23 + $0x20] sm:$0xff]  ;;  %v286_v11 = vld [vmem:[%s2892_s23 + $0x28] sm:$0xff]  ;;  %2408 = vmatprep.subr.bf16.mxu1 %v2703_v14 }
  0x1a   : > { %v346_v12 = vpack.c.bf16 %v284_v9, %v283_v7  ;;  %v347_v13 = vpack.c.bf16 %v286_v11, %v285_v10  ;;  %v287_v15 = vld [vmem:[%s2892_s23 + $0x30] sm:$0xff]  ;;  %v288_v16 = vld [vmem:[%s2892_s23 + $0x38] sm:$0xff]  ;;  %v289_v17 = vld [vmem:[%s2892_s23 + $0x40] sm:$0xff] }
  0x1b   : > { %2338 = vmatprep.mubr.msk.bf16.mxu0 %vm385_vm1, %v345_v8  ;;  %v290_v18 = vld [vmem:[%s2892_s23 + $0x48] sm:$0xff]  ;;  %v348_v19 = vpack.c.bf16 %v288_v16, %v287_v15  ;;  %v291_v22 = vld [vmem:[%s2892_s23 + $0x50] sm:$0xff]  ;;  %v292_v23 = vld [vmem:[%s2892_s23 + $0x58] sm:$0xff] }
  0x1c   : > { %2339 = vmatmul.mubr.msk.bf16.vlgmr.msra.gmra.mrb[0].mxu0 %vm385_vm1, %v346_v12  ;;  %v349_v21 = vpack.c.bf16 %v290_v18, %v289_v17  ;;  %2409 = vmatpush3.bf16.msra.mxu1 %v2703_v14  ;;  %v293_v24 = vld [vmem:[%s2892_s23 + $0x60] sm:$0xff]  ;;  %v294_v25 = vld [vmem:[%s2892_s23 + $0x68] sm:$0xff]  ;;  %v350_v26 = vpack.c.bf16 %v292_v23, %v291_v22  ;;  %v295_v28 = vld [vmem:[%s2892_s23 + $0x70] sm:$0xff] }
  0x1d   : > { %2342 = vmatprep.mubr.msk.bf16.mxu0 %vm385_vm1, %v347_v13  ;;  %2410 = vmatprep.subr.bf16.mxu1 %v2704_v20  ;;  %v351_v27 = vpack.c.bf16 %v294_v25, %v293_v24  ;;  %v296_v29 = vld [vmem:[%s2892_s23 + $0x78] sm:$0xff]  ;;  %v297_v30 = vld [vmem:[%s2892_s23 + $0x80] sm:$0xff]  ;;  %v298_v31 = vld [vmem:[%s2892_s23 + $0x88] sm:$0xff] }
  0x1e   : > { %v352_v33 = vpack.c.bf16 %v296_v29, %v295_v28  ;;  %v353_v34 = vpack.c.bf16 %v298_v31, %v297_v30  ;;  %v299_v35 = vld [vmem:[%s2892_s23 + $0x90] sm:$0xff]  ;;  %v300_v36 = vld [vmem:[%s2892_s23 + $0x98] sm:$0xff]  ;;  %v301_v37 = vld [vmem:[%s2892_s23 + $0xa0] sm:$0xff] }
  0x1f   : > { %v302_v38 = vld [vmem:[%s2892_s23 + $0xa8] sm:$0xff]  ;;  %v354_v39 = vpack.c.bf16 %v300_v36, %v299_v35  ;;  %v303_v41 = vld [vmem:[%s2892_s23 + $0xb0] sm:$0xff]  ;;  %v304_v42 = vld [vmem:[%s2892_s23 + $0xb8] sm:$0xff] }
  0x20   : > { %2411 = vmatpush3.bf16.msra.mxu1 %v2704_v20  ;;  %v355_v40 = vpack.c.bf16 %v302_v38, %v301_v37  ;;  %v305_v43 = vld [vmem:[%s2892_s23 + $0xc0] sm:$0xff]  ;;  %v306_v44 = vld [vmem:[%s2892_s23 + $0xc8] sm:$0xff]  ;;  %v356_v45 = vpack.c.bf16 %v304_v42, %v303_v41  ;;  %v307_v47 = vld [vmem:[%s2892_s23 + $0xd0] sm:$0xff] }
  0x21   : > { %2412 = vmatprep.subr.bf16.mxu1 %v2705_v32  ;;  %v357_v46 = vpack.c.bf16 %v306_v44, %v305_v43  ;;  %v308_v48 = vld [vmem:[%s2892_s23 + $0xd8] sm:$0xff]  ;;  %v309_v49 = vld [vmem:[%s2892_s23 + $0xe0] sm:$0xff]  ;;  %v310_v50 = vld [vmem:[%s2892_s23 + $0xe8] sm:$0xff] }
  0x22   : > { %v358_v51 = vpack.c.bf16 %v308_v48, %v307_v47  ;;  %v359_v52 = vpack.c.bf16 %v310_v50, %v309_v49  ;;  %v311_v53 = vld [vmem:[%s2892_s23 + $0xf0] sm:$0xff]  ;;  %v312_v54 = vld [vmem:[%s2892_s23 + $0xf8] sm:$0xff]  ;;  %v313_v55 = vld [vmem:[%s2892_s23 + $0x100] sm:$0xff] }
  0x23   : > { %v314_v56 = vld [vmem:[%s2892_s23 + $0x108] sm:$0xff]  ;;  %v360_v57 = vpack.c.bf16 %v312_v54, %v311_v53  ;;  %v315_v59 = vld [vmem:[%s2892_s23 + $0x110] sm:$0xff]  ;;  %v316_v60 = vld [vmem:[%s2892_s23 + $0x118] sm:$0xff] }
  0x24   : > { %2343 = vmatmul.mubr.msk.bf16.gmra.mrb[4].mxu0 %vm385_vm1, %v348_v19  ;;  %2413 = vmatpush3.bf16.msra.mxu1 %v2705_v32  ;;  %v361_v58 = vpack.c.bf16 %v314_v56, %v313_v55  ;;  %v317_v61 = vld [vmem:[%s2892_s23 + $0x120] sm:$0xff]  ;;  %v318_v62 = vld [vmem:[%s2892_s23 + $0x128] sm:$0xff]  ;;  %v362_v63 = vpack.c.bf16 %v316_v60, %v315_v59  ;;  %v319_v1 = vld [vmem:[%s2892_s23 + $0x130] sm:$0xff] }
  0x25   : > { %2346 = vmatprep.mubr.msk.bf16.mxu0 %vm385_vm1, %v349_v21  ;;  %v363_v0 = vpack.c.bf16 %v318_v62, %v317_v61  ;;  %v320_v2 = vld [vmem:[%s2892_s23 + $0x138] sm:$0xff]  ;;  %v321_v3 = vld [vmem:[%s2892_s23 + $0x140] sm:$0xff]  ;;  %v322_v4 = vld [vmem:[%s2892_s23 + $0x148] sm:$0xff] }
  0x26   : > { %v364_v5 = vpack.c.bf16 %v320_v2, %v319_v1  ;;  %v365_v6 = vpack.c.bf16 %v322_v4, %v321_v3  ;;  %v323_v7 = vld [vmem:[%s2892_s23 + $0x150] sm:$0xff]  ;;  %v324_v8 = vld [vmem:[%s2892_s23 + $0x158] sm:$0xff]  ;;  %v325_v9 = vld [vmem:[%s2892_s23 + $0x160] sm:$0xff] }
  0x27   : > { %v326_v10 = vld [vmem:[%s2892_s23 + $0x168] sm:$0xff]  ;;  %v366_v11 = vpack.c.bf16 %v324_v8, %v323_v7  ;;  %v327_v13 = vld [vmem:[%s2892_s23 + $0x170] sm:$0xff]  ;;  %v328_v14 = vld [vmem:[%s2892_s23 + $0x178] sm:$0xff] }
  0x28   : > { %v367_v12 = vpack.c.bf16 %v326_v10, %v325_v9  ;;  %v329_v15 = vld [vmem:[%s2892_s23 + $0x180] sm:$0xff]  ;;  %v330_v16 = vld [vmem:[%s2892_s23 + $0x188] sm:$0xff]  ;;  %v2706_v17 = vld [vmem:[%s3456_s3 + $0x30] sm:$0xff]   ;;  %v368_v18 = vpack.c.bf16 %v328_v14, %v327_v13 }
  0x29   : > { %2414 = vmatprep.subr.bf16.mxu1 %v2706_v17  ;;  %v369_v19 = vpack.c.bf16 %v330_v16, %v329_v15  ;;  %v2707_v20 = vld [vmem:[%s3456_s3 + $0x38] sm:$0xff]   ;;  %v331_v21 = vld [vmem:[%s2892_s23 + $0x190] sm:$0xff]  ;;  %v333_v23 = vld [vmem:[%s2892_s23 + $0x1a0] sm:$0xff] }
  0x2a   : > { %2415 = vmatpush3.bf16.msra.mxu1 %v2706_v17  ;;  %v332_v22 = vld [vmem:[%s2892_s23 + $0x198] sm:$0xff]  ;;  %v334_v24 = vld [vmem:[%s2892_s23 + $0x1a8] sm:$0xff]  ;;  %v337_v29 = vld [vmem:[%s2892_s23 + $0x1c0] sm:$0xff] }
  0x2b   : > { %2416 = vmatprep.subr.bf16.mxu1 %v2707_v20  ;;  %v370_v25 = vpack.c.bf16 %v332_v22, %v331_v21  ;;  %v336_v28 = vld [vmem:[%s2892_s23 + $0x1b8] sm:$0xff]  ;;  %v338_v30 = vld [vmem:[%s2892_s23 + $0x1c8] sm:$0xff]  ;;  %v341_v35 = vld [vmem:[%s2892_s23 + $0x1e0] sm:$0xff] }
  0x2c   : > { %2347 = vmatmul.mubr.msk.bf16.gmra.mrb[8].mxu0 %vm385_vm1, %v350_v26  ;;  %v371_v26 = vpack.c.bf16 %v334_v24, %v333_v23  ;;  %v373_v32 = vpack.c.bf16 %v338_v30, %v337_v29  ;;  %v342_v36 = vld [vmem:[%s2892_s23 + $0x1e8] sm:$0xff]  ;;  %v2708_v42 = vld [vmem:[%s3456_s3 + $0x40] sm:$0xff]   ;;  %v2710_v47 = vld [vmem:[%s3456_s3 + $0x50] sm:$0xff]  }
  0x2d   : > { %2350 = vmatprep.mubr.msk.bf16.mxu0 %vm385_vm1, %v351_v27  ;;  %v335_v27 = vld [vmem:[%s2892_s23 + $0x1b0] sm:$0xff]  ;;  %v375_v38 = vpack.c.bf16 %v342_v36, %v341_v35  ;;  %2482 = vmatprep.subr.bf16.mxu0 %v2708_v42  ;;  %v2709_v43 = vld [vmem:[%s3456_s3 + $0x48] sm:$0xff]   ;;  %v2711_v48 = vld [vmem:[%s3456_s3 + $0x58] sm:$0xff]  }
  0x2e   : > { %2417 = vmatpush3.bf16.msra.mxu1 %v2707_v20  ;;  %v372_v31 = vpack.c.bf16 %v336_v28, %v335_v27  ;;  %2483 = vmatpush3.bf16.msra.mxu0 %v2708_v42  ;;  %v2712_v56 = vld [vmem:[%s3456_s3 + $0x60] sm:$0xff]   ;;  %v2713_v60 = vld [vmem:[%s3456_s3 + $0x68] sm:$0xff]   ;;  %v2714_v4 = vld [vmem:[%s3456_s3 + $0x70] sm:$0xff]  }
  0x2f   : > { %2484 = vmatprep.subr.bf16.mxu0 %v2709_v43  ;;  %v2715_v8 = vld [vmem:[%s3456_s3 + $0x78] sm:$0xff]  }
  0x32   : > { %2485 = vmatpush3.bf16.msra.mxu0 %v2709_v43 }
  0x33   : > { %2486 = vmatprep.subr.bf16.mxu0 %v2710_v47 }
  0x34   : > { %2351 = vmatmul.mubr.msk.bf16.gmra.mrb[12].mxu0 %vm385_vm1, %v352_v33  ;;  %v339_v33 = vld [vmem:[%s2892_s23 + $0x1d0] sm:$0xff] }
  0x35   : > { %2354 = vmatprep.mubr.msk.bf16.mxu0 %vm385_vm1, %v353_v34  ;;  %v340_v34 = vld [vmem:[%s2892_s23 + $0x1d8] sm:$0xff] }
  0x36   : > { %v374_v37 = vpack.c.bf16 %v340_v34, %v339_v33  ;;  %2487 = vmatpush3.bf16.msra.mxu0 %v2710_v47 }
  0x37   : > { %2488 = vmatprep.subr.bf16.mxu0 %v2711_v48 }
  0x3a   : > { %2489 = vmatpush3.bf16.msra.mxu0 %v2711_v48 }
  0x3b   : > { %2490 = vmatprep.subr.bf16.mxu0 %v2712_v56 }
  0x3c   : > { %2355 = vmatmul.mubr.msk.bf16.gmra.mrb[16].mxu0 %vm385_vm1, %v354_v39  ;;  %v343_v39 = vld [vmem:[%s2892_s23 + $0x1f0] sm:$0xff] }
  0x3d   : > { %2358 = vmatprep.mubr.msk.bf16.mxu0 %vm385_vm1, %v355_v40  ;;  %v344_v40 = vld [vmem:[%s2892_s23 + $0x1f8] sm:$0xff]  ;;  %s2724_s23 = scalar_lea.vmem %s3404_s8, 8192 }
  0x3e   : > { %v376_v41 = vpack.c.bf16 %v344_v40, %v343_v39  ;;  %2491 = vmatpush3.bf16.msra.mxu0 %v2712_v56  ;;  %p2725_p11 = scmp.ne.s32.totalorder %s3404_s8, %s2724_s23  ;;  %p2732_p1 = scmp.lt.s32.totalorder %s2730_s17, %s2724_s23 }
  0x3f   : > { %2492 = vmatprep.subr.bf16.mxu0 %v2713_v60 }
  0x40   : > { %p2726_p12 = pnand %p2725_p11, %p2869_p5  ;;  %p2733_p2 = por %p2732_p1, %p2731_p0 }
  0x42   : > { %2493 = vmatpush3.bf16.msra.mxu0 %v2713_v60  ;;  %p2727_p13 = pneg %p2726_p12 }
  0x43   : > { %2494 = vmatprep.subr.bf16.mxu0 %v2714_v4 }
  0x44   : > { %2359 = vmatmul.mubr.msk.bf16.gmra.mrb[20].mxu0 %vm385_vm1, %v356_v45  ;;  %v3017_v45 = vld [vmem:[%s3455_s2] ss:$0 sm:$0xff]  ;;  %p2734_p3 = pnand %p2733_p2, %p2727_p13 }
  0x45   : > { %2362 = vmatprep.mubr.msk.bf16.mxu0 %vm385_vm1, %v357_v46 }
  0x46   : > { %2495 = vmatpush3.bf16.msra.mxu0 %v2714_v4 }
  0x47   : > { %2496 = vmatprep.subr.bf16.mxu0 %v2715_v8 }
  0x4a   : > { %2497 = vmatpush3.bf16.msra.mxu0 %v2715_v8 }
  0x4c   : > { %2363 = vmatmul.mubr.msk.bf16.gmra.mrb[24].mxu0 %vm385_vm1, %v358_v51 }
  0x4d   : > { %2366 = vmatprep.mubr.msk.bf16.mxu0 %vm385_vm1, %v359_v52 }
  0x54   : > { %2367 = vmatmul.mubr.msk.bf16.gmra.mrb[28].mxu0 %vm385_vm1, %v360_v57 }
  0x55   : > { %2370 = vmatprep.mubr.msk.bf16.mxu0 %vm385_vm1, %v361_v58 }
  0x5c   : > { %2371 = vmatmul.mubr.msk.bf16.gmra.mrb[32].mxu0 %vm385_vm1, %v362_v63 }
  0x5d   : > { %2374 = vmatprep.mubr.msk.bf16.mxu0 %vm385_vm1, %v363_v0 }
  0x64   : > { %2375 = vmatmul.mubr.msk.bf16.gmra.mrb[36].mxu0 %vm385_vm1, %v364_v5 }
  0x65   : > { %2378 = vmatprep.mubr.msk.bf16.mxu0 %vm385_vm1, %v365_v6 }
  0x6c   : > { %2379 = vmatmul.mubr.msk.bf16.gmra.mrb[40].mxu0 %vm385_vm1, %v366_v11 }
  0x6d   : > { %2382 = vmatprep.mubr.msk.bf16.mxu0 %vm385_vm1, %v367_v12 }
  0x74   : > { %2383 = vmatmul.mubr.msk.bf16.gmra.mrb[44].mxu0 %vm385_vm1, %v368_v18 }
  0x75   : > { %2386 = vmatprep.mubr.msk.bf16.mxu0 %vm385_vm1, %v369_v19 }
  0x7c   : > { %2387 = vmatmul.mubr.msk.bf16.gmra.mrb[48].mxu0 %vm385_vm1, %v370_v25 }
  0x7d   : > { %2390 = vmatprep.mubr.msk.bf16.mxu0 %vm385_vm1, %v371_v26 }
  0x84   : > { %2391 = vmatmul.mubr.msk.bf16.gmra.mrb[52].mxu0 %vm385_vm1, %v372_v31 }
  0x85   : > { %2394 = vmatprep.mubr.msk.bf16.mxu0 %vm385_vm1, %v373_v32 }
  0x8c   : > { %2395 = vmatmul.mubr.msk.bf16.gmra.mrb[56].mxu0 %vm385_vm1, %v374_v37 }
  0x8d   : > { %2398 = vmatprep.mubr.msk.bf16.mxu0 %vm385_vm1, %v375_v38 }
  0x94   : > { %2399 = vmatmul.mubr.msk.bf16.gmra.mrb[60].mxu0 %vm385_vm1, %v376_v41 }
  0xef   : > { %v2340_v44 = vpop.f32.mrb[0].mxu0 }
  0xf0   : > { %v520_v46 = vpop.f32.mrb[1].mxu0  ;;  %v529_v50 = vadd.f32 %v2340_v44, %v3017_v45 }
  0xf1   : > { %v2341_v49 = vpop.f32.mrb[2].mxu0  ;;  %v521_v53 = vadd.f32 %v3017_v45, %v520_v46 }
  0xf2   : > { %v532_v51 = vadd.f32 %v2341_v49, %v3017_v45  ;;  %v523_v52 = vpop.f32.mrb[3].mxu0 }
  0xf3   : > { %v524_v54 = vadd.f32 %v3017_v45, %v523_v52 }
  0xf4   : > { %v776_v55 = vpack.c.bf16 %v532_v51, %v529_v50 }
  0xf5   : > { %v775_v57 = vpack.c.bf16 %v524_v54, %v521_v53 }
  0xf7   : > { %v2344_v58 = vpop.f32.mrb[4].mxu0  ;;  %2418 = vmatprep.mubr.bf16.mxu1 %v775_v57 }
  0xf8   : > { %v536_v59 = vpop.f32.mrb[5].mxu0  ;;  %2419 = vmatmul.mubr.bf16.vlgmr.msra.gmra.mrb[0].mxu1 %v776_v55  ;;  %v545_v62 = vadd.f32 %v2344_v58, %v3017_v45 }
  0xf9   : > { %v2345_v61 = vpop.f32.mrb[6].mxu0  ;;  %v537_v1 = vadd.f32 %v3017_v45, %v536_v59 }
  0xfa   : > { %v548_v63 = vadd.f32 %v2345_v61, %v3017_v45  ;;  %v539_v0 = vpop.f32.mrb[7].mxu0 }
  0xfb   : > { %v540_v2 = vadd.f32 %v3017_v45, %v539_v0 }
  0xfc   : > { %v778_v3 = vpack.c.bf16 %v548_v63, %v545_v62 }
  0xfd   : > { %v777_v5 = vpack.c.bf16 %v540_v2, %v537_v1 }
  0xff   : > { %v2348_v6 = vpop.f32.mrb[8].mxu0  ;;  %2422 = vmatprep.mubr.bf16.mxu1 %v777_v5 }
 0x100   : > { %v552_v7 = vpop.f32.mrb[9].mxu0  ;;  %2423 = vmatmul.mubr.bf16.gmra.mrb[4].mxu1 %v778_v3  ;;  %v561_v10 = vadd.f32 %v2348_v6, %v3017_v45 }
 0x101   : > { %v2349_v9 = vpop.f32.mrb[10].mxu0  ;;  %v553_v13 = vadd.f32 %v3017_v45, %v552_v7 }
 0x102   : > { %v564_v11 = vadd.f32 %v2349_v9, %v3017_v45  ;;  %v555_v12 = vpop.f32.mrb[11].mxu0 }
 0x103   : > { %v556_v14 = vadd.f32 %v3017_v45, %v555_v12 }
 0x104   : > { %v780_v15 = vpack.c.bf16 %v564_v11, %v561_v10 }
 0x105   : > { %v779_v16 = vpack.c.bf16 %v556_v14, %v553_v13 }
 0x107   : > { %v2352_v17 = vpop.f32.mrb[12].mxu0  ;;  %2426 = vmatprep.mubr.bf16.mxu1 %v779_v16 }
 0x108   : > { %v568_v18 = vpop.f32.mrb[13].mxu0  ;;  %2427 = vmatmul.mubr.bf16.gmra.mrb[8].mxu1 %v780_v15  ;;  %v577_v20 = vadd.f32 %v2352_v17, %v3017_v45 }
 0x109   : > { %v2353_v19 = vpop.f32.mrb[14].mxu0  ;;  %v569_v23 = vadd.f32 %v3017_v45, %v568_v18 }
 0x10a   : > { %v580_v21 = vadd.f32 %v2353_v19, %v3017_v45  ;;  %v571_v22 = vpop.f32.mrb[15].mxu0 }
 0x10b   : > { %v572_v24 = vadd.f32 %v3017_v45, %v571_v22 }
 0x10c   : > { %v782_v25 = vpack.c.bf16 %v580_v21, %v577_v20 }
 0x10d   : > { %v781_v26 = vpack.c.bf16 %v572_v24, %v569_v23 }
 0x10f   : > { %v2356_v27 = vpop.f32.mrb[16].mxu0  ;;  %2430 = vmatprep.mubr.bf16.mxu1 %v781_v26 }
 0x110   : > { %v584_v28 = vpop.f32.mrb[17].mxu0  ;;  %2431 = vmatmul.mubr.bf16.gmra.mrb[12].mxu1 %v782_v25  ;;  %v593_v30 = vadd.f32 %v2356_v27, %v3017_v45 }
 0x111   : > { %v2357_v29 = vpop.f32.mrb[18].mxu0  ;;  %v585_v33 = vadd.f32 %v3017_v45, %v584_v28 }
 0x112   : > { %v596_v31 = vadd.f32 %v2357_v29, %v3017_v45  ;;  %v587_v32 = vpop.f32.mrb[19].mxu0 }
 0x113   : > { %v588_v34 = vadd.f32 %v3017_v45, %v587_v32 }
 0x114   : > { %v784_v35 = vpack.c.bf16 %v596_v31, %v593_v30 }
 0x115   : > { %v783_v36 = vpack.c.bf16 %v588_v34, %v585_v33 }
 0x117   : > { %v2360_v37 = vpop.f32.mrb[20].mxu0  ;;  %2434 = vmatprep.mubr.bf16.mxu1 %v783_v36 }
 0x118   : > { %v600_v38 = vpop.f32.mrb[21].mxu0  ;;  %2435 = vmatmul.mubr.bf16.gmra.mrb[16].mxu1 %v784_v35  ;;  %v609_v40 = vadd.f32 %v2360_v37, %v3017_v45 }
 0x119   : > { %v2361_v39 = vpop.f32.mrb[22].mxu0  ;;  %v601_v43 = vadd.f32 %v3017_v45, %v600_v38 }
 0x11a   : > { %v612_v41 = vadd.f32 %v2361_v39, %v3017_v45  ;;  %v603_v42 = vpop.f32.mrb[23].mxu0 }
 0x11b   : > { %v604_v44 = vadd.f32 %v3017_v45, %v603_v42 }
 0x11c   : > { %v786_v46 = vpack.c.bf16 %v612_v41, %v609_v40 }
 0x11d   : > { %v785_v47 = vpack.c.bf16 %v604_v44, %v601_v43 }
 0x11f   : > { %v2364_v48 = vpop.f32.mrb[24].mxu0  ;;  %2438 = vmatprep.mubr.bf16.mxu1 %v785_v47 }
 0x120   : > { %v616_v49 = vpop.f32.mrb[25].mxu0  ;;  %2439 = vmatmul.mubr.bf16.gmra.mrb[20].mxu1 %v786_v46  ;;  %v625_v51 = vadd.f32 %v2364_v48, %v3017_v45 }
 0x121   : > { %v2365_v50 = vpop.f32.mrb[26].mxu0  ;;  %v617_v54 = vadd.f32 %v3017_v45, %v616_v49 }
 0x122   : > { %v628_v52 = vadd.f32 %v2365_v50, %v3017_v45  ;;  %v619_v53 = vpop.f32.mrb[27].mxu0 }
 0x123   : > { %v620_v55 = vadd.f32 %v3017_v45, %v619_v53 }
 0x124   : > { %v788_v56 = vpack.c.bf16 %v628_v52, %v625_v51 }
 0x125   : > { %v787_v57 = vpack.c.bf16 %v620_v55, %v617_v54 }
 0x127   : > { %v2368_v58 = vpop.f32.mrb[28].mxu0  ;;  %2442 = vmatprep.mubr.bf16.mxu1 %v787_v57 }
 0x128   : > { %v632_v59 = vpop.f32.mrb[29].mxu0  ;;  %2443 = vmatmul.mubr.bf16.gmra.mrb[24].mxu1 %v788_v56  ;;  %v641_v61 = vadd.f32 %v2368_v58, %v3017_v45 }
 0x129   : > { %v2369_v60 = vpop.f32.mrb[30].mxu0  ;;  %v633_v0 = vadd.f32 %v3017_v45, %v632_v59 }
 0x12a   : > { %v644_v62 = vadd.f32 %v2369_v60, %v3017_v45  ;;  %v635_v63 = vpop.f32.mrb[31].mxu0 }
 0x12b   : > { %v636_v1 = vadd.f32 %v3017_v45, %v635_v63 }
 0x12c   : > { %v790_v2 = vpack.c.bf16 %v644_v62, %v641_v61 }
 0x12d   : > { %v789_v3 = vpack.c.bf16 %v636_v1, %v633_v0 }
 0x12f   : > { %v2372_v4 = vpop.f32.mrb[32].mxu0  ;;  %2446 = vmatprep.mubr.bf16.mxu1 %v789_v3 }
 0x130   : > { %v648_v5 = vpop.f32.mrb[33].mxu0  ;;  %2447 = vmatmul.mubr.bf16.gmra.mrb[28].mxu1 %v790_v2  ;;  %v657_v7 = vadd.f32 %v2372_v4, %v3017_v45 }
 0x131   : > { %v2373_v6 = vpop.f32.mrb[34].mxu0  ;;  %v649_v10 = vadd.f32 %v3017_v45, %v648_v5 }
 0x132   : > { %v660_v8 = vadd.f32 %v2373_v6, %v3017_v45  ;;  %v651_v9 = vpop.f32.mrb[35].mxu0 }
 0x133   : > { %v652_v11 = vadd.f32 %v3017_v45, %v651_v9 }
 0x134   : > { %v792_v12 = vpack.c.bf16 %v660_v8, %v657_v7 }
 0x135   : > { %v791_v13 = vpack.c.bf16 %v652_v11, %v649_v10 }
 0x137   : > { %v2376_v14 = vpop.f32.mrb[36].mxu0  ;;  %2450 = vmatprep.mubr.bf16.mxu1 %v791_v13 }
 0x138   : > { %v664_v15 = vpop.f32.mrb[37].mxu0  ;;  %2451 = vmatmul.mubr.bf16.gmra.mrb[32].mxu1 %v792_v12  ;;  %v673_v17 = vadd.f32 %v2376_v14, %v3017_v45 }
 0x139   : > { %v2377_v16 = vpop.f32.mrb[38].mxu0  ;;  %v665_v20 = vadd.f32 %v3017_v45, %v664_v15 }
 0x13a   : > { %v676_v18 = vadd.f32 %v2377_v16, %v3017_v45  ;;  %v667_v19 = vpop.f32.mrb[39].mxu0 }
 0x13b   : > { %v668_v21 = vadd.f32 %v3017_v45, %v667_v19 }
 0x13c   : > { %v794_v22 = vpack.c.bf16 %v676_v18, %v673_v17 }
 0x13d   : > { %v793_v23 = vpack.c.bf16 %v668_v21, %v665_v20  ;;  %v2716_v21 = vld [vmem:[%s3458_s5] sm:$0xff]  }
 0x13e   : > { %2642 = vmatprep.subr.bf16.mxu1 %v2716_v21  ;;  %2562 = vmatprep.subr.bf16.mxu0 %v2716_v21 }
 0x13f   : > { %v2380_v24 = vpop.f32.mrb[40].mxu0  ;;  %2454 = vmatprep.mubr.bf16.mxu1 %v793_v23  ;;  %2650 = vmatpush3.bf16.msra.mxu1 %v2716_v21 }
 0x140   : > { %v680_v25 = vpop.f32.mrb[41].mxu0  ;;  %2455 = vmatmul.mubr.bf16.gmra.mrb[36].mxu1 %v794_v22  ;;  %v689_v27 = vadd.f32 %v2380_v24, %v3017_v45  ;;  %v2717_v22 = vld [vmem:[%s3458_s5 + $0x8] sm:$0xff]  }
 0x141   : > { %v2381_v26 = vpop.f32.mrb[42].mxu0  ;;  %v681_v30 = vadd.f32 %v3017_v45, %v680_v25  ;;  %2643 = vmatprep.subr.bf16.mxu1 %v2717_v22  ;;  %v2718_v25 = vld [vmem:[%s3458_s5 + $0x10] sm:$0xff]  }
 0x142   : > { %v692_v28 = vadd.f32 %v2381_v26, %v3017_v45  ;;  %v683_v29 = vpop.f32.mrb[43].mxu0 }
 0x143   : > { %v684_v31 = vadd.f32 %v3017_v45, %v683_v29  ;;  %2651 = vmatpush3.bf16.msra.mxu1 %v2717_v22 }
 0x144   : > { %v796_v32 = vpack.c.bf16 %v692_v28, %v689_v27  ;;  %2644 = vmatprep.subr.bf16.mxu1 %v2718_v25 }
 0x145   : > { %v795_v33 = vpack.c.bf16 %v684_v31, %v681_v30 }
 0x147   : > { %v2384_v34 = vpop.f32.mrb[44].mxu0  ;;  %2458 = vmatprep.mubr.bf16.mxu1 %v795_v33  ;;  %2652 = vmatpush3.bf16.msra.mxu1 %v2718_v25 }
 0x148   : > { %v696_v35 = vpop.f32.mrb[45].mxu0  ;;  %2459 = vmatmul.mubr.bf16.gmra.mrb[40].mxu1 %v796_v32  ;;  %v705_v37 = vadd.f32 %v2384_v34, %v3017_v45  ;;  %v2719_v32 = vld [vmem:[%s3458_s5 + $0x18] sm:$0xff]  }
 0x149   : > { %v2385_v36 = vpop.f32.mrb[46].mxu0  ;;  %v697_v40 = vadd.f32 %v3017_v45, %v696_v35  ;;  %2645 = vmatprep.subr.bf16.mxu1 %v2719_v32 }
 0x14a   : > { %v708_v38 = vadd.f32 %v2385_v36, %v3017_v45  ;;  %v699_v39 = vpop.f32.mrb[47].mxu0  ;;  %v2720_v36 = vld [vmem:[%s3458_s5 + $0x20] sm:$0xff]  }
 0x14b   : > { %v700_v41 = vadd.f32 %v3017_v45, %v699_v39  ;;  %2653 = vmatpush3.bf16.msra.mxu1 %v2719_v32 }
 0x14c   : > { %v798_v42 = vpack.c.bf16 %v708_v38, %v705_v37  ;;  %2646 = vmatprep.subr.bf16.mxu1 %v2720_v36 }
 0x14d   : > { %v797_v43 = vpack.c.bf16 %v700_v41, %v697_v40 }
 0x14f   : > { %v2388_v44 = vpop.f32.mrb[48].mxu0  ;;  %2462 = vmatprep.mubr.bf16.mxu1 %v797_v43  ;;  %2654 = vmatpush3.bf16.msra.mxu1 %v2720_v36 }
 0x150   : > { %v712_v46 = vpop.f32.mrb[49].mxu0  ;;  %2463 = vmatmul.mubr.bf16.gmra.mrb[44].mxu1 %v798_v42  ;;  %v721_v48 = vadd.f32 %v2388_v44, %v3017_v45  ;;  %v2721_v44 = vld [vmem:[%s3458_s5 + $0x28] sm:$0xff]  }
 0x151   : > { %v2389_v47 = vpop.f32.mrb[50].mxu0  ;;  %v713_v51 = vadd.f32 %v3017_v45, %v712_v46  ;;  %2647 = vmatprep.subr.bf16.mxu1 %v2721_v44 }
 0x152   : > { %v724_v49 = vadd.f32 %v2389_v47, %v3017_v45  ;;  %v715_v50 = vpop.f32.mrb[51].mxu0 }
 0x153   : > { %v716_v52 = vadd.f32 %v3017_v45, %v715_v50  ;;  %2655 = vmatpush3.bf16.msra.mxu1 %v2721_v44 }
 0x154   : > { %v800_v53 = vpack.c.bf16 %v724_v49, %v721_v48  ;;  %v2722_v49 = vld [vmem:[%s3458_s5 + $0x30] sm:$0xff]  }
 0x155   : > { %v799_v54 = vpack.c.bf16 %v716_v52, %v713_v51  ;;  %2648 = vmatprep.subr.bf16.mxu1 %v2722_v49 }
 0x157   : > { %v2392_v55 = vpop.f32.mrb[52].mxu0  ;;  %2466 = vmatprep.mubr.bf16.mxu1 %v799_v54  ;;  %2656 = vmatpush3.bf16.msra.mxu1 %v2722_v49 }
 0x158   : > { %v728_v56 = vpop.f32.mrb[53].mxu0  ;;  %2467 = vmatmul.mubr.bf16.gmra.mrb[48].mxu1 %v800_v53  ;;  %v737_v58 = vadd.f32 %v2392_v55, %v3017_v45 }
 0x159   : > { %v2393_v57 = vpop.f32.mrb[54].mxu0  ;;  %v729_v61 = vadd.f32 %v3017_v45, %v728_v56 }
 0x15a   : > { %v740_v59 = vadd.f32 %v2393_v57, %v3017_v45  ;;  %v731_v60 = vpop.f32.mrb[55].mxu0 }
 0x15b   : > { %v732_v62 = vadd.f32 %v3017_v45, %v731_v60 }
 0x15c   : > { %v802_v63 = vpack.c.bf16 %v740_v59, %v737_v58 }
 0x15d   : > { %v801_v0 = vpack.c.bf16 %v732_v62, %v729_v61 }
 0x15f   : > { %v2396_v1 = vpop.f32.mrb[56].mxu0  ;;  %2470 = vmatprep.mubr.bf16.mxu1 %v801_v0 }
 0x160   : > { %v744_v2 = vpop.f32.mrb[57].mxu0  ;;  %2471 = vmatmul.mubr.bf16.gmra.mrb[52].mxu1 %v802_v63  ;;  %v753_v4 = vadd.f32 %v2396_v1, %v3017_v45 }
 0x161   : > { %v2397_v3 = vpop.f32.mrb[58].mxu0  ;;  %v745_v7 = vadd.f32 %v3017_v45, %v744_v2 }
 0x162   : > { %v756_v5 = vadd.f32 %v2397_v3, %v3017_v45  ;;  %v747_v6 = vpop.f32.mrb[59].mxu0 }
 0x163   : > { %v748_v8 = vadd.f32 %v3017_v45, %v747_v6 }
 0x164   : > { %v804_v9 = vpack.c.bf16 %v756_v5, %v753_v4 }
 0x165   : > { %v803_v10 = vpack.c.bf16 %v748_v8, %v745_v7 }
 0x167   : > { %v2400_v11 = vpop.f32.mrb[60].mxu0  ;;  %2474 = vmatprep.mubr.bf16.mxu1 %v803_v10 }
 0x168   : > { %v760_v12 = vpop.f32.mrb[61].mxu0  ;;  %2475 = vmatmul.mubr.bf16.gmra.mrb[56].mxu1 %v804_v9  ;;  %v769_v14 = vadd.f32 %v2400_v11, %v3017_v45 }
 0x169   : > { %v2401_v13 = vpop.f32.mrb[62].mxu0  ;;  %v761_v17 = vadd.f32 %v3017_v45, %v760_v12 }
 0x16a   : > { %v772_v15 = vadd.f32 %v2401_v13, %v3017_v45  ;;  %v763_v16 = vpop.f32.mrb[63].mxu0 }
 0x16b   : > { %v764_v18 = vadd.f32 %v3017_v45, %v763_v16  ;;  %v3110_v45 = vld [vmem:[%s3457_s4] ss:$0 sm:$0xff] }
 0x16c   : > { %v806_v19 = vpack.c.bf16 %v772_v15, %v769_v14 }
 0x16d   : > { %v805_v20 = vpack.c.bf16 %v764_v18, %v761_v17 }
 0x16f   : > { %2478 = vmatprep.mubr.bf16.mxu1 %v805_v20 }
 0x170   : > { %2479 = vmatmul.mubr.bf16.gmra.mrb[60].mxu1 %v806_v19 }
 0x1cb   : > { %v2420_v23 = vpop.f32.mrb[0].mxu1 }
 0x1cc   : > { %v912_v24 = vpop.f32.mrb[1].mxu1  ;;  %v921_v27 = vadd.f32 %v2420_v23, %v3110_v45 }
 0x1cd   : > { %v2421_v26 = vpop.f32.mrb[2].mxu1  ;;  %v913_v30 = vadd.f32 %v3110_v45, %v912_v24 }
 0x1ce   : > { %v924_v28 = vadd.f32 %v2421_v26, %v3110_v45  ;;  %v915_v29 = vpop.f32.mrb[3].mxu1 }
 0x1cf   : > { %v916_v31 = vadd.f32 %v3110_v45, %v915_v29 }
 0x1d0   : > { %v1168_v33 = vpack.c.bf16 %v924_v28, %v921_v27 }
 0x1d1   : > { %v1167_v34 = vpack.c.bf16 %v916_v31, %v913_v30 }
 0x1d3   : > { %v2424_v35 = vpop.f32.mrb[4].mxu1  ;;  %2498 = vmatprep.mubr.bf16.mxu0 %v1167_v34 }
 0x1d4   : > { %v928_v37 = vpop.f32.mrb[5].mxu1  ;;  %2499 = vmatmul.mubr.bf16.vlgmr.msra.gmra.mrb[64].mxu0 %v1168_v33  ;;  %v937_v39 = vadd.f32 %v2424_v35, %v3110_v45 }
 0x1d5   : > { %v2425_v38 = vpop.f32.mrb[6].mxu1  ;;  %2563 = vmatpush3.bf16.msra.mxu0 %v2716_v21  ;;  %v929_v42 = vadd.f32 %v3110_v45, %v928_v37 }
 0x1d6   : > { %v940_v40 = vadd.f32 %v2425_v38, %v3110_v45  ;;  %v931_v41 = vpop.f32.mrb[7].mxu1  ;;  %2564 = vmatprep.subr.bf16.mxu0 %v2717_v22 }
 0x1d7   : > { %v932_v43 = vadd.f32 %v3110_v45, %v931_v41 }
 0x1d8   : > { %v1170_v46 = vpack.c.bf16 %v940_v40, %v937_v39 }
 0x1d9   : > { %v1169_v47 = vpack.c.bf16 %v932_v43, %v929_v42  ;;  %2565 = vmatpush3.bf16.msra.mxu0 %v2717_v22 }
 0x1da   : > { %2566 = vmatprep.subr.bf16.mxu0 %v2718_v25 }
 0x1db   : > { %v2428_v48 = vpop.f32.mrb[8].mxu1  ;;  %2502 = vmatprep.mubr.bf16.mxu0 %v1169_v47 }
 0x1dc   : > { %v944_v50 = vpop.f32.mrb[9].mxu1  ;;  %2503 = vmatmul.mubr.bf16.gmra.mrb[68].mxu0 %v1170_v46  ;;  %v953_v52 = vadd.f32 %v2428_v48, %v3110_v45 }
 0x1dd   : > { %v2429_v51 = vpop.f32.mrb[10].mxu1  ;;  %2567 = vmatpush3.bf16.msra.mxu0 %v2718_v25  ;;  %v945_v55 = vadd.f32 %v3110_v45, %v944_v50 }
 0x1de   : > { %v956_v53 = vadd.f32 %v2429_v51, %v3110_v45  ;;  %v947_v54 = vpop.f32.mrb[11].mxu1  ;;  %2568 = vmatprep.subr.bf16.mxu0 %v2719_v32 }
 0x1df   : > { %v948_v56 = vadd.f32 %v3110_v45, %v947_v54 }
 0x1e0   : > { %v1172_v57 = vpack.c.bf16 %v956_v53, %v953_v52 }
 0x1e1   : > { %v1171_v58 = vpack.c.bf16 %v948_v56, %v945_v55  ;;  %2569 = vmatpush3.bf16.msra.mxu0 %v2719_v32 }
 0x1e2   : > { %2570 = vmatprep.subr.bf16.mxu0 %v2720_v36 }
 0x1e3   : > { %v2432_v59 = vpop.f32.mrb[12].mxu1  ;;  %2506 = vmatprep.mubr.bf16.mxu0 %v1171_v58 }
 0x1e4   : > { %v960_v60 = vpop.f32.mrb[13].mxu1  ;;  %2507 = vmatmul.mubr.bf16.gmra.mrb[72].mxu0 %v1172_v57  ;;  %v969_v62 = vadd.f32 %v2432_v59, %v3110_v45 }
 0x1e5   : > { %v2433_v61 = vpop.f32.mrb[14].mxu1  ;;  %2571 = vmatpush3.bf16.msra.mxu0 %v2720_v36  ;;  %v961_v1 = vadd.f32 %v3110_v45, %v960_v60 }
 0x1e6   : > { %v972_v63 = vadd.f32 %v2433_v61, %v3110_v45  ;;  %v963_v0 = vpop.f32.mrb[15].mxu1  ;;  %2572 = vmatprep.subr.bf16.mxu0 %v2721_v44 }
 0x1e7   : > { %v964_v2 = vadd.f32 %v3110_v45, %v963_v0 }
 0x1e8   : > { %v1174_v3 = vpack.c.bf16 %v972_v63, %v969_v62 }
 0x1e9   : > { %v1173_v4 = vpack.c.bf16 %v964_v2, %v961_v1  ;;  %2573 = vmatpush3.bf16.msra.mxu0 %v2721_v44 }
 0x1ea   : > { %2574 = vmatprep.subr.bf16.mxu0 %v2722_v49 }
 0x1eb   : > { %v2436_v5 = vpop.f32.mrb[16].mxu1  ;;  %2510 = vmatprep.mubr.bf16.mxu0 %v1173_v4 }
 0x1ec   : > { %v976_v6 = vpop.f32.mrb[17].mxu1  ;;  %2511 = vmatmul.mubr.bf16.gmra.mrb[76].mxu0 %v1174_v3  ;;  %v985_v8 = vadd.f32 %v2436_v5, %v3110_v45 }
 0x1ed   : > { %v2437_v7 = vpop.f32.mrb[18].mxu1  ;;  %2575 = vmatpush3.bf16.msra.mxu0 %v2722_v49  ;;  %v977_v11 = vadd.f32 %v3110_v45, %v976_v6 }
 0x1ee   : > { %v988_v9 = vadd.f32 %v2437_v7, %v3110_v45  ;;  %v979_v10 = vpop.f32.mrb[19].mxu1 }
 0x1ef   : > { %v980_v12 = vadd.f32 %v3110_v45, %v979_v10 }
 0x1f0   : > { %v1176_v13 = vpack.c.bf16 %v988_v9, %v985_v8 }
 0x1f1   : > { %v1175_v14 = vpack.c.bf16 %v980_v12, %v977_v11 }
 0x1f3   : > { %v2440_v15 = vpop.f32.mrb[20].mxu1  ;;  %2514 = vmatprep.mubr.bf16.mxu0 %v1175_v14 }
 0x1f4   : > { %v992_v16 = vpop.f32.mrb[21].mxu1  ;;  %2515 = vmatmul.mubr.bf16.gmra.mrb[80].mxu0 %v1176_v13  ;;  %v1001_v18 = vadd.f32 %v2440_v15, %v3110_v45 }
 0x1f5   : > { %v2441_v17 = vpop.f32.mrb[22].mxu1  ;;  %v993_v21 = vadd.f32 %v3110_v45, %v992_v16 }
 0x1f6   : > { %v1004_v19 = vadd.f32 %v2441_v17, %v3110_v45  ;;  %v995_v20 = vpop.f32.mrb[23].mxu1 }
 0x1f7   : > { %v996_v22 = vadd.f32 %v3110_v45, %v995_v20 }
 0x1f8   : > { %v1178_v23 = vpack.c.bf16 %v1004_v19, %v1001_v18 }
 0x1f9   : > { %v1177_v24 = vpack.c.bf16 %v996_v22, %v993_v21  ;;  %v2723_v21 = vld [vmem:[%s3458_s5 + $0x38] sm:$0xff]  }
 0x1fa   : > { %2649 = vmatprep.subr.bf16.mxu1 %v2723_v21  ;;  %2576 = vmatprep.subr.bf16.mxu0 %v2723_v21 }
 0x1fb   : > { %v2444_v25 = vpop.f32.mrb[24].mxu1  ;;  %2518 = vmatprep.mubr.bf16.mxu0 %v1177_v24  ;;  %2657 = vmatpush3.bf16.msra.mxu1 %v2723_v21 }
 0x1fc   : > { %v1008_v26 = vpop.f32.mrb[25].mxu1  ;;  %2519 = vmatmul.mubr.bf16.gmra.mrb[84].mxu0 %v1178_v23  ;;  %v1017_v28 = vadd.f32 %v2444_v25, %v3110_v45 }
 0x1fd   : > { %v2445_v27 = vpop.f32.mrb[26].mxu1  ;;  %v1009_v31 = vadd.f32 %v3110_v45, %v1008_v26  ;;  %2577 = vmatpush3.bf16.msra.mxu0 %v2723_v21 }
 0x1fe   : > { %v1020_v29 = vadd.f32 %v2445_v27, %v3110_v45  ;;  %v1011_v30 = vpop.f32.mrb[27].mxu1 }
 0x1ff   : > { %v1012_v32 = vadd.f32 %v3110_v45, %v1011_v30 }
 0x200   : > { %v1180_v33 = vpack.c.bf16 %v1020_v29, %v1017_v28 }
 0x201   : > { %v1179_v34 = vpack.c.bf16 %v1012_v32, %v1009_v31 }
 0x203   : > { %v2448_v35 = vpop.f32.mrb[28].mxu1  ;;  %2522 = vmatprep.mubr.bf16.mxu0 %v1179_v34 }
 0x204   : > { %v1024_v36 = vpop.f32.mrb[29].mxu1  ;;  %2523 = vmatmul.mubr.bf16.gmra.mrb[88].mxu0 %v1180_v33  ;;  %v1033_v38 = vadd.f32 %v2448_v35, %v3110_v45 }
 0x205   : > { %v2449_v37 = vpop.f32.mrb[30].mxu1  ;;  %v1025_v41 = vadd.f32 %v3110_v45, %v1024_v36 }
 0x206   : > { %v1036_v39 = vadd.f32 %v2449_v37, %v3110_v45  ;;  %v1027_v40 = vpop.f32.mrb[31].mxu1 }
 0x207   : > { %v1028_v42 = vadd.f32 %v3110_v45, %v1027_v40 }
 0x208   : > { %v1182_v43 = vpack.c.bf16 %v1036_v39, %v1033_v38 }
 0x209   : > { %v1181_v44 = vpack.c.bf16 %v1028_v42, %v1025_v41 }
 0x20b   : > { %v2452_v46 = vpop.f32.mrb[32].mxu1  ;;  %2526 = vmatprep.mubr.bf16.mxu0 %v1181_v44 }
 0x20c   : > { %v1040_v47 = vpop.f32.mrb[33].mxu1  ;;  %2527 = vmatmul.mubr.bf16.gmra.mrb[92].mxu0 %v1182_v43  ;;  %v1049_v49 = vadd.f32 %v2452_v46, %v3110_v45 }
 0x20d   : > { %v2453_v48 = vpop.f32.mrb[34].mxu1  ;;  %v1041_v52 = vadd.f32 %v3110_v45, %v1040_v47 }
 0x20e   : > { %v1052_v50 = vadd.f32 %v2453_v48, %v3110_v45  ;;  %v1043_v51 = vpop.f32.mrb[35].mxu1 }
 0x20f   : > { %v1044_v53 = vadd.f32 %v3110_v45, %v1043_v51 }
 0x210   : > { %v1184_v54 = vpack.c.bf16 %v1052_v50, %v1049_v49 }
 0x211   : > { %v1183_v55 = vpack.c.bf16 %v1044_v53, %v1041_v52 }
 0x213   : > { %v2456_v56 = vpop.f32.mrb[36].mxu1  ;;  %2530 = vmatprep.mubr.bf16.mxu0 %v1183_v55 }
 0x214   : > { %v1056_v57 = vpop.f32.mrb[37].mxu1  ;;  %2531 = vmatmul.mubr.bf16.gmra.mrb[96].mxu0 %v1184_v54  ;;  %v1065_v59 = vadd.f32 %v2456_v56, %v3110_v45 }
 0x215   : > { %v2457_v58 = vpop.f32.mrb[38].mxu1  ;;  %v1057_v62 = vadd.f32 %v3110_v45, %v1056_v57 }
 0x216   : > { %v1068_v60 = vadd.f32 %v2457_v58, %v3110_v45  ;;  %v1059_v61 = vpop.f32.mrb[39].mxu1 }
 0x217   : > { %v1060_v63 = vadd.f32 %v3110_v45, %v1059_v61 }
 0x218   : > { %v1186_v0 = vpack.c.bf16 %v1068_v60, %v1065_v59 }
 0x219   : > { %v1185_v1 = vpack.c.bf16 %v1060_v63, %v1057_v62 }
 0x21b   : > { %v2460_v2 = vpop.f32.mrb[40].mxu1  ;;  %2534 = vmatprep.mubr.bf16.mxu0 %v1185_v1  ;;  %v3197_v1 = vld [vmem:[%s3457_s4 + $0x1] ss:$0 sm:$0xff] }
 0x21c   : > { %v1072_v3 = vpop.f32.mrb[41].mxu1  ;;  %2535 = vmatmul.mubr.bf16.gmra.mrb[100].mxu0 %v1186_v0  ;;  %v1081_v5 = vadd.f32 %v2460_v2, %v3110_v45 }
 0x21d   : > { %v2461_v4 = vpop.f32.mrb[42].mxu1  ;;  %v1073_v8 = vadd.f32 %v3110_v45, %v1072_v3 }
 0x21e   : > { %v1084_v6 = vadd.f32 %v2461_v4, %v3110_v45  ;;  %v1075_v7 = vpop.f32.mrb[43].mxu1 }
 0x21f   : > { %v1076_v9 = vadd.f32 %v3110_v45, %v1075_v7 }
 0x220   : > { %v1188_v10 = vpack.c.bf16 %v1084_v6, %v1081_v5 }
 0x221   : > { %v1187_v11 = vpack.c.bf16 %v1076_v9, %v1073_v8 }
 0x223   : > { %v2464_v12 = vpop.f32.mrb[44].mxu1  ;;  %2538 = vmatprep.mubr.bf16.mxu0 %v1187_v11 }
 0x224   : > { %v1088_v13 = vpop.f32.mrb[45].mxu1  ;;  %2539 = vmatmul.mubr.bf16.gmra.mrb[104].mxu0 %v1188_v10  ;;  %v1097_v15 = vadd.f32 %v2464_v12, %v3110_v45 }
 0x225   : > { %v2465_v14 = vpop.f32.mrb[46].mxu1  ;;  %v1089_v18 = vadd.f32 %v3110_v45, %v1088_v13 }
 0x226   : > { %v1100_v16 = vadd.f32 %v2465_v14, %v3110_v45  ;;  %v1091_v17 = vpop.f32.mrb[47].mxu1 }
 0x227   : > { %v1092_v19 = vadd.f32 %v3110_v45, %v1091_v17 }
 0x228   : > { %v1190_v20 = vpack.c.bf16 %v1100_v16, %v1097_v15 }
 0x229   : > { %v1189_v22 = vpack.c.bf16 %v1092_v19, %v1089_v18 }
 0x22b   : > { %v2468_v23 = vpop.f32.mrb[48].mxu1  ;;  %2542 = vmatprep.mubr.bf16.mxu0 %v1189_v22 }
 0x22c   : > { %v1104_v24 = vpop.f32.mrb[49].mxu1  ;;  %2543 = vmatmul.mubr.bf16.gmra.mrb[108].mxu0 %v1190_v20  ;;  %v1113_v26 = vadd.f32 %v2468_v23, %v3110_v45 }
 0x22d   : > { %v2469_v25 = vpop.f32.mrb[50].mxu1  ;;  %v1105_v29 = vadd.f32 %v3110_v45, %v1104_v24 }
 0x22e   : > { %v1116_v27 = vadd.f32 %v2469_v25, %v3110_v45  ;;  %v1107_v28 = vpop.f32.mrb[51].mxu1 }
 0x22f   : > { %v1108_v30 = vadd.f32 %v3110_v45, %v1107_v28 }
 0x230   : > { %v1192_v31 = vpack.c.bf16 %v1116_v27, %v1113_v26 }
 0x231   : > { %v1191_v32 = vpack.c.bf16 %v1108_v30, %v1105_v29 }
 0x233   : > { %v2472_v33 = vpop.f32.mrb[52].mxu1  ;;  %2546 = vmatprep.mubr.bf16.mxu0 %v1191_v32 }
 0x234   : > { %v1120_v34 = vpop.f32.mrb[53].mxu1  ;;  %2547 = vmatmul.mubr.bf16.gmra.mrb[112].mxu0 %v1192_v31  ;;  %v1129_v36 = vadd.f32 %v2472_v33, %v3110_v45 }
 0x235   : > { %v2473_v35 = vpop.f32.mrb[54].mxu1  ;;  %v1121_v39 = vadd.f32 %v3110_v45, %v1120_v34 }
 0x236   : > { %v1132_v37 = vadd.f32 %v2473_v35, %v3110_v45  ;;  %v1123_v38 = vpop.f32.mrb[55].mxu1 }
 0x237   : > { %v1124_v40 = vadd.f32 %v3110_v45, %v1123_v38 }
 0x238   : > { %v1194_v41 = vpack.c.bf16 %v1132_v37, %v1129_v36 }
 0x239   : > { %v1193_v42 = vpack.c.bf16 %v1124_v40, %v1121_v39 }
 0x23b   : > { %v2476_v43 = vpop.f32.mrb[56].mxu1  ;;  %2550 = vmatprep.mubr.bf16.mxu0 %v1193_v42 }
 0x23c   : > { %v1136_v44 = vpop.f32.mrb[57].mxu1  ;;  %2551 = vmatmul.mubr.bf16.gmra.mrb[116].mxu0 %v1194_v41  ;;  %v1145_v47 = vadd.f32 %v2476_v43, %v3110_v45 }
 0x23d   : > { %v2477_v46 = vpop.f32.mrb[58].mxu1  ;;  %v1137_v50 = vadd.f32 %v3110_v45, %v1136_v44 }
 0x23e   : > { %v1148_v48 = vadd.f32 %v2477_v46, %v3110_v45  ;;  %v1139_v49 = vpop.f32.mrb[59].mxu1 }
 0x23f   : > { %v1140_v51 = vadd.f32 %v3110_v45, %v1139_v49 }
 0x240   : > { %v1196_v52 = vpack.c.bf16 %v1148_v48, %v1145_v47 }
 0x241   : > { %v1195_v53 = vpack.c.bf16 %v1140_v51, %v1137_v50 }
 0x243   : > { %v2480_v54 = vpop.f32.mrb[60].mxu1  ;;  %2554 = vmatprep.mubr.bf16.mxu0 %v1195_v53 }
 0x244   : > { %v1152_v55 = vpop.f32.mrb[61].mxu1  ;;  %2555 = vmatmul.mubr.bf16.gmra.mrb[120].mxu0 %v1196_v52  ;;  %v1161_v57 = vadd.f32 %v2480_v54, %v3110_v45 }
 0x245   : > { %v2481_v56 = vpop.f32.mrb[62].mxu1  ;;  %v1153_v60 = vadd.f32 %v3110_v45, %v1152_v55 }
 0x246   : > { %v1164_v58 = vadd.f32 %v2481_v56, %v3110_v45  ;;  %v1155_v59 = vpop.f32.mrb[63].mxu1 }
 0x247   : > { %v1156_v61 = vadd.f32 %v3110_v45, %v1155_v59 }
 0x248   : > { %v1198_v62 = vpack.c.bf16 %v1164_v58, %v1161_v57 }
 0x249   : > { %v1197_v63 = vpack.c.bf16 %v1156_v61, %v1153_v60 }
 0x24b   : > { %2558 = vmatprep.mubr.bf16.mxu0 %v1197_v63 }
 0x24c   : > { %2559 = vmatmul.mubr.bf16.gmra.mrb[124].mxu0 %v1198_v62 }
 0x2a7   : > { %v2500_v0 = vpop.f32.mrb[64].mxu0 }
 0x2a8   : > { %v1306_v2 = vpop.f32.mrb[65].mxu0  ;;  %v1315_v4 = vadd.f32 %v2500_v0, %v3197_v1 }
 0x2a9   : > { %v2501_v3 = vpop.f32.mrb[66].mxu0  ;;  %v1307_v7 = vadd.f32 %v3197_v1, %v1306_v2 }
 0x2aa   : > { %v1318_v5 = vadd.f32 %v2501_v3, %v3197_v1  ;;  %v1309_v6 = vpop.f32.mrb[67].mxu0 }
 0x2ab   : > { %v1310_v45 = vadd.f32 %v3197_v1, %v1309_v6 }
 0x2ac   : > { %v1562_v8 = vpack.c.bf16 %v1318_v5, %v1315_v4 }
 0x2ad   : > { %v1561_v9 = vpack.c.bf16 %v1310_v45, %v1307_v7 }
 0x2af   : > { %v2504_v10 = vpop.f32.mrb[68].mxu0  ;;  %2578 = vmatprep.mubr.bf16.mxu0 %v1561_v9 }
 0x2b0   : > { %v1322_v11 = vpop.f32.mrb[69].mxu0  ;;  %2579 = vmatmul.mubr.bf16.vlgmr.msra.gmra.mrb[128].mxu0 %v1562_v8  ;;  %v1331_v13 = vadd.f32 %v2504_v10, %v3197_v1 }
 0x2b1   : > { %v2505_v12 = vpop.f32.mrb[70].mxu0  ;;  %v1323_v16 = vadd.f32 %v3197_v1, %v1322_v11 }
 0x2b2   : > { %v1334_v14 = vadd.f32 %v2505_v12, %v3197_v1  ;;  %v1325_v15 = vpop.f32.mrb[71].mxu0 }
 0x2b3   : > { %v1326_v17 = vadd.f32 %v3197_v1, %v1325_v15 }
 0x2b4   : > { %v1564_v18 = vpack.c.bf16 %v1334_v14, %v1331_v13 }
 0x2b5   : > { %v1563_v19 = vpack.c.bf16 %v1326_v17, %v1323_v16 }
 0x2b7   : > { %v2508_v20 = vpop.f32.mrb[72].mxu0  ;;  %2582 = vmatprep.mubr.bf16.mxu1 %v1563_v19 }
 0x2b8   : > { %v1338_v21 = vpop.f32.mrb[73].mxu0  ;;  %2583 = vmatmul.mubr.bf16.vlgmr.msra.gmra.mrb[64].mxu1 %v1564_v18  ;;  %v1347_v23 = vadd.f32 %v2508_v20, %v3197_v1 }
 0x2b9   : > { %v2509_v22 = vpop.f32.mrb[74].mxu0  ;;  %v1339_v26 = vadd.f32 %v3197_v1, %v1338_v21 }
 0x2ba   : > { %v1350_v24 = vadd.f32 %v2509_v22, %v3197_v1  ;;  %v1341_v25 = vpop.f32.mrb[75].mxu0 }
 0x2bb   : > { %v1342_v27 = vadd.f32 %v3197_v1, %v1341_v25 }
 0x2bc   : > { %v1566_v28 = vpack.c.bf16 %v1350_v24, %v1347_v23 }
 0x2bd   : > { %v1565_v29 = vpack.c.bf16 %v1342_v27, %v1339_v26 }
 0x2bf   : > { %v2512_v30 = vpop.f32.mrb[76].mxu0  ;;  %2586 = vmatprep.mubr.bf16.mxu1 %v1565_v29 }
 0x2c0   : > { %v1354_v31 = vpop.f32.mrb[77].mxu0  ;;  %2587 = vmatmul.mubr.bf16.gmra.mrb[68].mxu1 %v1566_v28  ;;  %v1363_v33 = vadd.f32 %v2512_v30, %v3197_v1 }
 0x2c1   : > { %v2513_v32 = vpop.f32.mrb[78].mxu0  ;;  %v1355_v36 = vadd.f32 %v3197_v1, %v1354_v31 }
 0x2c2   : > { %v1366_v34 = vadd.f32 %v2513_v32, %v3197_v1  ;;  %v1357_v35 = vpop.f32.mrb[79].mxu0 }
 0x2c3   : > { %v1358_v37 = vadd.f32 %v3197_v1, %v1357_v35 }
 0x2c4   : > { %v1568_v38 = vpack.c.bf16 %v1366_v34, %v1363_v33 }
 0x2c5   : > { %v1567_v39 = vpack.c.bf16 %v1358_v37, %v1355_v36 }
 0x2c7   : > { %v2516_v40 = vpop.f32.mrb[80].mxu0  ;;  %2590 = vmatprep.mubr.bf16.mxu1 %v1567_v39 }
 0x2c8   : > { %v1370_v41 = vpop.f32.mrb[81].mxu0  ;;  %2591 = vmatmul.mubr.bf16.gmra.mrb[72].mxu1 %v1568_v38  ;;  %v1379_v43 = vadd.f32 %v2516_v40, %v3197_v1 }
 0x2c9   : > { %v2517_v42 = vpop.f32.mrb[82].mxu0  ;;  %v1371_v47 = vadd.f32 %v3197_v1, %v1370_v41 }
 0x2ca   : > { %v1382_v44 = vadd.f32 %v2517_v42, %v3197_v1  ;;  %v1373_v46 = vpop.f32.mrb[83].mxu0 }
 0x2cb   : > { %v1374_v48 = vadd.f32 %v3197_v1, %v1373_v46 }
 0x2cc   : > { %v1570_v49 = vpack.c.bf16 %v1382_v44, %v1379_v43 }
 0x2cd   : > { %v1569_v50 = vpack.c.bf16 %v1374_v48, %v1371_v47 }
 0x2cf   : > { %v2520_v51 = vpop.f32.mrb[84].mxu0  ;;  %2594 = vmatprep.mubr.bf16.mxu1 %v1569_v50 }
 0x2d0   : > { %v1386_v52 = vpop.f32.mrb[85].mxu0  ;;  %2595 = vmatmul.mubr.bf16.gmra.mrb[76].mxu1 %v1570_v49  ;;  %v1395_v54 = vadd.f32 %v2520_v51, %v3197_v1 }
 0x2d1   : > { %v2521_v53 = vpop.f32.mrb[86].mxu0  ;;  %v1387_v57 = vadd.f32 %v3197_v1, %v1386_v52 }
 0x2d2   : > { %v1398_v55 = vadd.f32 %v2521_v53, %v3197_v1  ;;  %v1389_v56 = vpop.f32.mrb[87].mxu0 }
 0x2d3   : > { %v1390_v58 = vadd.f32 %v3197_v1, %v1389_v56 }
 0x2d4   : > { %v1572_v59 = vpack.c.bf16 %v1398_v55, %v1395_v54 }
 0x2d5   : > { %v1571_v60 = vpack.c.bf16 %v1390_v58, %v1387_v57 }
 0x2d7   : > { %v2524_v61 = vpop.f32.mrb[88].mxu0  ;;  %2598 = vmatprep.mubr.bf16.mxu1 %v1571_v60 }
 0x2d8   : > { %v1402_v62 = vpop.f32.mrb[89].mxu0  ;;  %2599 = vmatmul.mubr.bf16.gmra.mrb[80].mxu1 %v1572_v59  ;;  %v1411_v0 = vadd.f32 %v2524_v61, %v3197_v1 }
 0x2d9   : > { %v2525_v63 = vpop.f32.mrb[90].mxu0  ;;  %v1403_v4 = vadd.f32 %v3197_v1, %v1402_v62 }
 0x2da   : > { %v1414_v2 = vadd.f32 %v2525_v63, %v3197_v1  ;;  %v1405_v3 = vpop.f32.mrb[91].mxu0 }
 0x2db   : > { %v1406_v5 = vadd.f32 %v3197_v1, %v1405_v3 }
 0x2dc   : > { %v1574_v6 = vpack.c.bf16 %v1414_v2, %v1411_v0 }
 0x2dd   : > { %v1573_v7 = vpack.c.bf16 %v1406_v5, %v1403_v4 }
 0x2df   : > { %v2528_v45 = vpop.f32.mrb[92].mxu0  ;;  %2602 = vmatprep.mubr.bf16.mxu1 %v1573_v7 }
 0x2e0   : > { %v1418_v8 = vpop.f32.mrb[93].mxu0  ;;  %2603 = vmatmul.mubr.bf16.gmra.mrb[84].mxu1 %v1574_v6  ;;  %v1427_v10 = vadd.f32 %v2528_v45, %v3197_v1 }
 0x2e1   : > { %v2529_v9 = vpop.f32.mrb[94].mxu0  ;;  %v1419_v13 = vadd.f32 %v3197_v1, %v1418_v8 }
 0x2e2   : > { %v1430_v11 = vadd.f32 %v2529_v9, %v3197_v1  ;;  %v1421_v12 = vpop.f32.mrb[95].mxu0 }
 0x2e3   : > { %v1422_v14 = vadd.f32 %v3197_v1, %v1421_v12 }
 0x2e4   : > { %v1576_v15 = vpack.c.bf16 %v1430_v11, %v1427_v10 }
 0x2e5   : > { %v1575_v16 = vpack.c.bf16 %v1422_v14, %v1419_v13 }
 0x2e7   : > { %v2532_v17 = vpop.f32.mrb[96].mxu0  ;;  %2606 = vmatprep.mubr.bf16.mxu1 %v1575_v16 }
 0x2e8   : > { %v1434_v18 = vpop.f32.mrb[97].mxu0  ;;  %2607 = vmatmul.mubr.bf16.gmra.mrb[88].mxu1 %v1576_v15  ;;  %v1443_v20 = vadd.f32 %v2532_v17, %v3197_v1 }
 0x2e9   : > { %v2533_v19 = vpop.f32.mrb[98].mxu0  ;;  %v1435_v23 = vadd.f32 %v3197_v1, %v1434_v18 }
 0x2ea   : > { %v1446_v21 = vadd.f32 %v2533_v19, %v3197_v1  ;;  %v1437_v22 = vpop.f32.mrb[99].mxu0 }
 0x2eb   : > { %v1438_v24 = vadd.f32 %v3197_v1, %v1437_v22 }
 0x2ec   : > { %v1578_v25 = vpack.c.bf16 %v1446_v21, %v1443_v20 }
 0x2ed   : > { %v1577_v26 = vpack.c.bf16 %v1438_v24, %v1435_v23 }
 0x2ef   : > { %v2536_v27 = vpop.f32.mrb[100].mxu0  ;;  %2610 = vmatprep.mubr.bf16.mxu1 %v1577_v26 }
 0x2f0   : > { %v1450_v28 = vpop.f32.mrb[101].mxu0  ;;  %2611 = vmatmul.mubr.bf16.gmra.mrb[92].mxu1 %v1578_v25  ;;  %v1459_v30 = vadd.f32 %v2536_v27, %v3197_v1 }
 0x2f1   : > { %v2537_v29 = vpop.f32.mrb[102].mxu0  ;;  %v1451_v33 = vadd.f32 %v3197_v1, %v1450_v28 }
 0x2f2   : > { %v1462_v31 = vadd.f32 %v2537_v29, %v3197_v1  ;;  %v1453_v32 = vpop.f32.mrb[103].mxu0 }
 0x2f3   : > { %v1454_v34 = vadd.f32 %v3197_v1, %v1453_v32 }
 0x2f4   : > { %v1580_v35 = vpack.c.bf16 %v1462_v31, %v1459_v30 }
 0x2f5   : > { %v1579_v36 = vpack.c.bf16 %v1454_v34, %v1451_v33  ;;  %v3269_v34 = vld [vmem:[%s3459_s6] ss:$0 sm:$0xff] }
 0x2f7   : > { %v2540_v37 = vpop.f32.mrb[104].mxu0  ;;  %2614 = vmatprep.mubr.bf16.mxu1 %v1579_v36 }
 0x2f8   : > { %v1466_v38 = vpop.f32.mrb[105].mxu0  ;;  %2615 = vmatmul.mubr.bf16.gmra.mrb[96].mxu1 %v1580_v35  ;;  %v1475_v40 = vadd.f32 %v2540_v37, %v3197_v1 }
 0x2f9   : > { %v2541_v39 = vpop.f32.mrb[106].mxu0  ;;  %v1467_v43 = vadd.f32 %v3197_v1, %v1466_v38 }
 0x2fa   : > { %v1478_v41 = vadd.f32 %v2541_v39, %v3197_v1  ;;  %v1469_v42 = vpop.f32.mrb[107].mxu0 }
 0x2fb   : > { %v1470_v44 = vadd.f32 %v3197_v1, %v1469_v42 }
 0x2fc   : > { %v1582_v46 = vpack.c.bf16 %v1478_v41, %v1475_v40 }
 0x2fd   : > { %v1581_v47 = vpack.c.bf16 %v1470_v44, %v1467_v43 }
 0x2ff   : > { %v2544_v48 = vpop.f32.mrb[108].mxu0  ;;  %2618 = vmatprep.mubr.bf16.mxu1 %v1581_v47 }
 0x300   : > { %v1482_v49 = vpop.f32.mrb[109].mxu0  ;;  %2619 = vmatmul.mubr.bf16.gmra.mrb[100].mxu1 %v1582_v46  ;;  %v1491_v51 = vadd.f32 %v2544_v48, %v3197_v1 }
 0x301   : > { %v2545_v50 = vpop.f32.mrb[110].mxu0  ;;  %v1483_v54 = vadd.f32 %v3197_v1, %v1482_v49 }
 0x302   : > { %v1494_v52 = vadd.f32 %v2545_v50, %v3197_v1  ;;  %v1485_v53 = vpop.f32.mrb[111].mxu0 }
 0x303   : > { %v1486_v55 = vadd.f32 %v3197_v1, %v1485_v53 }
 0x304   : > { %v1584_v56 = vpack.c.bf16 %v1494_v52, %v1491_v51 }
 0x305   : > { %v1583_v57 = vpack.c.bf16 %v1486_v55, %v1483_v54 }
 0x307   : > { %v2548_v58 = vpop.f32.mrb[112].mxu0  ;;  %2622 = vmatprep.mubr.bf16.mxu1 %v1583_v57 }
 0x308   : > { %v1498_v59 = vpop.f32.mrb[113].mxu0  ;;  %2623 = vmatmul.mubr.bf16.gmra.mrb[104].mxu1 %v1584_v56  ;;  %v1507_v61 = vadd.f32 %v2548_v58, %v3197_v1 }
 0x309   : > { %v2549_v60 = vpop.f32.mrb[114].mxu0  ;;  %v1499_v0 = vadd.f32 %v3197_v1, %v1498_v59 }
 0x30a   : > { %v1510_v62 = vadd.f32 %v2549_v60, %v3197_v1  ;;  %v1501_v63 = vpop.f32.mrb[115].mxu0 }
 0x30b   : > { %v1502_v2 = vadd.f32 %v3197_v1, %v1501_v63 }
 0x30c   : > { %v1586_v3 = vpack.c.bf16 %v1510_v62, %v1507_v61 }
 0x30d   : > { %v1585_v4 = vpack.c.bf16 %v1502_v2, %v1499_v0 }
 0x30f   : > { %v2552_v5 = vpop.f32.mrb[116].mxu0  ;;  %2626 = vmatprep.mubr.bf16.mxu1 %v1585_v4 }
 0x310   : > { %v1514_v6 = vpop.f32.mrb[117].mxu0  ;;  %2627 = vmatmul.mubr.bf16.gmra.mrb[108].mxu1 %v1586_v3  ;;  %v1523_v45 = vadd.f32 %v2552_v5, %v3197_v1 }
 0x311   : > { %v2553_v7 = vpop.f32.mrb[118].mxu0  ;;  %v1515_v10 = vadd.f32 %v3197_v1, %v1514_v6 }
 0x312   : > { %v1526_v8 = vadd.f32 %v2553_v7, %v3197_v1  ;;  %v1517_v9 = vpop.f32.mrb[119].mxu0 }
 0x313   : > { %v1518_v11 = vadd.f32 %v3197_v1, %v1517_v9 }
 0x314   : > { %v1588_v12 = vpack.c.bf16 %v1526_v8, %v1523_v45 }
 0x315   : > { %v1587_v13 = vpack.c.bf16 %v1518_v11, %v1515_v10 }
 0x317   : > { %v2556_v14 = vpop.f32.mrb[120].mxu0  ;;  %2630 = vmatprep.mubr.bf16.mxu1 %v1587_v13 }
 0x318   : > { %v1530_v15 = vpop.f32.mrb[121].mxu0  ;;  %2631 = vmatmul.mubr.bf16.gmra.mrb[112].mxu1 %v1588_v12  ;;  %v1539_v17 = vadd.f32 %v2556_v14, %v3197_v1 }
 0x319   : > { %v2557_v16 = vpop.f32.mrb[122].mxu0  ;;  %v1531_v20 = vadd.f32 %v3197_v1, %v1530_v15 }
 0x31a   : > { %v1542_v18 = vadd.f32 %v2557_v16, %v3197_v1  ;;  %v1533_v19 = vpop.f32.mrb[123].mxu0 }
 0x31b   : > { %v1534_v21 = vadd.f32 %v3197_v1, %v1533_v19 }
 0x31c   : > { %v1590_v22 = vpack.c.bf16 %v1542_v18, %v1539_v17 }
 0x31d   : > { %v1589_v23 = vpack.c.bf16 %v1534_v21, %v1531_v20 }
 0x31f   : > { %v2560_v24 = vpop.f32.mrb[124].mxu0  ;;  %2634 = vmatprep.mubr.bf16.mxu1 %v1589_v23 }
 0x320   : > { %v1546_v25 = vpop.f32.mrb[125].mxu0  ;;  %2635 = vmatmul.mubr.bf16.gmra.mrb[116].mxu1 %v1590_v22  ;;  %v1555_v27 = vadd.f32 %v2560_v24, %v3197_v1 }
 0x321   : > { %v2561_v26 = vpop.f32.mrb[126].mxu0  ;;  %v1547_v30 = vadd.f32 %v3197_v1, %v1546_v25 }
 0x322   : > { %v1558_v28 = vadd.f32 %v2561_v26, %v3197_v1  ;;  %v1549_v29 = vpop.f32.mrb[127].mxu0 }
 0x323   : > { %v1550_v31 = vadd.f32 %v3197_v1, %v1549_v29 }
 0x324   : > { %v1592_v32 = vpack.c.bf16 %v1558_v28, %v1555_v27 }
 0x325   : > { %v1591_v33 = vpack.c.bf16 %v1550_v31, %v1547_v30 }
 0x327   : > { %2638 = vmatprep.mubr.bf16.mxu1 %v1591_v33 }
 0x328   : > { %2639 = vmatmul.mubr.bf16.gmra.mrb[120].mxu1 %v1592_v32 }
 0x383   : > { %v2580_v35 = vpop.f32.mrb[128].mxu0 }
 0x384   : > { %v1707_v36 = vadd.f32 %v2580_v35, %v3269_v34  ;;  %v1698_v37 = vpop.f32.mrb[129].mxu0 }
 0x385   : > { %v1699_v38 = vadd.f32 %v3269_v34, %v1698_v37  ;;  %v2581_v39 = vpop.f32.mrb[130].mxu0 }
 0x386   : > { %1955 = vst [vmem:[%s3273_s22 + $0x10] sm:$0xff] %v1707_v36  ;;  %v1710_v1 = vadd.f32 %v2581_v39, %v3269_v34  ;;  %v1701_v40 = vpop.f32.mrb[131].mxu0 }
 0x387   : > { %1953 = vst [vmem:[%s3273_s22] sm:$0xff] %v1699_v38  ;;  %v1702_v41 = vadd.f32 %v3269_v34, %v1701_v40 }
 0x388   : > { %1956 = vst [vmem:[%s3273_s22 + $0x18] sm:$0xff] %v1710_v1 }
 0x389   : > { %1954 = vst [vmem:[%s3273_s22 + $0x8] sm:$0xff] %v1702_v41 }
 0x38b   : > { %v2584_v42 = vpop.f32.mrb[64].mxu1 }
 0x38c   : > { %v1723_v43 = vadd.f32 %v2584_v42, %v3269_v34  ;;  %v1714_v44 = vpop.f32.mrb[65].mxu1 }
 0x38d   : > { %v1715_v46 = vadd.f32 %v3269_v34, %v1714_v44  ;;  %v2585_v47 = vpop.f32.mrb[66].mxu1 }
 0x38e   : > { %1959 = vst [vmem:[%s3273_s22 + $0x30] sm:$0xff] %v1723_v43  ;;  %v1726_v48 = vadd.f32 %v2585_v47, %v3269_v34  ;;  %v1717_v49 = vpop.f32.mrb[67].mxu1 }
 0x38f   : > { %1957 = vst [vmem:[%s3273_s22 + $0x20] sm:$0xff] %v1715_v46  ;;  %v1718_v50 = vadd.f32 %v3269_v34, %v1717_v49 }
 0x390   : > { %1960 = vst [vmem:[%s3273_s22 + $0x38] sm:$0xff] %v1726_v48 }
 0x391   : > { %1958 = vst [vmem:[%s3273_s22 + $0x28] sm:$0xff] %v1718_v50 }
 0x393   : > { %v2588_v51 = vpop.f32.mrb[68].mxu1 }
 0x394   : > { %v1739_v52 = vadd.f32 %v2588_v51, %v3269_v34  ;;  %v1730_v53 = vpop.f32.mrb[69].mxu1 }
 0x395   : > { %v1731_v54 = vadd.f32 %v3269_v34, %v1730_v53  ;;  %v2589_v55 = vpop.f32.mrb[70].mxu1 }
 0x396   : > { %1963 = vst [vmem:[%s3273_s22 + $0x50] sm:$0xff] %v1739_v52  ;;  %v1742_v56 = vadd.f32 %v2589_v55, %v3269_v34  ;;  %v1733_v57 = vpop.f32.mrb[71].mxu1 }
 0x397   : > { %1961 = vst [vmem:[%s3273_s22 + $0x40] sm:$0xff] %v1731_v54  ;;  %v1734_v58 = vadd.f32 %v3269_v34, %v1733_v57 }
 0x398   : > { %1964 = vst [vmem:[%s3273_s22 + $0x58] sm:$0xff] %v1742_v56 }
 0x399   : > { %1962 = vst [vmem:[%s3273_s22 + $0x48] sm:$0xff] %v1734_v58 }
 0x39b   : > { %v2592_v59 = vpop.f32.mrb[72].mxu1 }
 0x39c   : > { %v1755_v60 = vadd.f32 %v2592_v59, %v3269_v34  ;;  %v1746_v61 = vpop.f32.mrb[73].mxu1 }
 0x39d   : > { %v1747_v62 = vadd.f32 %v3269_v34, %v1746_v61  ;;  %v2593_v63 = vpop.f32.mrb[74].mxu1 }
 0x39e   : > { %1967 = vst [vmem:[%s3273_s22 + $0x70] sm:$0xff] %v1755_v60  ;;  %v1758_v0 = vadd.f32 %v2593_v63, %v3269_v34  ;;  %v1749_v2 = vpop.f32.mrb[75].mxu1 }
 0x39f   : > { %1965 = vst [vmem:[%s3273_s22 + $0x60] sm:$0xff] %v1747_v62  ;;  %v1750_v3 = vadd.f32 %v3269_v34, %v1749_v2 }
 0x3a0   : > { %1968 = vst [vmem:[%s3273_s22 + $0x78] sm:$0xff] %v1758_v0 }
 0x3a1   : > { %1966 = vst [vmem:[%s3273_s22 + $0x68] sm:$0xff] %v1750_v3 }
 0x3a3   : > { %v2596_v4 = vpop.f32.mrb[76].mxu1 }
 0x3a4   : > { %v1771_v5 = vadd.f32 %v2596_v4, %v3269_v34  ;;  %v1762_v6 = vpop.f32.mrb[77].mxu1 }
 0x3a5   : > { %v1763_v7 = vadd.f32 %v3269_v34, %v1762_v6  ;;  %v2597_v45 = vpop.f32.mrb[78].mxu1 }
 0x3a6   : > { %1971 = vst [vmem:[%s3273_s22 + $0x90] sm:$0xff] %v1771_v5  ;;  %v1774_v8 = vadd.f32 %v2597_v45, %v3269_v34  ;;  %v1765_v9 = vpop.f32.mrb[79].mxu1 }
 0x3a7   : > { %1969 = vst [vmem:[%s3273_s22 + $0x80] sm:$0xff] %v1763_v7  ;;  %v1766_v10 = vadd.f32 %v3269_v34, %v1765_v9 }
 0x3a8   : > { %1972 = vst [vmem:[%s3273_s22 + $0x98] sm:$0xff] %v1774_v8 }
 0x3a9   : > { %1970 = vst [vmem:[%s3273_s22 + $0x88] sm:$0xff] %v1766_v10 }
 0x3ab   : > { %v2600_v11 = vpop.f32.mrb[80].mxu1 }
 0x3ac   : > { %v1787_v12 = vadd.f32 %v2600_v11, %v3269_v34  ;;  %v1778_v13 = vpop.f32.mrb[81].mxu1 }
 0x3ad   : > { %v1779_v14 = vadd.f32 %v3269_v34, %v1778_v13  ;;  %v2601_v15 = vpop.f32.mrb[82].mxu1 }
 0x3ae   : > { %1975 = vst [vmem:[%s3273_s22 + $0xb0] sm:$0xff] %v1787_v12  ;;  %v1790_v16 = vadd.f32 %v2601_v15, %v3269_v34  ;;  %v1781_v17 = vpop.f32.mrb[83].mxu1 }
 0x3af   : > { %1973 = vst [vmem:[%s3273_s22 + $0xa0] sm:$0xff] %v1779_v14  ;;  %v1782_v18 = vadd.f32 %v3269_v34, %v1781_v17 }
 0x3b0   : > { %1976 = vst [vmem:[%s3273_s22 + $0xb8] sm:$0xff] %v1790_v16 }
 0x3b1   : > { %1974 = vst [vmem:[%s3273_s22 + $0xa8] sm:$0xff] %v1782_v18 }
 0x3b3   : > { %v2604_v19 = vpop.f32.mrb[84].mxu1 }
 0x3b4   : > { %v1803_v20 = vadd.f32 %v2604_v19, %v3269_v34  ;;  %v1794_v21 = vpop.f32.mrb[85].mxu1 }
 0x3b5   : > { %v1795_v22 = vadd.f32 %v3269_v34, %v1794_v21  ;;  %v2605_v23 = vpop.f32.mrb[86].mxu1 }
 0x3b6   : > { %1979 = vst [vmem:[%s3273_s22 + $0xd0] sm:$0xff] %v1803_v20  ;;  %v1806_v24 = vadd.f32 %v2605_v23, %v3269_v34  ;;  %v1797_v25 = vpop.f32.mrb[87].mxu1 }
 0x3b7   : > { %1977 = vst [vmem:[%s3273_s22 + $0xc0] sm:$0xff] %v1795_v22  ;;  %v1798_v26 = vadd.f32 %v3269_v34, %v1797_v25 }
 0x3b8   : > { %1980 = vst [vmem:[%s3273_s22 + $0xd8] sm:$0xff] %v1806_v24 }
 0x3b9   : > { %1978 = vst [vmem:[%s3273_s22 + $0xc8] sm:$0xff] %v1798_v26 }
 0x3bb   : > { %v2608_v27 = vpop.f32.mrb[88].mxu1 }
 0x3bc   : > { %v1819_v28 = vadd.f32 %v2608_v27, %v3269_v34  ;;  %v1810_v29 = vpop.f32.mrb[89].mxu1 }
 0x3bd   : > { %v1811_v30 = vadd.f32 %v3269_v34, %v1810_v29  ;;  %v2609_v31 = vpop.f32.mrb[90].mxu1 }
 0x3be   : > { %1983 = vst [vmem:[%s3273_s22 + $0xf0] sm:$0xff] %v1819_v28  ;;  %v1822_v32 = vadd.f32 %v2609_v31, %v3269_v34  ;;  %v1813_v33 = vpop.f32.mrb[91].mxu1 }
 0x3bf   : > { %1981 = vst [vmem:[%s3273_s22 + $0xe0] sm:$0xff] %v1811_v30  ;;  %v1814_v35 = vadd.f32 %v3269_v34, %v1813_v33 }
 0x3c0   : > { %1984 = vst [vmem:[%s3273_s22 + $0xf8] sm:$0xff] %v1822_v32 }
 0x3c1   : > { %1982 = vst [vmem:[%s3273_s22 + $0xe8] sm:$0xff] %v1814_v35 }
 0x3c3   : > { %v2612_v36 = vpop.f32.mrb[92].mxu1 }
 0x3c4   : > { %v1835_v37 = vadd.f32 %v2612_v36, %v3269_v34  ;;  %v1826_v38 = vpop.f32.mrb[93].mxu1 }
 0x3c5   : > { %v1827_v39 = vadd.f32 %v3269_v34, %v1826_v38  ;;  %v2613_v1 = vpop.f32.mrb[94].mxu1 }
 0x3c6   : > { %1987 = vst [vmem:[%s3273_s22 + $0x110] sm:$0xff] %v1835_v37  ;;  %v1838_v40 = vadd.f32 %v2613_v1, %v3269_v34  ;;  %v1829_v41 = vpop.f32.mrb[95].mxu1 }
 0x3c7   : > { %1985 = vst [vmem:[%s3273_s22 + $0x100] sm:$0xff] %v1827_v39  ;;  %v1830_v42 = vadd.f32 %v3269_v34, %v1829_v41 }
 0x3c8   : > { %1988 = vst [vmem:[%s3273_s22 + $0x118] sm:$0xff] %v1838_v40 }
 0x3c9   : > { %1986 = vst [vmem:[%s3273_s22 + $0x108] sm:$0xff] %v1830_v42 }
 0x3cb   : > { %v2616_v43 = vpop.f32.mrb[96].mxu1 }
 0x3cc   : > { %v1851_v44 = vadd.f32 %v2616_v43, %v3269_v34  ;;  %v1842_v46 = vpop.f32.mrb[97].mxu1 }
 0x3cd   : > { %v1843_v47 = vadd.f32 %v3269_v34, %v1842_v46  ;;  %v2617_v48 = vpop.f32.mrb[98].mxu1 }
 0x3ce   : > { %1991 = vst [vmem:[%s3273_s22 + $0x130] sm:$0xff] %v1851_v44  ;;  %v1854_v49 = vadd.f32 %v2617_v48, %v3269_v34  ;;  %v1845_v50 = vpop.f32.mrb[99].mxu1 }
 0x3cf   : > { %1989 = vst [vmem:[%s3273_s22 + $0x120] sm:$0xff] %v1843_v47  ;;  %v1846_v51 = vadd.f32 %v3269_v34, %v1845_v50 }
 0x3d0   : > { %1992 = vst [vmem:[%s3273_s22 + $0x138] sm:$0xff] %v1854_v49 }
 0x3d1   : > { %1990 = vst [vmem:[%s3273_s22 + $0x128] sm:$0xff] %v1846_v51 }
 0x3d3   : > { %v2620_v52 = vpop.f32.mrb[100].mxu1 }
 0x3d4   : > { %v1867_v53 = vadd.f32 %v2620_v52, %v3269_v34  ;;  %v1858_v54 = vpop.f32.mrb[101].mxu1 }
 0x3d5   : > { %v1859_v55 = vadd.f32 %v3269_v34, %v1858_v54  ;;  %v2621_v56 = vpop.f32.mrb[102].mxu1 }
 0x3d6   : > { %1995 = vst [vmem:[%s3273_s22 + $0x150] sm:$0xff] %v1867_v53  ;;  %v1870_v57 = vadd.f32 %v2621_v56, %v3269_v34  ;;  %v1861_v58 = vpop.f32.mrb[103].mxu1 }
 0x3d7   : > { %1993 = vst [vmem:[%s3273_s22 + $0x140] sm:$0xff] %v1859_v55  ;;  %v1862_v59 = vadd.f32 %v3269_v34, %v1861_v58 }
 0x3d8   : > { %1996 = vst [vmem:[%s3273_s22 + $0x158] sm:$0xff] %v1870_v57 }
 0x3d9   : > { %1994 = vst [vmem:[%s3273_s22 + $0x148] sm:$0xff] %v1862_v59 }
 0x3db   : > { %v2624_v60 = vpop.f32.mrb[104].mxu1 }
 0x3dc   : > { %v1883_v61 = vadd.f32 %v2624_v60, %v3269_v34  ;;  %v1874_v62 = vpop.f32.mrb[105].mxu1 }
 0x3dd   : > { %v1875_v63 = vadd.f32 %v3269_v34, %v1874_v62  ;;  %v2625_v0 = vpop.f32.mrb[106].mxu1 }
 0x3de   : > { %1999 = vst [vmem:[%s3273_s22 + $0x170] sm:$0xff] %v1883_v61  ;;  %v1886_v2 = vadd.f32 %v2625_v0, %v3269_v34  ;;  %v1877_v3 = vpop.f32.mrb[107].mxu1 }
 0x3df   : > { %1997 = vst [vmem:[%s3273_s22 + $0x160] sm:$0xff] %v1875_v63  ;;  %v1878_v4 = vadd.f32 %v3269_v34, %v1877_v3 }
 0x3e0   : > { %2000 = vst [vmem:[%s3273_s22 + $0x178] sm:$0xff] %v1886_v2 }
 0x3e1   : > { %1998 = vst [vmem:[%s3273_s22 + $0x168] sm:$0xff] %v1878_v4 }
 0x3e3   : > { %v2628_v5 = vpop.f32.mrb[108].mxu1 }
 0x3e4   : > { %v1899_v6 = vadd.f32 %v2628_v5, %v3269_v34  ;;  %v1890_v7 = vpop.f32.mrb[109].mxu1 }
 0x3e5   : > { %v1891_v45 = vadd.f32 %v3269_v34, %v1890_v7  ;;  %v2629_v8 = vpop.f32.mrb[110].mxu1 }
 0x3e6   : > { %2003 = vst [vmem:[%s3273_s22 + $0x190] sm:$0xff] %v1899_v6  ;;  %v1902_v9 = vadd.f32 %v2629_v8, %v3269_v34  ;;  %v1893_v10 = vpop.f32.mrb[111].mxu1 }
 0x3e7   : > { %2001 = vst [vmem:[%s3273_s22 + $0x180] sm:$0xff] %v1891_v45  ;;  %v1894_v11 = vadd.f32 %v3269_v34, %v1893_v10 }
 0x3e8   : > { %2004 = vst [vmem:[%s3273_s22 + $0x198] sm:$0xff] %v1902_v9 }
 0x3e9   : > { %2002 = vst [vmem:[%s3273_s22 + $0x188] sm:$0xff] %v1894_v11 }
 0x3eb   : > { %v2632_v12 = vpop.f32.mrb[112].mxu1 }
 0x3ec   : > { %v1915_v13 = vadd.f32 %v2632_v12, %v3269_v34  ;;  %v1906_v14 = vpop.f32.mrb[113].mxu1 }
 0x3ed   : > { %v1907_v15 = vadd.f32 %v3269_v34, %v1906_v14  ;;  %v2633_v16 = vpop.f32.mrb[114].mxu1 }
 0x3ee   : > { %2007 = vst [vmem:[%s3273_s22 + $0x1b0] sm:$0xff] %v1915_v13  ;;  %v1918_v17 = vadd.f32 %v2633_v16, %v3269_v34  ;;  %v1909_v18 = vpop.f32.mrb[115].mxu1 }
 0x3ef   : > { %2005 = vst [vmem:[%s3273_s22 + $0x1a0] sm:$0xff] %v1907_v15  ;;  %v1910_v19 = vadd.f32 %v3269_v34, %v1909_v18 }
 0x3f0   : > { %2008 = vst [vmem:[%s3273_s22 + $0x1b8] sm:$0xff] %v1918_v17 }
 0x3f1   : > { %2006 = vst [vmem:[%s3273_s22 + $0x1a8] sm:$0xff] %v1910_v19 }
 0x3f3   : > { %v2636_v20 = vpop.f32.mrb[116].mxu1 }
 0x3f4   : > { %v1931_v21 = vadd.f32 %v2636_v20, %v3269_v34  ;;  %v1922_v22 = vpop.f32.mrb[117].mxu1 }
 0x3f5   : > { %v1923_v23 = vadd.f32 %v3269_v34, %v1922_v22  ;;  %v2637_v24 = vpop.f32.mrb[118].mxu1 }
 0x3f6   : > { %2011 = vst [vmem:[%s3273_s22 + $0x1d0] sm:$0xff] %v1931_v21  ;;  %v1934_v25 = vadd.f32 %v2637_v24, %v3269_v34  ;;  %v1925_v26 = vpop.f32.mrb[119].mxu1 }
 0x3f7   : > { %2009 = vst [vmem:[%s3273_s22 + $0x1c0] sm:$0xff] %v1923_v23  ;;  %v1926_v27 = vadd.f32 %v3269_v34, %v1925_v26 }
 0x3f8   : > { %2012 = vst [vmem:[%s3273_s22 + $0x1d8] sm:$0xff] %v1934_v25 }
 0x3f9   : > { %2010 = vst [vmem:[%s3273_s22 + $0x1c8] sm:$0xff] %v1926_v27 }
 0x3fb   : > { %v2640_v28 = vpop.f32.mrb[120].mxu1 }
 0x3fc   : > { %v1947_v29 = vadd.f32 %v2640_v28, %v3269_v34  ;;  %v1938_v30 = vpop.f32.mrb[121].mxu1 }
 0x3fd   : > { %v1939_v31 = vadd.f32 %v3269_v34, %v1938_v30  ;;  %v2641_v32 = vpop.f32.mrb[122].mxu1 }
 0x3fe   : > { %2015 = vst [vmem:[%s3273_s22 + $0x1f0] sm:$0xff] %v1947_v29  ;;  %v1950_v33 = vadd.f32 %v2641_v32, %v3269_v34  ;;  %v1941_v35 = vpop.f32.mrb[123].mxu1 }
 0x3ff   : > { %2013 = vst [vmem:[%s3273_s22 + $0x1e0] sm:$0xff] %v1939_v31  ;;  %v1942_v36 = vadd.f32 %v3269_v34, %v1941_v35 }
 0x400   : > { %2016 = vst [vmem:[%s3273_s22 + $0x1f8] sm:$0xff] %v1950_v33 }
 0x401   : > { %2014 = vst [vmem:[%s3273_s22 + $0x1e8] sm:$0xff] %v1942_v36 }
 0x402   : > { %2737 = shalt.err (!%p2734_p3)
}
 0x403   : > { %s2738_s18 = scalar_lea.hbm %s3402_s14, 8192  ;;  %s2742_s21 = scalar_lea.hbm %s3460_s7, 32768 }
 0x404   : > { %p2739_p4 = scmp.ne.s32.totalorder %s3402_s14, %s2738_s18  ;;  %p2743_p9 = scmp.lt.u32.totalorder %s3402_s14, %s3460_s7 }
 0x405   : > { %p2744_p10 = scmp.lt.u32.totalorder %s2742_s21, %s2738_s18  ;;  %p2746_p12 = scmp.lt.u32.totalorder %s2738_s18, %s3402_s14 }
 0x406   : > { %p2740_p7 = pnand %p2739_p4, %p2869_p5 }
 0x407   : > { %p2745_p11 = por %p2744_p10, %p2743_p9 }
 0x408   : > { %p2741_p8 = pneg %p2740_p7 }
 0x409   : > { %p2747_p13 = por %p2746_p12, %p2745_p11 }
 0x40b   : > { %p2748_p0 = pnand %p2747_p13, %p2741_p8 }
 0x40d   : > { %2751 = shalt.err (!%p2748_p0)
}
 0x40e   : > { %s2789_s9 = smov 128   ;;  %s2790_s13 = smov 8  }
 0x40f   : > { %2659 = dma.vmem_to_hbm [thread:$0]  (%p2869_p5), %s3404_s8, 8192, %s3402_s14, %s3412_s28, %s2789_s9, %s2789_s9, %s2790_s13  }
 0x410 PF: > { %p2665_p1 = scmp.ge.s32.totalorder %s2786_s27, 2  ;;  %s2046_s23 = sand.u32 1, %s2774_s24  }
 0x411   : > { %s2047_s15 = scalar_lea.sflag [#allocation3], %s2046_s23 }
 0x412   : > { %p2662_p2 = pnand %p2665_p1, %p2873_p6 }
 0x414   : > { %2769 = dma.done.wait (!%p2662_p2), %s2047_s15, 8192  }
 0x415   : > { %2771 = vsyncadd (!%p2662_p2), %s2047_s15, 4294959104  ;;  %p17_p3 = scmp.ge.s32.totalorder %s2856_s30, 6   ;;  %s3463_s24 = smov %s2778_s25 }
 0x416   : > { %s3464_s25 = smov %s2782_s26  ;;  %s3465_s26 = smov %s2867_s10 }
 0x417   : > { %s3466_s27 = smov %s2856_s30  ;;  %19 = sbr.rel (!%p17_p3) target bundleno = 3 (0x3), region = 85 }
 0x41e   :  { %2052 = vsyncpa [#allocation3], 1 }
 0x41f   :  { %2054 = vsyncpa [#allocation3 + $0x1], 1 }

// kernel: tpu_custom_call.1
= control target key start
LH: loop header
LB: loop body
LE: loop exit
PB: predicated region body
PF: predicated region fallthrough
CT: control target
= control target key end

     0   :  { %12 = vsyncpa [#allocation3], 0  ;;  %s3453_s0 = inlined_call_operand.vmem [shape: f32[2048,4], index: 0, kind: input, shape index: {}]   ;;  %s3454_s1 = inlined_call_operand.vmem [shape: bf16[4,128], index: 1, kind: input, shape index: {}]   ;;  %s3455_s2 = inlined_call_operand.vmem [shape: f32[1,128], index: 2, kind: input, shape index: {}]   ;;  %s3456_s3 = inlined_call_operand.vmem [shape: bf16[2,128,128], index: 3, kind: input, shape index: {}]   ;;  %s3457_s4 = inlined_call_operand.vmem [shape: f32[2,1,128], index: 4, kind: input, shape index: {}]   ;;  %s3458_s5 = inlined_call_operand.vmem [shape: bf16[128,128], index: 5, kind: input, shape index: {}]   ;;  %s3459_s6 = inlined_call_operand.vmem [shape: f32[1,128], index: 6, kind: input, shape index: {}]   ;;  %s3460_s7 = inlined_call_operand.hbm [shape: f32[2048,128], index: 7, kind: output, shape index: {}]  }
   0x1   :  { %14 = vsyncpa [#allocation3 + $0x1], 0  ;;  %s2831_s24 = smov 0   ;;  %s2833_s25 = smov 0  }
   0x2   :  { %s2835_s26 = smov 0   ;;  %s2837_s27 = smov 0  }
   0x3 LB: > { %s2852_s28 = sadd.s32 4294967295, %s2786_s27   ;;  %s2093_s29 = sadd.s32 4294967294, %s2786_s27   ;;  %s2786_s27 = sphi %s2837_s27, %s3466_s27   ;;  %s2782_s26 = sphi %s2835_s26, %s3465_s26   ;;  %s2778_s25 = sphi %s2833_s25, %s3464_s25   ;;  %s2774_s24 = sphi %s2831_s24, %s3463_s24  }
   0x4   : > { %s2856_s30 = sadd.s32 1, %s2786_s27   ;;  %s179_s8 = sadd.s32 1, %s2782_s26 }
   0x5   : > { %s176_s9 = ssub.s32 %s2786_s27, %s2856_s30  ;;  %p189_p0 = scmp.ne.s32.totalorder %s2782_s26, %s2778_s25 }
   0x6   : > { %p177_p1 = scmp.eq.s32.totalorder %s176_s9, 0  ;;  %p190_p2 = scmp.eq.s32.totalorder %s2852_s28, 3 }
   0x7   : > { %p195_p3 = scmp.ne.s32.totalorder %s2778_s25, %s2774_s24  ;;  %p196_p4 = scmp.eq.s32.totalorder %s2093_s29, 3 }
   0x8   : > { %s2867_s10 = scalar_select %p177_p1, %s2782_s26, %s179_s8  }
   0x9   : > { %p2869_p5 = por %p190_p2, %p189_p0  ;;  %p2873_p6 = por %p196_p4, %p195_p3 }
   0xa   : > { %p2096_p7 = scmp.ge.s32.totalorder %s2786_s27, 1  ;;  %p241_p8 = scmp.lt.s32.totalorder %s2786_s27, 5 }
   0xc   : > { %p242_p9 = pnand %p2096_p7, %p241_p8 }
   0xd   : > { %v377_v0 = vld [vmem:[%s3454_s1] sm:$0x3] (!%p242_p9)  ;;  %vm482_vm0 = vcmask (!%p242_p9), 1041408   ;;  %s2098_s15 = sshll.u32 (!%p242_p9), %s2852_s28, 6  ;;  %v2701_v3 = vld [vmem:[%s3456_s3 + $0x8] sm:$0xff] (!%p242_p9)   ;;  %v2702_v4 = vld [vmem:[%s3456_s3 + $0x10] sm:$0xff] (!%p242_p9)  }
   0xe   : > { %245 = sbr.rel (%p242_p9) target bundleno = 1040 (0x410), region = 48  ;;  %2658 = vmatprep.subr.msk.bf16.mxu0 (!%p242_p9), %vm482_vm0, %v377_v0  ;;  %v484_v1 = vsel (!%p242_p9), %vm482_vm0, %v377_v0, 0  ;;  %p274_p10 = scmp.lt.s32.totalorder (!%p242_p9), %s2098_s15, 255  ;;  %v2700_v2 = vld [vmem:[%s3456_s3] sm:$0xff] (!%p242_p9)   ;;  %vm385_vm1 = vcmask (!%p242_p9), 31744   ;;  %v2703_v14 = vld [vmem:[%s3456_s3 + $0x18] sm:$0xff] (!%p242_p9)  }
   0xf   : > { %2337 = vmatpush3.bf16.msra.mxu0 (!%p242_p9), %v484_v1  ;;  %2402 = vmatprep.subr.bf16.mxu1 (!%p242_p9), %v2700_v2  ;;  %v2704_v20 = vld [vmem:[%s3456_s3 + $0x20] sm:$0xff] (!%p242_p9)   ;;  %v2705_v32 = vld [vmem:[%s3456_s3 + $0x28] sm:$0xff] (!%p242_p9)   ;;  %s270_s18 = sand.u32 (!%p242_p9), 1, %s2778_s25   ;;  %s2182_s29 = sshll.u32 (!%p242_p9), %s2852_s28, 13 }
  0x10   : > { %2403 = vmatpush3.bf16.msra.mxu1 (!%p242_p9), %v2700_v2  ;;  %s2097_s19 = sshll.u32 (!%p242_p9), %s270_s18, 9  ;;  %s3402_s14 = scalar_lea.hbm (!%p242_p9), %s3460_s7, %s2182_s29 }
  0x11   : > { %2404 = vmatprep.subr.bf16.mxu1 (!%p242_p9), %v2701_v3  ;;  %s3273_s22 = scalar_lea.vmem (!%p242_p9), [#allocation2], %s2097_s19  ;;  %s3412_s28 = scalar_lea.sflag (!%p242_p9), [#allocation3], %s270_s18 }
  0x12   : > { %s2031_s8 = sshll.u32 (!%p242_p9), %s3273_s22, 4  ;;  %s3404_s8 = int_to_ptr.vmem [resolvable:$true] %s2031_s8 }
  0x14   : > { %2405 = vmatpush3.bf16.msra.mxu1 (!%p242_p9), %v2701_v3 }
  0x15   : > { %s3468_s15 = smov (!%p274_p10, %s2098_s15), 255  ;;  %2406 = vmatprep.subr.bf16.mxu1 %v2702_v4 }
  0x16   : > { %s2099_s20 = sshll.u32 %s3468_s15, 3  ;;  %s2788_s15 = smov [#allocation2]  }
  0x17   : > { %s2892_s23 = scalar_lea.vmem %s3453_s0, %s2099_s20  ;;  %s2728_s16 = sshll.u32 %s2788_s15, 4  ;;  %s2729_s16 = int_to_ptr.vmem [resolvable:$false] %s2728_s16 }
  0x18   : > { %v281_v5 = vld [vmem:[%s2892_s23] sm:$0xff]  ;;  %v282_v6 = vld [vmem:[%s2892_s23 + $0x8] sm:$0xff]  ;;  %v283_v7 = vld [vmem:[%s2892_s23 + $0x10] sm:$0xff]  ;;  %2407 = vmatpush3.bf16.msra.mxu1 %v2702_v4  ;;  %s2730_s17 = scalar_lea.vmem %s2729_s16, 16384  ;;  %p2731_p0 = scmp.lt.s32.totalorder %s3404_s8, %s2729_s16 }
  0x19   : > { %v345_v8 = vpack.c.bf16 %v282_v6, %v281_v5  ;;  %v284_v9 = vld [vmem:[%s2892_s23 + $0x18] sm:$0xff]  ;;  %v285_v10 = vld [vmem:[%s2892_s23 + $0x20] sm:$0xff]  ;;  %v286_v11 = vld [vmem:[%s2892_s23 + $0x28] sm:$0xff]  ;;  %2408 = vmatprep.subr.bf16.mxu1 %v2703_v14 }
  0x1a   : > { %v346_v12 = vpack.c.bf16 %v284_v9, %v283_v7  ;;  %v347_v13 = vpack.c.bf16 %v286_v11, %v285_v10  ;;  %v287_v15 = vld [vmem:[%s2892_s23 + $0x30] sm:$0xff]  ;;  %v288_v16 = vld [vmem:[%s2892_s23 + $0x38] sm:$0xff]  ;;  %v289_v17 = vld [vmem:[%s2892_s23 + $0x40] sm:$0xff] }
  0x1b   : > { %2338 = vmatprep.mubr.msk.bf16.mxu0 %vm385_vm1, %v345_v8  ;;  %v290_v18 = vld [vmem:[%s2892_s23 + $0x48] sm:$0xff]  ;;  %v348_v19 = vpack.c.bf16 %v288_v16, %v287_v15  ;;  %v291_v22 = vld [vmem:[%s2892_s23 + $0x50] sm:$0xff]  ;;  %v292_v23 = vld [vmem:[%s2892_s23 + $0x58] sm:$0xff] }
  0x1c   : > { %2339 = vmatmul.mubr.msk.bf16.vlgmr.msra.gmra.mrb[0].mxu0 %vm385_vm1, %v346_v12  ;;  %v349_v21 = vpack.c.bf16 %v290_v18, %v289_v17  ;;  %2409 = vmatpush3.bf16.msra.mxu1 %v2703_v14  ;;  %v293_v24 = vld [vmem:[%s2892_s23 + $0x60] sm:$0xff]  ;;  %v294_v25 = vld [vmem:[%s2892_s23 + $0x68] sm:$0xff]  ;;  %v350_v26 = vpack.c.bf16 %v292_v23, %v291_v22  ;;  %v295_v28 = vld [vmem:[%s2892_s23 + $0x70] sm:$0xff] }
  0x1d   : > { %2342 = vmatprep.mubr.msk.bf16.mxu0 %vm385_vm1, %v347_v13  ;;  %2410 = vmatprep.subr.bf16.mxu1 %v2704_v20  ;;  %v351_v27 = vpack.c.bf16 %v294_v25, %v293_v24  ;;  %v296_v29 = vld [vmem:[%s2892_s23 + $0x78] sm:$0xff]  ;;  %v297_v30 = vld [vmem:[%s2892_s23 + $0x80] sm:$0xff]  ;;  %v298_v31 = vld [vmem:[%s2892_s23 + $0x88] sm:$0xff] }
  0x1e   : > { %v352_v33 = vpack.c.bf16 %v296_v29, %v295_v28  ;;  %v353_v34 = vpack.c.bf16 %v298_v31, %v297_v30  ;;  %v299_v35 = vld [vmem:[%s2892_s23 + $0x90] sm:$0xff]  ;;  %v300_v36 = vld [vmem:[%s2892_s23 + $0x98] sm:$0xff]  ;;  %v301_v37 = vld [vmem:[%s2892_s23 + $0xa0] sm:$0xff] }
  0x1f   : > { %v302_v38 = vld [vmem:[%s2892_s23 + $0xa8] sm:$0xff]  ;;  %v354_v39 = vpack.c.bf16 %v300_v36, %v299_v35  ;;  %v303_v41 = vld [vmem:[%s2892_s23 + $0xb0] sm:$0xff]  ;;  %v304_v42 = vld [vmem:[%s2892_s23 + $0xb8] sm:$0xff] }
  0x20   : > { %2411 = vmatpush3.bf16.msra.mxu1 %v2704_v20  ;;  %v355_v40 = vpack.c.bf16 %v302_v38, %v301_v37  ;;  %v305_v43 = vld [vmem:[%s2892_s23 + $0xc0] sm:$0xff]  ;;  %v306_v44 = vld [vmem:[%s2892_s23 + $0xc8] sm:$0xff]  ;;  %v356_v45 = vpack.c.bf16 %v304_v42, %v303_v41  ;;  %v307_v47 = vld [vmem:[%s2892_s23 + $0xd0] sm:$0xff] }
  0x21   : > { %2412 = vmatprep.subr.bf16.mxu1 %v2705_v32  ;;  %v357_v46 = vpack.c.bf16 %v306_v44, %v305_v43  ;;  %v308_v48 = vld [vmem:[%s2892_s23 + $0xd8] sm:$0xff]  ;;  %v309_v49 = vld [vmem:[%s2892_s23 + $0xe0] sm:$0xff]  ;;  %v310_v50 = vld [vmem:[%s2892_s23 + $0xe8] sm:$0xff] }
  0x22   : > { %v358_v51 = vpack.c.bf16 %v308_v48, %v307_v47  ;;  %v359_v52 = vpack.c.bf16 %v310_v50, %v309_v49  ;;  %v311_v53 = vld [vmem:[%s2892_s23 + $0xf0] sm:$0xff]  ;;  %v312_v54 = vld [vmem:[%s2892_s23 + $0xf8] sm:$0xff]  ;;  %v313_v55 = vld [vmem:[%s2892_s23 + $0x100] sm:$0xff] }
  0x23   : > { %v314_v56 = vld [vmem:[%s2892_s23 + $0x108] sm:$0xff]  ;;  %v360_v57 = vpack.c.bf16 %v312_v54, %v311_v53  ;;  %v315_v59 = vld [vmem:[%s2892_s23 + $0x110] sm:$0xff]  ;;  %v316_v60 = vld [vmem:[%s2892_s23 + $0x118] sm:$0xff] }
  0x24   : > { %2343 = vmatmul.mubr.msk.bf16.gmra.mrb[4].mxu0 %vm385_vm1, %v348_v19  ;;  %2413 = vmatpush3.bf16.msra.mxu1 %v2705_v32  ;;  %v361_v58 = vpack.c.bf16 %v314_v56, %v313_v55  ;;  %v317_v61 = vld [vmem:[%s2892_s23 + $0x120] sm:$0xff]  ;;  %v318_v62 = vld [vmem:[%s2892_s23 + $0x128] sm:$0xff]  ;;  %v362_v63 = vpack.c.bf16 %v316_v60, %v315_v59  ;;  %v319_v1 = vld [vmem:[%s2892_s23 + $0x130] sm:$0xff] }
  0x25   : > { %2346 = vmatprep.mubr.msk.bf16.mxu0 %vm385_vm1, %v349_v21  ;;  %v363_v0 = vpack.c.bf16 %v318_v62, %v317_v61  ;;  %v320_v2 = vld [vmem:[%s2892_s23 + $0x138] sm:$0xff]  ;;  %v321_v3 = vld [vmem:[%s2892_s23 + $0x140] sm:$0xff]  ;;  %v322_v4 = vld [vmem:[%s2892_s23 + $0x148] sm:$0xff] }
  0x26   : > { %v364_v5 = vpack.c.bf16 %v320_v2, %v319_v1  ;;  %v365_v6 = vpack.c.bf16 %v322_v4, %v321_v3  ;;  %v323_v7 = vld [vmem:[%s2892_s23 + $0x150] sm:$0xff]  ;;  %v324_v8 = vld [vmem:[%s2892_s23 + $0x158] sm:$0xff]  ;;  %v325_v9 = vld [vmem:[%s2892_s23 + $0x160] sm:$0xff] }
  0x27   : > { %v326_v10 = vld [vmem:[%s2892_s23 + $0x168] sm:$0xff]  ;;  %v366_v11 = vpack.c.bf16 %v324_v8, %v323_v7  ;;  %v327_v13 = vld [vmem:[%s2892_s23 + $0x170] sm:$0xff]  ;;  %v328_v14 = vld [vmem:[%s2892_s23 + $0x178] sm:$0xff] }
  0x28   : > { %v367_v12 = vpack.c.bf16 %v326_v10, %v325_v9  ;;  %v329_v15 = vld [vmem:[%s2892_s23 + $0x180] sm:$0xff]  ;;  %v330_v16 = vld [vmem:[%s2892_s23 + $0x188] sm:$0xff]  ;;  %v2706_v17 = vld [vmem:[%s3456_s3 + $0x30] sm:$0xff]   ;;  %v368_v18 = vpack.c.bf16 %v328_v14, %v327_v13 }
  0x29   : > { %2414 = vmatprep.subr.bf16.mxu1 %v2706_v17  ;;  %v369_v19 = vpack.c.bf16 %v330_v16, %v329_v15  ;;  %v2707_v20 = vld [vmem:[%s3456_s3 + $0x38] sm:$0xff]   ;;  %v331_v21 = vld [vmem:[%s2892_s23 + $0x190] sm:$0xff]  ;;  %v333_v23 = vld [vmem:[%s2892_s23 + $0x1a0] sm:$0xff] }
  0x2a   : > { %2415 = vmatpush3.bf16.msra.mxu1 %v2706_v17  ;;  %v332_v22 = vld [vmem:[%s2892_s23 + $0x198] sm:$0xff]  ;;  %v334_v24 = vld [vmem:[%s2892_s23 + $0x1a8] sm:$0xff]  ;;  %v337_v29 = vld [vmem:[%s2892_s23 + $0x1c0] sm:$0xff] }
  0x2b   : > { %2416 = vmatprep.subr.bf16.mxu1 %v2707_v20  ;;  %v370_v25 = vpack.c.bf16 %v332_v22, %v331_v21  ;;  %v336_v28 = vld [vmem:[%s2892_s23 + $0x1b8] sm:$0xff]  ;;  %v338_v30 = vld [vmem:[%s2892_s23 + $0x1c8] sm:$0xff]  ;;  %v341_v35 = vld [vmem:[%s2892_s23 + $0x1e0] sm:$0xff] }
  0x2c   : > { %2347 = vmatmul.mubr.msk.bf16.gmra.mrb[8].mxu0 %vm385_vm1, %v350_v26  ;;  %v371_v26 = vpack.c.bf16 %v334_v24, %v333_v23  ;;  %v373_v32 = vpack.c.bf16 %v338_v30, %v337_v29  ;;  %v342_v36 = vld [vmem:[%s2892_s23 + $0x1e8] sm:$0xff]  ;;  %v2708_v42 = vld [vmem:[%s3456_s3 + $0x40] sm:$0xff]   ;;  %v2710_v47 = vld [vmem:[%s3456_s3 + $0x50] sm:$0xff]  }
  0x2d   : > { %2350 = vmatprep.mubr.msk.bf16.mxu0 %vm385_vm1, %v351_v27  ;;  %v335_v27 = vld [vmem:[%s2892_s23 + $0x1b0] sm:$0xff]  ;;  %v375_v38 = vpack.c.bf16 %v342_v36, %v341_v35  ;;  %2482 = vmatprep.subr.bf16.mxu0 %v2708_v42  ;;  %v2709_v43 = vld [vmem:[%s3456_s3 + $0x48] sm:$0xff]   ;;  %v2711_v48 = vld [vmem:[%s3456_s3 + $0x58] sm:$0xff]  }
  0x2e   : > { %2417 = vmatpush3.bf16.msra.mxu1 %v2707_v20  ;;  %v372_v31 = vpack.c.bf16 %v336_v28, %v335_v27  ;;  %2483 = vmatpush3.bf16.msra.mxu0 %v2708_v42  ;;  %v2712_v56 = vld [vmem:[%s3456_s3 + $0x60] sm:$0xff]   ;;  %v2713_v60 = vld [vmem:[%s3456_s3 + $0x68] sm:$0xff]   ;;  %v2714_v4 = vld [vmem:[%s3456_s3 + $0x70] sm:$0xff]  }
  0x2f   : > { %2484 = vmatprep.subr.bf16.mxu0 %v2709_v43  ;;  %v2715_v8 = vld [vmem:[%s3456_s3 + $0x78] sm:$0xff]  }
  0x32   : > { %2485 = vmatpush3.bf16.msra.mxu0 %v2709_v43 }
  0x33   : > { %2486 = vmatprep.subr.bf16.mxu0 %v2710_v47 }
  0x34   : > { %2351 = vmatmul.mubr.msk.bf16.gmra.mrb[12].mxu0 %vm385_vm1, %v352_v33  ;;  %v339_v33 = vld [vmem:[%s2892_s23 + $0x1d0] sm:$0xff] }
  0x35   : > { %2354 = vmatprep.mubr.msk.bf16.mxu0 %vm385_vm1, %v353_v34  ;;  %v340_v34 = vld [vmem:[%s2892_s23 + $0x1d8] sm:$0xff] }
  0x36   : > { %v374_v37 = vpack.c.bf16 %v340_v34, %v339_v33  ;;  %2487 = vmatpush3.bf16.msra.mxu0 %v2710_v47 }
  0x37   : > { %2488 = vmatprep.subr.bf16.mxu0 %v2711_v48 }
  0x3a   : > { %2489 = vmatpush3.bf16.msra.mxu0 %v2711_v48 }
  0x3b   : > { %2490 = vmatprep.subr.bf16.mxu0 %v2712_v56 }
  0x3c   : > { %2355 = vmatmul.mubr.msk.bf16.gmra.mrb[16].mxu0 %vm385_vm1, %v354_v39  ;;  %v343_v39 = vld [vmem:[%s2892_s23 + $0x1f0] sm:$0xff] }
  0x3d   : > { %2358 = vmatprep.mubr.msk.bf16.mxu0 %vm385_vm1, %v355_v40  ;;  %v344_v40 = vld [vmem:[%s2892_s23 + $0x1f8] sm:$0xff]  ;;  %s2724_s23 = scalar_lea.vmem %s3404_s8, 8192 }
  0x3e   : > { %v376_v41 = vpack.c.bf16 %v344_v40, %v343_v39  ;;  %2491 = vmatpush3.bf16.msra.mxu0 %v2712_v56  ;;  %p2725_p11 = scmp.ne.s32.totalorder %s3404_s8, %s2724_s23  ;;  %p2732_p1 = scmp.lt.s32.totalorder %s2730_s17, %s2724_s23 }
  0x3f   : > { %2492 = vmatprep.subr.bf16.mxu0 %v2713_v60 }
  0x40   : > { %p2726_p12 = pnand %p2725_p11, %p2869_p5  ;;  %p2733_p2 = por %p2732_p1, %p2731_p0 }
  0x42   : > { %2493 = vmatpush3.bf16.msra.mxu0 %v2713_v60  ;;  %p2727_p13 = pneg %p2726_p12 }
  0x43   : > { %2494 = vmatprep.subr.bf16.mxu0 %v2714_v4 }
  0x44   : > { %2359 = vmatmul.mubr.msk.bf16.gmra.mrb[20].mxu0 %vm385_vm1, %v356_v45  ;;  %v3017_v45 = vld [vmem:[%s3455_s2] ss:$0 sm:$0xff]  ;;  %p2734_p3 = pnand %p2733_p2, %p2727_p13 }
  0x45   : > { %2362 = vmatprep.mubr.msk.bf16.mxu0 %vm385_vm1, %v357_v46 }
  0x46   : > { %2495 = vmatpush3.bf16.msra.mxu0 %v2714_v4 }
  0x47   : > { %2496 = vmatprep.subr.bf16.mxu0 %v2715_v8 }
  0x4a   : > { %2497 = vmatpush3.bf16.msra.mxu0 %v2715_v8 }
  0x4c   : > { %2363 = vmatmul.mubr.msk.bf16.gmra.mrb[24].mxu0 %vm385_vm1, %v358_v51 }
  0x4d   : > { %2366 = vmatprep.mubr.msk.bf16.mxu0 %vm385_vm1, %v359_v52 }
  0x54   : > { %2367 = vmatmul.mubr.msk.bf16.gmra.mrb[28].mxu0 %vm385_vm1, %v360_v57 }
  0x55   : > { %2370 = vmatprep.mubr.msk.bf16.mxu0 %vm385_vm1, %v361_v58 }
  0x5c   : > { %2371 = vmatmul.mubr.msk.bf16.gmra.mrb[32].mxu0 %vm385_vm1, %v362_v63 }
  0x5d   : > { %2374 = vmatprep.mubr.msk.bf16.mxu0 %vm385_vm1, %v363_v0 }
  0x64   : > { %2375 = vmatmul.mubr.msk.bf16.gmra.mrb[36].mxu0 %vm385_vm1, %v364_v5 }
  0x65   : > { %2378 = vmatprep.mubr.msk.bf16.mxu0 %vm385_vm1, %v365_v6 }
  0x6c   : > { %2379 = vmatmul.mubr.msk.bf16.gmra.mrb[40].mxu0 %vm385_vm1, %v366_v11 }
  0x6d   : > { %2382 = vmatprep.mubr.msk.bf16.mxu0 %vm385_vm1, %v367_v12 }
  0x74   : > { %2383 = vmatmul.mubr.msk.bf16.gmra.mrb[44].mxu0 %vm385_vm1, %v368_v18 }
  0x75   : > { %2386 = vmatprep.mubr.msk.bf16.mxu0 %vm385_vm1, %v369_v19 }
  0x7c   : > { %2387 = vmatmul.mubr.msk.bf16.gmra.mrb[48].mxu0 %vm385_vm1, %v370_v25 }
  0x7d   : > { %2390 = vmatprep.mubr.msk.bf16.mxu0 %vm385_vm1, %v371_v26 }
  0x84   : > { %2391 = vmatmul.mubr.msk.bf16.gmra.mrb[52].mxu0 %vm385_vm1, %v372_v31 }
  0x85   : > { %2394 = vmatprep.mubr.msk.bf16.mxu0 %vm385_vm1, %v373_v32 }
  0x8c   : > { %2395 = vmatmul.mubr.msk.bf16.gmra.mrb[56].mxu0 %vm385_vm1, %v374_v37 }
  0x8d   : > { %2398 = vmatprep.mubr.msk.bf16.mxu0 %vm385_vm1, %v375_v38 }
  0x94   : > { %2399 = vmatmul.mubr.msk.bf16.gmra.mrb[60].mxu0 %vm385_vm1, %v376_v41 }
  0xef   : > { %v2340_v44 = vpop.f32.mrb[0].mxu0 }
  0xf0   : > { %v520_v46 = vpop.f32.mrb[1].mxu0  ;;  %v529_v50 = vadd.f32 %v2340_v44, %v3017_v45 }
  0xf1   : > { %v2341_v49 = vpop.f32.mrb[2].mxu0  ;;  %v521_v53 = vadd.f32 %v3017_v45, %v520_v46 }
  0xf2   : > { %v532_v51 = vadd.f32 %v2341_v49, %v3017_v45  ;;  %v523_v52 = vpop.f32.mrb[3].mxu0 }
  0xf3   : > { %v524_v54 = vadd.f32 %v3017_v45, %v523_v52 }
  0xf4   : > { %v776_v55 = vpack.c.bf16 %v532_v51, %v529_v50 }
  0xf5   : > { %v775_v57 = vpack.c.bf16 %v524_v54, %v521_v53 }
  0xf7   : > { %v2344_v58 = vpop.f32.mrb[4].mxu0  ;;  %2418 = vmatprep.mubr.bf16.mxu1 %v775_v57 }
  0xf8   : > { %v536_v59 = vpop.f32.mrb[5].mxu0  ;;  %2419 = vmatmul.mubr.bf16.vlgmr.msra.gmra.mrb[0].mxu1 %v776_v55  ;;  %v545_v62 = vadd.f32 %v2344_v58, %v3017_v45 }
  0xf9   : > { %v2345_v61 = vpop.f32.mrb[6].mxu0  ;;  %v537_v1 = vadd.f32 %v3017_v45, %v536_v59 }
  0xfa   : > { %v548_v63 = vadd.f32 %v2345_v61, %v3017_v45  ;;  %v539_v0 = vpop.f32.mrb[7].mxu0 }
  0xfb   : > { %v540_v2 = vadd.f32 %v3017_v45, %v539_v0 }
  0xfc   : > { %v778_v3 = vpack.c.bf16 %v548_v63, %v545_v62 }
  0xfd   : > { %v777_v5 = vpack.c.bf16 %v540_v2, %v537_v1 }
  0xff   : > { %v2348_v6 = vpop.f32.mrb[8].mxu0  ;;  %2422 = vmatprep.mubr.bf16.mxu1 %v777_v5 }
 0x100   : > { %v552_v7 = vpop.f32.mrb[9].mxu0  ;;  %2423 = vmatmul.mubr.bf16.gmra.mrb[4].mxu1 %v778_v3  ;;  %v561_v10 = vadd.f32 %v2348_v6, %v3017_v45 }
 0x101   : > { %v2349_v9 = vpop.f32.mrb[10].mxu0  ;;  %v553_v13 = vadd.f32 %v3017_v45, %v552_v7 }
 0x102   : > { %v564_v11 = vadd.f32 %v2349_v9, %v3017_v45  ;;  %v555_v12 = vpop.f32.mrb[11].mxu0 }
 0x103   : > { %v556_v14 = vadd.f32 %v3017_v45, %v555_v12 }
 0x104   : > { %v780_v15 = vpack.c.bf16 %v564_v11, %v561_v10 }
 0x105   : > { %v779_v16 = vpack.c.bf16 %v556_v14, %v553_v13 }
 0x107   : > { %v2352_v17 = vpop.f32.mrb[12].mxu0  ;;  %2426 = vmatprep.mubr.bf16.mxu1 %v779_v16 }
 0x108   : > { %v568_v18 = vpop.f32.mrb[13].mxu0  ;;  %2427 = vmatmul.mubr.bf16.gmra.mrb[8].mxu1 %v780_v15  ;;  %v577_v20 = vadd.f32 %v2352_v17, %v3017_v45 }
 0x109   : > { %v2353_v19 = vpop.f32.mrb[14].mxu0  ;;  %v569_v23 = vadd.f32 %v3017_v45, %v568_v18 }
 0x10a   : > { %v580_v21 = vadd.f32 %v2353_v19, %v3017_v45  ;;  %v571_v22 = vpop.f32.mrb[15].mxu0 }
 0x10b   : > { %v572_v24 = vadd.f32 %v3017_v45, %v571_v22 }
 0x10c   : > { %v782_v25 = vpack.c.bf16 %v580_v21, %v577_v20 }
 0x10d   : > { %v781_v26 = vpack.c.bf16 %v572_v24, %v569_v23 }
 0x10f   : > { %v2356_v27 = vpop.f32.mrb[16].mxu0  ;;  %2430 = vmatprep.mubr.bf16.mxu1 %v781_v26 }
 0x110   : > { %v584_v28 = vpop.f32.mrb[17].mxu0  ;;  %2431 = vmatmul.mubr.bf16.gmra.mrb[12].mxu1 %v782_v25  ;;  %v593_v30 = vadd.f32 %v2356_v27, %v3017_v45 }
 0x111   : > { %v2357_v29 = vpop.f32.mrb[18].mxu0  ;;  %v585_v33 = vadd.f32 %v3017_v45, %v584_v28 }
 0x112   : > { %v596_v31 = vadd.f32 %v2357_v29, %v3017_v45  ;;  %v587_v32 = vpop.f32.mrb[19].mxu0 }
 0x113   : > { %v588_v34 = vadd.f32 %v3017_v45, %v587_v32 }
 0x114   : > { %v784_v35 = vpack.c.bf16 %v596_v31, %v593_v30 }
 0x115   : > { %v783_v36 = vpack.c.bf16 %v588_v34, %v585_v33 }
 0x117   : > { %v2360_v37 = vpop.f32.mrb[20].mxu0  ;;  %2434 = vmatprep.mubr.bf16.mxu1 %v783_v36 }
 0x118   : > { %v600_v38 = vpop.f32.mrb[21].mxu0  ;;  %2435 = vmatmul.mubr.bf16.gmra.mrb[16].mxu1 %v784_v35  ;;  %v609_v40 = vadd.f32 %v2360_v37, %v3017_v45 }
 0x119   : > { %v2361_v39 = vpop.f32.mrb[22].mxu0  ;;  %v601_v43 = vadd.f32 %v3017_v45, %v600_v38 }
 0x11a   : > { %v612_v41 = vadd.f32 %v2361_v39, %v3017_v45  ;;  %v603_v42 = vpop.f32.mrb[23].mxu0 }
 0x11b   : > { %v604_v44 = vadd.f32 %v3017_v45, %v603_v42 }
 0x11c   : > { %v786_v46 = vpack.c.bf16 %v612_v41, %v609_v40 }
 0x11d   : > { %v785_v47 = vpack.c.bf16 %v604_v44, %v601_v43 }
 0x11f   : > { %v2364_v48 = vpop.f32.mrb[24].mxu0  ;;  %2438 = vmatprep.mubr.bf16.mxu1 %v785_v47 }
 0x120   : > { %v616_v49 = vpop.f32.mrb[25].mxu0  ;;  %2439 = vmatmul.mubr.bf16.gmra.mrb[20].mxu1 %v786_v46  ;;  %v625_v51 = vadd.f32 %v2364_v48, %v3017_v45 }
 0x121   : > { %v2365_v50 = vpop.f32.mrb[26].mxu0  ;;  %v617_v54 = vadd.f32 %v3017_v45, %v616_v49 }
 0x122   : > { %v628_v52 = vadd.f32 %v2365_v50, %v3017_v45  ;;  %v619_v53 = vpop.f32.mrb[27].mxu0 }
 0x123   : > { %v620_v55 = vadd.f32 %v3017_v45, %v619_v53 }
 0x124   : > { %v788_v56 = vpack.c.bf16 %v628_v52, %v625_v51 }
 0x125   : > { %v787_v57 = vpack.c.bf16 %v620_v55, %v617_v54 }
 0x127   : > { %v2368_v58 = vpop.f32.mrb[28].mxu0  ;;  %2442 = vmatprep.mubr.bf16.mxu1 %v787_v57 }
 0x128   : > { %v632_v59 = vpop.f32.mrb[29].mxu0  ;;  %2443 = vmatmul.mubr.bf16.gmra.mrb[24].mxu1 %v788_v56  ;;  %v641_v61 = vadd.f32 %v2368_v58, %v3017_v45 }
 0x129   : > { %v2369_v60 = vpop.f32.mrb[30].mxu0  ;;  %v633_v0 = vadd.f32 %v3017_v45, %v632_v59 }
 0x12a   : > { %v644_v62 = vadd.f32 %v2369_v60, %v3017_v45  ;;  %v635_v63 = vpop.f32.mrb[31].mxu0 }
 0x12b   : > { %v636_v1 = vadd.f32 %v3017_v45, %v635_v63 }
 0x12c   : > { %v790_v2 = vpack.c.bf16 %v644_v62, %v641_v61 }
 0x12d   : > { %v789_v3 = vpack.c.bf16 %v636_v1, %v633_v0 }
 0x12f   : > { %v2372_v4 = vpop.f32.mrb[32].mxu0  ;;  %2446 = vmatprep.mubr.bf16.mxu1 %v789_v3 }
 0x130   : > { %v648_v5 = vpop.f32.mrb[33].mxu0  ;;  %2447 = vmatmul.mubr.bf16.gmra.mrb[28].mxu1 %v790_v2  ;;  %v657_v7 = vadd.f32 %v2372_v4, %v3017_v45 }
 0x131   : > { %v2373_v6 = vpop.f32.mrb[34].mxu0  ;;  %v649_v10 = vadd.f32 %v3017_v45, %v648_v5 }
 0x132   : > { %v660_v8 = vadd.f32 %v2373_v6, %v3017_v45  ;;  %v651_v9 = vpop.f32.mrb[35].mxu0 }
 0x133   : > { %v652_v11 = vadd.f32 %v3017_v45, %v651_v9 }
 0x134   : > { %v792_v12 = vpack.c.bf16 %v660_v8, %v657_v7 }
 0x135   : > { %v791_v13 = vpack.c.bf16 %v652_v11, %v649_v10 }
 0x137   : > { %v2376_v14 = vpop.f32.mrb[36].mxu0  ;;  %2450 = vmatprep.mubr.bf16.mxu1 %v791_v13 }
 0x138   : > { %v664_v15 = vpop.f32.mrb[37].mxu0  ;;  %2451 = vmatmul.mubr.bf16.gmra.mrb[32].mxu1 %v792_v12  ;;  %v673_v17 = vadd.f32 %v2376_v14, %v3017_v45 }
 0x139   : > { %v2377_v16 = vpop.f32.mrb[38].mxu0  ;;  %v665_v20 = vadd.f32 %v3017_v45, %v664_v15 }
 0x13a   : > { %v676_v18 = vadd.f32 %v2377_v16, %v3017_v45  ;;  %v667_v19 = vpop.f32.mrb[39].mxu0 }
 0x13b   : > { %v668_v21 = vadd.f32 %v3017_v45, %v667_v19 }
 0x13c   : > { %v794_v22 = vpack.c.bf16 %v676_v18, %v673_v17 }
 0x13d   : > { %v793_v23 = vpack.c.bf16 %v668_v21, %v665_v20  ;;  %v2716_v21 = vld [vmem:[%s3458_s5] sm:$0xff]  }
 0x13e   : > { %2642 = vmatprep.subr.bf16.mxu1 %v2716_v21  ;;  %2562 = vmatprep.subr.bf16.mxu0 %v2716_v21 }
 0x13f   : > { %v2380_v24 = vpop.f32.mrb[40].mxu0  ;;  %2454 = vmatprep.mubr.bf16.mxu1 %v793_v23  ;;  %2650 = vmatpush3.bf16.msra.mxu1 %v2716_v21 }
 0x140   : > { %v680_v25 = vpop.f32.mrb[41].mxu0  ;;  %2455 = vmatmul.mubr.bf16.gmra.mrb[36].mxu1 %v794_v22  ;;  %v689_v27 = vadd.f32 %v2380_v24, %v3017_v45  ;;  %v2717_v22 = vld [vmem:[%s3458_s5 + $0x8] sm:$0xff]  }
 0x141   : > { %v2381_v26 = vpop.f32.mrb[42].mxu0  ;;  %v681_v30 = vadd.f32 %v3017_v45, %v680_v25  ;;  %2643 = vmatprep.subr.bf16.mxu1 %v2717_v22  ;;  %v2718_v25 = vld [vmem:[%s3458_s5 + $0x10] sm:$0xff]  }
 0x142   : > { %v692_v28 = vadd.f32 %v2381_v26, %v3017_v45  ;;  %v683_v29 = vpop.f32.mrb[43].mxu0 }
 0x143   : > { %v684_v31 = vadd.f32 %v3017_v45, %v683_v29  ;;  %2651 = vmatpush3.bf16.msra.mxu1 %v2717_v22 }
 0x144   : > { %v796_v32 = vpack.c.bf16 %v692_v28, %v689_v27  ;;  %2644 = vmatprep.subr.bf16.mxu1 %v2718_v25 }
 0x145   : > { %v795_v33 = vpack.c.bf16 %v684_v31, %v681_v30 }
 0x147   : > { %v2384_v34 = vpop.f32.mrb[44].mxu0  ;;  %2458 = vmatprep.mubr.bf16.mxu1 %v795_v33  ;;  %2652 = vmatpush3.bf16.msra.mxu1 %v2718_v25 }
 0x148   : > { %v696_v35 = vpop.f32.mrb[45].mxu0  ;;  %2459 = vmatmul.mubr.bf16.gmra.mrb[40].mxu1 %v796_v32  ;;  %v705_v37 = vadd.f32 %v2384_v34, %v3017_v45  ;;  %v2719_v32 = vld [vmem:[%s3458_s5 + $0x18] sm:$0xff]  }
 0x149   : > { %v2385_v36 = vpop.f32.mrb[46].mxu0  ;;  %v697_v40 = vadd.f32 %v3017_v45, %v696_v35  ;;  %2645 = vmatprep.subr.bf16.mxu1 %v2719_v32 }
 0x14a   : > { %v708_v38 = vadd.f32 %v2385_v36, %v3017_v45  ;;  %v699_v39 = vpop.f32.mrb[47].mxu0  ;;  %v2720_v36 = vld [vmem:[%s3458_s5 + $0x20] sm:$0xff]  }
 0x14b   : > { %v700_v41 = vadd.f32 %v3017_v45, %v699_v39  ;;  %2653 = vmatpush3.bf16.msra.mxu1 %v2719_v32 }
 0x14c   : > { %v798_v42 = vpack.c.bf16 %v708_v38, %v705_v37  ;;  %2646 = vmatprep.subr.bf16.mxu1 %v2720_v36 }
 0x14d   : > { %v797_v43 = vpack.c.bf16 %v700_v41, %v697_v40 }
 0x14f   : > { %v2388_v44 = vpop.f32.mrb[48].mxu0  ;;  %2462 = vmatprep.mubr.bf16.mxu1 %v797_v43  ;;  %2654 = vmatpush3.bf16.msra.mxu1 %v2720_v36 }
 0x150   : > { %v712_v46 = vpop.f32.mrb[49].mxu0  ;;  %2463 = vmatmul.mubr.bf16.gmra.mrb[44].mxu1 %v798_v42  ;;  %v721_v48 = vadd.f32 %v2388_v44, %v3017_v45  ;;  %v2721_v44 = vld [vmem:[%s3458_s5 + $0x28] sm:$0xff]  }
 0x151   : > { %v2389_v47 = vpop.f32.mrb[50].mxu0  ;;  %v713_v51 = vadd.f32 %v3017_v45, %v712_v46  ;;  %2647 = vmatprep.subr.bf16.mxu1 %v2721_v44 }
 0x152   : > { %v724_v49 = vadd.f32 %v2389_v47, %v3017_v45  ;;  %v715_v50 = vpop.f32.mrb[51].mxu0 }
 0x153   : > { %v716_v52 = vadd.f32 %v3017_v45, %v715_v50  ;;  %2655 = vmatpush3.bf16.msra.mxu1 %v2721_v44 }
 0x154   : > { %v800_v53 = vpack.c.bf16 %v724_v49, %v721_v48  ;;  %v2722_v49 = vld [vmem:[%s3458_s5 + $0x30] sm:$0xff]  }
 0x155   : > { %v799_v54 = vpack.c.bf16 %v716_v52, %v713_v51  ;;  %2648 = vmatprep.subr.bf16.mxu1 %v2722_v49 }
 0x157   : > { %v2392_v55 = vpop.f32.mrb[52].mxu0  ;;  %2466 = vmatprep.mubr.bf16.mxu1 %v799_v54  ;;  %2656 = vmatpush3.bf16.msra.mxu1 %v2722_v49 }
 0x158   : > { %v728_v56 = vpop.f32.mrb[53].mxu0  ;;  %2467 = vmatmul.mubr.bf16.gmra.mrb[48].mxu1 %v800_v53  ;;  %v737_v58 = vadd.f32 %v2392_v55, %v3017_v45 }
 0x159   : > { %v2393_v57 = vpop.f32.mrb[54].mxu0  ;;  %v729_v61 = vadd.f32 %v3017_v45, %v728_v56 }
 0x15a   : > { %v740_v59 = vadd.f32 %v2393_v57, %v3017_v45  ;;  %v731_v60 = vpop.f32.mrb[55].mxu0 }
 0x15b   : > { %v732_v62 = vadd.f32 %v3017_v45, %v731_v60 }
 0x15c   : > { %v802_v63 = vpack.c.bf16 %v740_v59, %v737_v58 }
 0x15d   : > { %v801_v0 = vpack.c.bf16 %v732_v62, %v729_v61 }
 0x15f   : > { %v2396_v1 = vpop.f32.mrb[56].mxu0  ;;  %2470 = vmatprep.mubr.bf16.mxu1 %v801_v0 }
 0x160   : > { %v744_v2 = vpop.f32.mrb[57].mxu0  ;;  %2471 = vmatmul.mubr.bf16.gmra.mrb[52].mxu1 %v802_v63  ;;  %v753_v4 = vadd.f32 %v2396_v1, %v3017_v45 }
 0x161   : > { %v2397_v3 = vpop.f32.mrb[58].mxu0  ;;  %v745_v7 = vadd.f32 %v3017_v45, %v744_v2 }
 0x162   : > { %v756_v5 = vadd.f32 %v2397_v3, %v3017_v45  ;;  %v747_v6 = vpop.f32.mrb[59].mxu0 }
 0x163   : > { %v748_v8 = vadd.f32 %v3017_v45, %v747_v6 }
 0x164   : > { %v804_v9 = vpack.c.bf16 %v756_v5, %v753_v4 }
 0x165   : > { %v803_v10 = vpack.c.bf16 %v748_v8, %v745_v7 }
 0x167   : > { %v2400_v11 = vpop.f32.mrb[60].mxu0  ;;  %2474 = vmatprep.mubr.bf16.mxu1 %v803_v10 }
 0x168   : > { %v760_v12 = vpop.f32.mrb[61].mxu0  ;;  %2475 = vmatmul.mubr.bf16.gmra.mrb[56].mxu1 %v804_v9  ;;  %v769_v14 = vadd.f32 %v2400_v11, %v3017_v45 }
 0x169   : > { %v2401_v13 = vpop.f32.mrb[62].mxu0  ;;  %v761_v17 = vadd.f32 %v3017_v45, %v760_v12 }
 0x16a   : > { %v772_v15 = vadd.f32 %v2401_v13, %v3017_v45  ;;  %v763_v16 = vpop.f32.mrb[63].mxu0 }
 0x16b   : > { %v764_v18 = vadd.f32 %v3017_v45, %v763_v16  ;;  %v3110_v45 = vld [vmem:[%s3457_s4] ss:$0 sm:$0xff] }
 0x16c   : > { %v806_v19 = vpack.c.bf16 %v772_v15, %v769_v14 }
 0x16d   : > { %v805_v20 = vpack.c.bf16 %v764_v18, %v761_v17 }
 0x16f   : > { %2478 = vmatprep.mubr.bf16.mxu1 %v805_v20 }
 0x170   : > { %2479 = vmatmul.mubr.bf16.gmra.mrb[60].mxu1 %v806_v19 }
 0x1cb   : > { %v2420_v23 = vpop.f32.mrb[0].mxu1 }
 0x1cc   : > { %v912_v24 = vpop.f32.mrb[1].mxu1  ;;  %v921_v27 = vadd.f32 %v2420_v23, %v3110_v45 }
 0x1cd   : > { %v2421_v26 = vpop.f32.mrb[2].mxu1  ;;  %v913_v30 = vadd.f32 %v3110_v45, %v912_v24 }
 0x1ce   : > { %v924_v28 = vadd.f32 %v2421_v26, %v3110_v45  ;;  %v915_v29 = vpop.f32.mrb[3].mxu1 }
 0x1cf   : > { %v916_v31 = vadd.f32 %v3110_v45, %v915_v29 }
 0x1d0   : > { %v1168_v33 = vpack.c.bf16 %v924_v28, %v921_v27 }
 0x1d1   : > { %v1167_v34 = vpack.c.bf16 %v916_v31, %v913_v30 }
 0x1d3   : > { %v2424_v35 = vpop.f32.mrb[4].mxu1  ;;  %2498 = vmatprep.mubr.bf16.mxu0 %v1167_v34 }
 0x1d4   : > { %v928_v37 = vpop.f32.mrb[5].mxu1  ;;  %2499 = vmatmul.mubr.bf16.vlgmr.msra.gmra.mrb[64].mxu0 %v1168_v33  ;;  %v937_v39 = vadd.f32 %v2424_v35, %v3110_v45 }
 0x1d5   : > { %v2425_v38 = vpop.f32.mrb[6].mxu1  ;;  %2563 = vmatpush3.bf16.msra.mxu0 %v2716_v21  ;;  %v929_v42 = vadd.f32 %v3110_v45, %v928_v37 }
 0x1d6   : > { %v940_v40 = vadd.f32 %v2425_v38, %v3110_v45  ;;  %v931_v41 = vpop.f32.mrb[7].mxu1  ;;  %2564 = vmatprep.subr.bf16.mxu0 %v2717_v22 }
 0x1d7   : > { %v932_v43 = vadd.f32 %v3110_v45, %v931_v41 }
 0x1d8   : > { %v1170_v46 = vpack.c.bf16 %v940_v40, %v937_v39 }
 0x1d9   : > { %v1169_v47 = vpack.c.bf16 %v932_v43, %v929_v42  ;;  %2565 = vmatpush3.bf16.msra.mxu0 %v2717_v22 }
 0x1da   : > { %2566 = vmatprep.subr.bf16.mxu0 %v2718_v25 }
 0x1db   : > { %v2428_v48 = vpop.f32.mrb[8].mxu1  ;;  %2502 = vmatprep.mubr.bf16.mxu0 %v1169_v47 }
 0x1dc   : > { %v944_v50 = vpop.f32.mrb[9].mxu1  ;;  %2503 = vmatmul.mubr.bf16.gmra.mrb[68].mxu0 %v1170_v46  ;;  %v953_v52 = vadd.f32 %v2428_v48, %v3110_v45 }
 0x1dd   : > { %v2429_v51 = vpop.f32.mrb[10].mxu1  ;;  %2567 = vmatpush3.bf16.msra.mxu0 %v2718_v25  ;;  %v945_v55 = vadd.f32 %v3110_v45, %v944_v50 }
 0x1de   : > { %v956_v53 = vadd.f32 %v2429_v51, %v3110_v45  ;;  %v947_v54 = vpop.f32.mrb[11].mxu1  ;;  %2568 = vmatprep.subr.bf16.mxu0 %v2719_v32 }
 0x1df   : > { %v948_v56 = vadd.f32 %v3110_v45, %v947_v54 }
 0x1e0   : > { %v1172_v57 = vpack.c.bf16 %v956_v53, %v953_v52 }
 0x1e1   : > { %v1171_v58 = vpack.c.bf16 %v948_v56, %v945_v55  ;;  %2569 = vmatpush3.bf16.msra.mxu0 %v2719_v32 }
 0x1e2   : > { %2570 = vmatprep.subr.bf16.mxu0 %v2720_v36 }
 0x1e3   : > { %v2432_v59 = vpop.f32.mrb[12].mxu1  ;;  %2506 = vmatprep.mubr.bf16.mxu0 %v1171_v58 }
 0x1e4   : > { %v960_v60 = vpop.f32.mrb[13].mxu1  ;;  %2507 = vmatmul.mubr.bf16.gmra.mrb[72].mxu0 %v1172_v57  ;;  %v969_v62 = vadd.f32 %v2432_v59, %v3110_v45 }
 0x1e5   : > { %v2433_v61 = vpop.f32.mrb[14].mxu1  ;;  %2571 = vmatpush3.bf16.msra.mxu0 %v2720_v36  ;;  %v961_v1 = vadd.f32 %v3110_v45, %v960_v60 }
 0x1e6   : > { %v972_v63 = vadd.f32 %v2433_v61, %v3110_v45  ;;  %v963_v0 = vpop.f32.mrb[15].mxu1  ;;  %2572 = vmatprep.subr.bf16.mxu0 %v2721_v44 }
 0x1e7   : > { %v964_v2 = vadd.f32 %v3110_v45, %v963_v0 }
 0x1e8   : > { %v1174_v3 = vpack.c.bf16 %v972_v63, %v969_v62 }
 0x1e9   : > { %v1173_v4 = vpack.c.bf16 %v964_v2, %v961_v1  ;;  %2573 = vmatpush3.bf16.msra.mxu0 %v2721_v44 }
 0x1ea   : > { %2574 = vmatprep.subr.bf16.mxu0 %v2722_v49 }
 0x1eb   : > { %v2436_v5 = vpop.f32.mrb[16].mxu1  ;;  %2510 = vmatprep.mubr.bf16.mxu0 %v1173_v4 }
 0x1ec   : > { %v976_v6 = vpop.f32.mrb[17].mxu1  ;;  %2511 = vmatmul.mubr.bf16.gmra.mrb[76].mxu0 %v1174_v3  ;;  %v985_v8 = vadd.f32 %v2436_v5, %v3110_v45 }
 0x1ed   : > { %v2437_v7 = vpop.f32.mrb[18].mxu1  ;;  %2575 = vmatpush3.bf16.msra.mxu0 %v2722_v49  ;;  %v977_v11 = vadd.f32 %v3110_v45, %v976_v6 }
 0x1ee   : > { %v988_v9 = vadd.f32 %v2437_v7, %v3110_v45  ;;  %v979_v10 = vpop.f32.mrb[19].mxu1 }
 0x1ef   : > { %v980_v12 = vadd.f32 %v3110_v45, %v979_v10 }
 0x1f0   : > { %v1176_v13 = vpack.c.bf16 %v988_v9, %v985_v8 }
 0x1f1   : > { %v1175_v14 = vpack.c.bf16 %v980_v12, %v977_v11 }
 0x1f3   : > { %v2440_v15 = vpop.f32.mrb[20].mxu1  ;;  %2514 = vmatprep.mubr.bf16.mxu0 %v1175_v14 }
 0x1f4   : > { %v992_v16 = vpop.f32.mrb[21].mxu1  ;;  %2515 = vmatmul.mubr.bf16.gmra.mrb[80].mxu0 %v1176_v13  ;;  %v1001_v18 = vadd.f32 %v2440_v15, %v3110_v45 }
 0x1f5   : > { %v2441_v17 = vpop.f32.mrb[22].mxu1  ;;  %v993_v21 = vadd.f32 %v3110_v45, %v992_v16 }
 0x1f6   : > { %v1004_v19 = vadd.f32 %v2441_v17, %v3110_v45  ;;  %v995_v20 = vpop.f32.mrb[23].mxu1 }
 0x1f7   : > { %v996_v22 = vadd.f32 %v3110_v45, %v995_v20 }
 0x1f8   : > { %v1178_v23 = vpack.c.bf16 %v1004_v19, %v1001_v18 }
 0x1f9   : > { %v1177_v24 = vpack.c.bf16 %v996_v22, %v993_v21  ;;  %v2723_v21 = vld [vmem:[%s3458_s5 + $0x38] sm:$0xff]  }
 0x1fa   : > { %2649 = vmatprep.subr.bf16.mxu1 %v2723_v21  ;;  %2576 = vmatprep.subr.bf16.mxu0 %v2723_v21 }
 0x1fb   : > { %v2444_v25 = vpop.f32.mrb[24].mxu1  ;;  %2518 = vmatprep.mubr.bf16.mxu0 %v1177_v24  ;;  %2657 = vmatpush3.bf16.msra.mxu1 %v2723_v21 }
 0x1fc   : > { %v1008_v26 = vpop.f32.mrb[25].mxu1  ;;  %2519 = vmatmul.mubr.bf16.gmra.mrb[84].mxu0 %v1178_v23  ;;  %v1017_v28 = vadd.f32 %v2444_v25, %v3110_v45 }
 0x1fd   : > { %v2445_v27 = vpop.f32.mrb[26].mxu1  ;;  %v1009_v31 = vadd.f32 %v3110_v45, %v1008_v26  ;;  %2577 = vmatpush3.bf16.msra.mxu0 %v2723_v21 }
 0x1fe   : > { %v1020_v29 = vadd.f32 %v2445_v27, %v3110_v45  ;;  %v1011_v30 = vpop.f32.mrb[27].mxu1 }
 0x1ff   : > { %v1012_v32 = vadd.f32 %v3110_v45, %v1011_v30 }
 0x200   : > { %v1180_v33 = vpack.c.bf16 %v1020_v29, %v1017_v28 }
 0x201   : > { %v1179_v34 = vpack.c.bf16 %v1012_v32, %v1009_v31 }
 0x203   : > { %v2448_v35 = vpop.f32.mrb[28].mxu1  ;;  %2522 = vmatprep.mubr.bf16.mxu0 %v1179_v34 }
 0x204   : > { %v1024_v36 = vpop.f32.mrb[29].mxu1  ;;  %2523 = vmatmul.mubr.bf16.gmra.mrb[88].mxu0 %v1180_v33  ;;  %v1033_v38 = vadd.f32 %v2448_v35, %v3110_v45 }
 0x205   : > { %v2449_v37 = vpop.f32.mrb[30].mxu1  ;;  %v1025_v41 = vadd.f32 %v3110_v45, %v1024_v36 }
 0x206   : > { %v1036_v39 = vadd.f32 %v2449_v37, %v3110_v45  ;;  %v1027_v40 = vpop.f32.mrb[31].mxu1 }
 0x207   : > { %v1028_v42 = vadd.f32 %v3110_v45, %v1027_v40 }
 0x208   : > { %v1182_v43 = vpack.c.bf16 %v1036_v39, %v1033_v38 }
 0x209   : > { %v1181_v44 = vpack.c.bf16 %v1028_v42, %v1025_v41 }
 0x20b   : > { %v2452_v46 = vpop.f32.mrb[32].mxu1  ;;  %2526 = vmatprep.mubr.bf16.mxu0 %v1181_v44 }
 0x20c   : > { %v1040_v47 = vpop.f32.mrb[33].mxu1  ;;  %2527 = vmatmul.mubr.bf16.gmra.mrb[92].mxu0 %v1182_v43  ;;  %v1049_v49 = vadd.f32 %v2452_v46, %v3110_v45 }
 0x20d   : > { %v2453_v48 = vpop.f32.mrb[34].mxu1  ;;  %v1041_v52 = vadd.f32 %v3110_v45, %v1040_v47 }
 0x20e   : > { %v1052_v50 = vadd.f32 %v2453_v48, %v3110_v45  ;;  %v1043_v51 = vpop.f32.mrb[35].mxu1 }
 0x20f   : > { %v1044_v53 = vadd.f32 %v3110_v45, %v1043_v51 }
 0x210   : > { %v1184_v54 = vpack.c.bf16 %v1052_v50, %v1049_v49 }
 0x211   : > { %v1183_v55 = vpack.c.bf16 %v1044_v53, %v1041_v52 }
 0x213   : > { %v2456_v56 = vpop.f32.mrb[36].mxu1  ;;  %2530 = vmatprep.mubr.bf16.mxu0 %v1183_v55 }
 0x214   : > { %v1056_v57 = vpop.f32.mrb[37].mxu1  ;;  %2531 = vmatmul.mubr.bf16.gmra.mrb[96].mxu0 %v1184_v54  ;;  %v1065_v59 = vadd.f32 %v2456_v56, %v3110_v45 }
 0x215   : > { %v2457_v58 = vpop.f32.mrb[38].mxu1  ;;  %v1057_v62 = vadd.f32 %v3110_v45, %v1056_v57 }
 0x216   : > { %v1068_v60 = vadd.f32 %v2457_v58, %v3110_v45  ;;  %v1059_v61 = vpop.f32.mrb[39].mxu1 }
 0x217   : > { %v1060_v63 = vadd.f32 %v3110_v45, %v1059_v61 }
 0x218   : > { %v1186_v0 = vpack.c.bf16 %v1068_v60, %v1065_v59 }
 0x219   : > { %v1185_v1 = vpack.c.bf16 %v1060_v63, %v1057_v62 }
 0x21b   : > { %v2460_v2 = vpop.f32.mrb[40].mxu1  ;;  %2534 = vmatprep.mubr.bf16.mxu0 %v1185_v1  ;;  %v3197_v1 = vld [vmem:[%s3457_s4 + $0x1] ss:$0 sm:$0xff] }
 0x21c   : > { %v1072_v3 = vpop.f32.mrb[41].mxu1  ;;  %2535 = vmatmul.mubr.bf16.gmra.mrb[100].mxu0 %v1186_v0  ;;  %v1081_v5 = vadd.f32 %v2460_v2, %v3110_v45 }
 0x21d   : > { %v2461_v4 = vpop.f32.mrb[42].mxu1  ;;  %v1073_v8 = vadd.f32 %v3110_v45, %v1072_v3 }
 0x21e   : > { %v1084_v6 = vadd.f32 %v2461_v4, %v3110_v45  ;;  %v1075_v7 = vpop.f32.mrb[43].mxu1 }
 0x21f   : > { %v1076_v9 = vadd.f32 %v3110_v45, %v1075_v7 }
 0x220   : > { %v1188_v10 = vpack.c.bf16 %v1084_v6, %v1081_v5 }
 0x221   : > { %v1187_v11 = vpack.c.bf16 %v1076_v9, %v1073_v8 }
 0x223   : > { %v2464_v12 = vpop.f32.mrb[44].mxu1  ;;  %2538 = vmatprep.mubr.bf16.mxu0 %v1187_v11 }
 0x224   : > { %v1088_v13 = vpop.f32.mrb[45].mxu1  ;;  %2539 = vmatmul.mubr.bf16.gmra.mrb[104].mxu0 %v1188_v10  ;;  %v1097_v15 = vadd.f32 %v2464_v12, %v3110_v45 }
 0x225   : > { %v2465_v14 = vpop.f32.mrb[46].mxu1  ;;  %v1089_v18 = vadd.f32 %v3110_v45, %v1088_v13 }
 0x226   : > { %v1100_v16 = vadd.f32 %v2465_v14, %v3110_v45  ;;  %v1091_v17 = vpop.f32.mrb[47].mxu1 }
 0x227   : > { %v1092_v19 = vadd.f32 %v3110_v45, %v1091_v17 }
 0x228   : > { %v1190_v20 = vpack.c.bf16 %v1100_v16, %v1097_v15 }
 0x229   : > { %v1189_v22 = vpack.c.bf16 %v1092_v19, %v1089_v18 }
 0x22b   : > { %v2468_v23 = vpop.f32.mrb[48].mxu1  ;;  %2542 = vmatprep.mubr.bf16.mxu0 %v1189_v22 }
 0x22c   : > { %v1104_v24 = vpop.f32.mrb[49].mxu1  ;;  %2543 = vmatmul.mubr.bf16.gmra.mrb[108].mxu0 %v1190_v20  ;;  %v1113_v26 = vadd.f32 %v2468_v23, %v3110_v45 }
 0x22d   : > { %v2469_v25 = vpop.f32.mrb[50].mxu1  ;;  %v1105_v29 = vadd.f32 %v3110_v45, %v1104_v24 }
 0x22e   : > { %v1116_v27 = vadd.f32 %v2469_v25, %v3110_v45  ;;  %v1107_v28 = vpop.f32.mrb[51].mxu1 }
 0x22f   : > { %v1108_v30 = vadd.f32 %v3110_v45, %v1107_v28 }
 0x230   : > { %v1192_v31 = vpack.c.bf16 %v1116_v27, %v1113_v26 }
 0x231   : > { %v1191_v32 = vpack.c.bf16 %v1108_v30, %v1105_v29 }
 0x233   : > { %v2472_v33 = vpop.f32.mrb[52].mxu1  ;;  %2546 = vmatprep.mubr.bf16.mxu0 %v1191_v32 }
 0x234   : > { %v1120_v34 = vpop.f32.mrb[53].mxu1  ;;  %2547 = vmatmul.mubr.bf16.gmra.mrb[112].mxu0 %v1192_v31  ;;  %v1129_v36 = vadd.f32 %v2472_v33, %v3110_v45 }
 0x235   : > { %v2473_v35 = vpop.f32.mrb[54].mxu1  ;;  %v1121_v39 = vadd.f32 %v3110_v45, %v1120_v34 }
 0x236   : > { %v1132_v37 = vadd.f32 %v2473_v35, %v3110_v45  ;;  %v1123_v38 = vpop.f32.mrb[55].mxu1 }
 0x237   : > { %v1124_v40 = vadd.f32 %v3110_v45, %v1123_v38 }
 0x238   : > { %v1194_v41 = vpack.c.bf16 %v1132_v37, %v1129_v36 }
 0x239   : > { %v1193_v42 = vpack.c.bf16 %v1124_v40, %v1121_v39 }
 0x23b   : > { %v2476_v43 = vpop.f32.mrb[56].mxu1  ;;  %2550 = vmatprep.mubr.bf16.mxu0 %v1193_v42 }
 0x23c   : > { %v1136_v44 = vpop.f32.mrb[57].mxu1  ;;  %2551 = vmatmul.mubr.bf16.gmra.mrb[116].mxu0 %v1194_v41  ;;  %v1145_v47 = vadd.f32 %v2476_v43, %v3110_v45 }
 0x23d   : > { %v2477_v46 = vpop.f32.mrb[58].mxu1  ;;  %v1137_v50 = vadd.f32 %v3110_v45, %v1136_v44 }
 0x23e   : > { %v1148_v48 = vadd.f32 %v2477_v46, %v3110_v45  ;;  %v1139_v49 = vpop.f32.mrb[59].mxu1 }
 0x23f   : > { %v1140_v51 = vadd.f32 %v3110_v45, %v1139_v49 }
 0x240   : > { %v1196_v52 = vpack.c.bf16 %v1148_v48, %v1145_v47 }
 0x241   : > { %v1195_v53 = vpack.c.bf16 %v1140_v51, %v1137_v50 }
 0x243   : > { %v2480_v54 = vpop.f32.mrb[60].mxu1  ;;  %2554 = vmatprep.mubr.bf16.mxu0 %v1195_v53 }
 0x244   : > { %v1152_v55 = vpop.f32.mrb[61].mxu1  ;;  %2555 = vmatmul.mubr.bf16.gmra.mrb[120].mxu0 %v1196_v52  ;;  %v1161_v57 = vadd.f32 %v2480_v54, %v3110_v45 }
 0x245   : > { %v2481_v56 = vpop.f32.mrb[62].mxu1  ;;  %v1153_v60 = vadd.f32 %v3110_v45, %v1152_v55 }
 0x246   : > { %v1164_v58 = vadd.f32 %v2481_v56, %v3110_v45  ;;  %v1155_v59 = vpop.f32.mrb[63].mxu1 }
 0x247   : > { %v1156_v61 = vadd.f32 %v3110_v45, %v1155_v59 }
 0x248   : > { %v1198_v62 = vpack.c.bf16 %v1164_v58, %v1161_v57 }
 0x249   : > { %v1197_v63 = vpack.c.bf16 %v1156_v61, %v1153_v60 }
 0x24b   : > { %2558 = vmatprep.mubr.bf16.mxu0 %v1197_v63 }
 0x24c   : > { %2559 = vmatmul.mubr.bf16.gmra.mrb[124].mxu0 %v1198_v62 }
 0x2a7   : > { %v2500_v0 = vpop.f32.mrb[64].mxu0 }
 0x2a8   : > { %v1306_v2 = vpop.f32.mrb[65].mxu0  ;;  %v1315_v4 = vadd.f32 %v2500_v0, %v3197_v1 }
 0x2a9   : > { %v2501_v3 = vpop.f32.mrb[66].mxu0  ;;  %v1307_v7 = vadd.f32 %v3197_v1, %v1306_v2 }
 0x2aa   : > { %v1318_v5 = vadd.f32 %v2501_v3, %v3197_v1  ;;  %v1309_v6 = vpop.f32.mrb[67].mxu0 }
 0x2ab   : > { %v1310_v45 = vadd.f32 %v3197_v1, %v1309_v6 }
 0x2ac   : > { %v1562_v8 = vpack.c.bf16 %v1318_v5, %v1315_v4 }
 0x2ad   : > { %v1561_v9 = vpack.c.bf16 %v1310_v45, %v1307_v7 }
 0x2af   : > { %v2504_v10 = vpop.f32.mrb[68].mxu0  ;;  %2578 = vmatprep.mubr.bf16.mxu0 %v1561_v9 }
 0x2b0   : > { %v1322_v11 = vpop.f32.mrb[69].mxu0  ;;  %2579 = vmatmul.mubr.bf16.vlgmr.msra.gmra.mrb[128].mxu0 %v1562_v8  ;;  %v1331_v13 = vadd.f32 %v2504_v10, %v3197_v1 }
 0x2b1   : > { %v2505_v12 = vpop.f32.mrb[70].mxu0  ;;  %v1323_v16 = vadd.f32 %v3197_v1, %v1322_v11 }
 0x2b2   : > { %v1334_v14 = vadd.f32 %v2505_v12, %v3197_v1  ;;  %v1325_v15 = vpop.f32.mrb[71].mxu0 }
 0x2b3   : > { %v1326_v17 = vadd.f32 %v3197_v1, %v1325_v15 }
 0x2b4   : > { %v1564_v18 = vpack.c.bf16 %v1334_v14, %v1331_v13 }
 0x2b5   : > { %v1563_v19 = vpack.c.bf16 %v1326_v17, %v1323_v16 }
 0x2b7   : > { %v2508_v20 = vpop.f32.mrb[72].mxu0  ;;  %2582 = vmatprep.mubr.bf16.mxu1 %v1563_v19 }
 0x2b8   : > { %v1338_v21 = vpop.f32.mrb[73].mxu0  ;;  %2583 = vmatmul.mubr.bf16.vlgmr.msra.gmra.mrb[64].mxu1 %v1564_v18  ;;  %v1347_v23 = vadd.f32 %v2508_v20, %v3197_v1 }
 0x2b9   : > { %v2509_v22 = vpop.f32.mrb[74].mxu0  ;;  %v1339_v26 = vadd.f32 %v3197_v1, %v1338_v21 }
 0x2ba   : > { %v1350_v24 = vadd.f32 %v2509_v22, %v3197_v1  ;;  %v1341_v25 = vpop.f32.mrb[75].mxu0 }
 0x2bb   : > { %v1342_v27 = vadd.f32 %v3197_v1, %v1341_v25 }
 0x2bc   : > { %v1566_v28 = vpack.c.bf16 %v1350_v24, %v1347_v23 }
 0x2bd   : > { %v1565_v29 = vpack.c.bf16 %v1342_v27, %v1339_v26 }
 0x2bf   : > { %v2512_v30 = vpop.f32.mrb[76].mxu0  ;;  %2586 = vmatprep.mubr.bf16.mxu1 %v1565_v29 }
 0x2c0   : > { %v1354_v31 = vpop.f32.mrb[77].mxu0  ;;  %2587 = vmatmul.mubr.bf16.gmra.mrb[68].mxu1 %v1566_v28  ;;  %v1363_v33 = vadd.f32 %v2512_v30, %v3197_v1 }
 0x2c1   : > { %v2513_v32 = vpop.f32.mrb[78].mxu0  ;;  %v1355_v36 = vadd.f32 %v3197_v1, %v1354_v31 }
 0x2c2   : > { %v1366_v34 = vadd.f32 %v2513_v32, %v3197_v1  ;;  %v1357_v35 = vpop.f32.mrb[79].mxu0 }
 0x2c3   : > { %v1358_v37 = vadd.f32 %v3197_v1, %v1357_v35 }
 0x2c4   : > { %v1568_v38 = vpack.c.bf16 %v1366_v34, %v1363_v33 }
 0x2c5   : > { %v1567_v39 = vpack.c.bf16 %v1358_v37, %v1355_v36 }
 0x2c7   : > { %v2516_v40 = vpop.f32.mrb[80].mxu0  ;;  %2590 = vmatprep.mubr.bf16.mxu1 %v1567_v39 }
 0x2c8   : > { %v1370_v41 = vpop.f32.mrb[81].mxu0  ;;  %2591 = vmatmul.mubr.bf16.gmra.mrb[72].mxu1 %v1568_v38  ;;  %v1379_v43 = vadd.f32 %v2516_v40, %v3197_v1 }
 0x2c9   : > { %v2517_v42 = vpop.f32.mrb[82].mxu0  ;;  %v1371_v47 = vadd.f32 %v3197_v1, %v1370_v41 }
 0x2ca   : > { %v1382_v44 = vadd.f32 %v2517_v42, %v3197_v1  ;;  %v1373_v46 = vpop.f32.mrb[83].mxu0 }
 0x2cb   : > { %v1374_v48 = vadd.f32 %v3197_v1, %v1373_v46 }
 0x2cc   : > { %v1570_v49 = vpack.c.bf16 %v1382_v44, %v1379_v43 }
 0x2cd   : > { %v1569_v50 = vpack.c.bf16 %v1374_v48, %v1371_v47 }
 0x2cf   : > { %v2520_v51 = vpop.f32.mrb[84].mxu0  ;;  %2594 = vmatprep.mubr.bf16.mxu1 %v1569_v50 }
 0x2d0   : > { %v1386_v52 = vpop.f32.mrb[85].mxu0  ;;  %2595 = vmatmul.mubr.bf16.gmra.mrb[76].mxu1 %v1570_v49  ;;  %v1395_v54 = vadd.f32 %v2520_v51, %v3197_v1 }
 0x2d1   : > { %v2521_v53 = vpop.f32.mrb[86].mxu0  ;;  %v1387_v57 = vadd.f32 %v3197_v1, %v1386_v52 }
 0x2d2   : > { %v1398_v55 = vadd.f32 %v2521_v53, %v3197_v1  ;;  %v1389_v56 = vpop.f32.mrb[87].mxu0 }
 0x2d3   : > { %v1390_v58 = vadd.f32 %v3197_v1, %v1389_v56 }
 0x2d4   : > { %v1572_v59 = vpack.c.bf16 %v1398_v55, %v1395_v54 }
 0x2d5   : > { %v1571_v60 = vpack.c.bf16 %v1390_v58, %v1387_v57 }
 0x2d7   : > { %v2524_v61 = vpop.f32.mrb[88].mxu0  ;;  %2598 = vmatprep.mubr.bf16.mxu1 %v1571_v60 }
 0x2d8   : > { %v1402_v62 = vpop.f32.mrb[89].mxu0  ;;  %2599 = vmatmul.mubr.bf16.gmra.mrb[80].mxu1 %v1572_v59  ;;  %v1411_v0 = vadd.f32 %v2524_v61, %v3197_v1 }
 0x2d9   : > { %v2525_v63 = vpop.f32.mrb[90].mxu0  ;;  %v1403_v4 = vadd.f32 %v3197_v1, %v1402_v62 }
 0x2da   : > { %v1414_v2 = vadd.f32 %v2525_v63, %v3197_v1  ;;  %v1405_v3 = vpop.f32.mrb[91].mxu0 }
 0x2db   : > { %v1406_v5 = vadd.f32 %v3197_v1, %v1405_v3 }
 0x2dc   : > { %v1574_v6 = vpack.c.bf16 %v1414_v2, %v1411_v0 }
 0x2dd   : > { %v1573_v7 = vpack.c.bf16 %v1406_v5, %v1403_v4 }
 0x2df   : > { %v2528_v45 = vpop.f32.mrb[92].mxu0  ;;  %2602 = vmatprep.mubr.bf16.mxu1 %v1573_v7 }
 0x2e0   : > { %v1418_v8 = vpop.f32.mrb[93].mxu0  ;;  %2603 = vmatmul.mubr.bf16.gmra.mrb[84].mxu1 %v1574_v6  ;;  %v1427_v10 = vadd.f32 %v2528_v45, %v3197_v1 }
 0x2e1   : > { %v2529_v9 = vpop.f32.mrb[94].mxu0  ;;  %v1419_v13 = vadd.f32 %v3197_v1, %v1418_v8 }
 0x2e2   : > { %v1430_v11 = vadd.f32 %v2529_v9, %v3197_v1  ;;  %v1421_v12 = vpop.f32.mrb[95].mxu0 }
 0x2e3   : > { %v1422_v14 = vadd.f32 %v3197_v1, %v1421_v12 }
 0x2e4   : > { %v1576_v15 = vpack.c.bf16 %v1430_v11, %v1427_v10 }
 0x2e5   : > { %v1575_v16 = vpack.c.bf16 %v1422_v14, %v1419_v13 }
 0x2e7   : > { %v2532_v17 = vpop.f32.mrb[96].mxu0  ;;  %2606 = vmatprep.mubr.bf16.mxu1 %v1575_v16 }
 0x2e8   : > { %v1434_v18 = vpop.f32.mrb[97].mxu0  ;;  %2607 = vmatmul.mubr.bf16.gmra.mrb[88].mxu1 %v1576_v15  ;;  %v1443_v20 = vadd.f32 %v2532_v17, %v3197_v1 }
 0x2e9   : > { %v2533_v19 = vpop.f32.mrb[98].mxu0  ;;  %v1435_v23 = vadd.f32 %v3197_v1, %v1434_v18 }
 0x2ea   : > { %v1446_v21 = vadd.f32 %v2533_v19, %v3197_v1  ;;  %v1437_v22 = vpop.f32.mrb[99].mxu0 }
 0x2eb   : > { %v1438_v24 = vadd.f32 %v3197_v1, %v1437_v22 }
 0x2ec   : > { %v1578_v25 = vpack.c.bf16 %v1446_v21, %v1443_v20 }
 0x2ed   : > { %v1577_v26 = vpack.c.bf16 %v1438_v24, %v1435_v23 }
 0x2ef   : > { %v2536_v27 = vpop.f32.mrb[100].mxu0  ;;  %2610 = vmatprep.mubr.bf16.mxu1 %v1577_v26 }
 0x2f0   : > { %v1450_v28 = vpop.f32.mrb[101].mxu0  ;;  %2611 = vmatmul.mubr.bf16.gmra.mrb[92].mxu1 %v1578_v25  ;;  %v1459_v30 = vadd.f32 %v2536_v27, %v3197_v1 }
 0x2f1   : > { %v2537_v29 = vpop.f32.mrb[102].mxu0  ;;  %v1451_v33 = vadd.f32 %v3197_v1, %v1450_v28 }
 0x2f2   : > { %v1462_v31 = vadd.f32 %v2537_v29, %v3197_v1  ;;  %v1453_v32 = vpop.f32.mrb[103].mxu0 }
 0x2f3   : > { %v1454_v34 = vadd.f32 %v3197_v1, %v1453_v32 }
 0x2f4   : > { %v1580_v35 = vpack.c.bf16 %v1462_v31, %v1459_v30 }
 0x2f5   : > { %v1579_v36 = vpack.c.bf16 %v1454_v34, %v1451_v33  ;;  %v3269_v34 = vld [vmem:[%s3459_s6] ss:$0 sm:$0xff] }
 0x2f7   : > { %v2540_v37 = vpop.f32.mrb[104].mxu0  ;;  %2614 = vmatprep.mubr.bf16.mxu1 %v1579_v36 }
 0x2f8   : > { %v1466_v38 = vpop.f32.mrb[105].mxu0  ;;  %2615 = vmatmul.mubr.bf16.gmra.mrb[96].mxu1 %v1580_v35  ;;  %v1475_v40 = vadd.f32 %v2540_v37, %v3197_v1 }
 0x2f9   : > { %v2541_v39 = vpop.f32.mrb[106].mxu0  ;;  %v1467_v43 = vadd.f32 %v3197_v1, %v1466_v38 }
 0x2fa   : > { %v1478_v41 = vadd.f32 %v2541_v39, %v3197_v1  ;;  %v1469_v42 = vpop.f32.mrb[107].mxu0 }
 0x2fb   : > { %v1470_v44 = vadd.f32 %v3197_v1, %v1469_v42 }
 0x2fc   : > { %v1582_v46 = vpack.c.bf16 %v1478_v41, %v1475_v40 }
 0x2fd   : > { %v1581_v47 = vpack.c.bf16 %v1470_v44, %v1467_v43 }
 0x2ff   : > { %v2544_v48 = vpop.f32.mrb[108].mxu0  ;;  %2618 = vmatprep.mubr.bf16.mxu1 %v1581_v47 }
 0x300   : > { %v1482_v49 = vpop.f32.mrb[109].mxu0  ;;  %2619 = vmatmul.mubr.bf16.gmra.mrb[100].mxu1 %v1582_v46  ;;  %v1491_v51 = vadd.f32 %v2544_v48, %v3197_v1 }
 0x301   : > { %v2545_v50 = vpop.f32.mrb[110].mxu0  ;;  %v1483_v54 = vadd.f32 %v3197_v1, %v1482_v49 }
 0x302   : > { %v1494_v52 = vadd.f32 %v2545_v50, %v3197_v1  ;;  %v1485_v53 = vpop.f32.mrb[111].mxu0 }
 0x303   : > { %v1486_v55 = vadd.f32 %v3197_v1, %v1485_v53 }
 0x304   : > { %v1584_v56 = vpack.c.bf16 %v1494_v52, %v1491_v51 }
 0x305   : > { %v1583_v57 = vpack.c.bf16 %v1486_v55, %v1483_v54 }
 0x307   : > { %v2548_v58 = vpop.f32.mrb[112].mxu0  ;;  %2622 = vmatprep.mubr.bf16.mxu1 %v1583_v57 }
 0x308   : > { %v1498_v59 = vpop.f32.mrb[113].mxu0  ;;  %2623 = vmatmul.mubr.bf16.gmra.mrb[104].mxu1 %v1584_v56  ;;  %v1507_v61 = vadd.f32 %v2548_v58, %v3197_v1 }
 0x309   : > { %v2549_v60 = vpop.f32.mrb[114].mxu0  ;;  %v1499_v0 = vadd.f32 %v3197_v1, %v1498_v59 }
 0x30a   : > { %v1510_v62 = vadd.f32 %v2549_v60, %v3197_v1  ;;  %v1501_v63 = vpop.f32.mrb[115].mxu0 }
 0x30b   : > { %v1502_v2 = vadd.f32 %v3197_v1, %v1501_v63 }
 0x30c   : > { %v1586_v3 = vpack.c.bf16 %v1510_v62, %v1507_v61 }
 0x30d   : > { %v1585_v4 = vpack.c.bf16 %v1502_v2, %v1499_v0 }
 0x30f   : > { %v2552_v5 = vpop.f32.mrb[116].mxu0  ;;  %2626 = vmatprep.mubr.bf16.mxu1 %v1585_v4 }
 0x310   : > { %v1514_v6 = vpop.f32.mrb[117].mxu0  ;;  %2627 = vmatmul.mubr.bf16.gmra.mrb[108].mxu1 %v1586_v3  ;;  %v1523_v45 = vadd.f32 %v2552_v5, %v3197_v1 }
 0x311   : > { %v2553_v7 = vpop.f32.mrb[118].mxu0  ;;  %v1515_v10 = vadd.f32 %v3197_v1, %v1514_v6 }
 0x312   : > { %v1526_v8 = vadd.f32 %v2553_v7, %v3197_v1  ;;  %v1517_v9 = vpop.f32.mrb[119].mxu0 }
 0x313   : > { %v1518_v11 = vadd.f32 %v3197_v1, %v1517_v9 }
 0x314   : > { %v1588_v12 = vpack.c.bf16 %v1526_v8, %v1523_v45 }
 0x315   : > { %v1587_v13 = vpack.c.bf16 %v1518_v11, %v1515_v10 }
 0x317   : > { %v2556_v14 = vpop.f32.mrb[120].mxu0  ;;  %2630 = vmatprep.mubr.bf16.mxu1 %v1587_v13 }
 0x318   : > { %v1530_v15 = vpop.f32.mrb[121].mxu0  ;;  %2631 = vmatmul.mubr.bf16.gmra.mrb[112].mxu1 %v1588_v12  ;;  %v1539_v17 = vadd.f32 %v2556_v14, %v3197_v1 }
 0x319   : > { %v2557_v16 = vpop.f32.mrb[122].mxu0  ;;  %v1531_v20 = vadd.f32 %v3197_v1, %v1530_v15 }
 0x31a   : > { %v1542_v18 = vadd.f32 %v2557_v16, %v3197_v1  ;;  %v1533_v19 = vpop.f32.mrb[123].mxu0 }
 0x31b   : > { %v1534_v21 = vadd.f32 %v3197_v1, %v1533_v19 }
 0x31c   : > { %v1590_v22 = vpack.c.bf16 %v1542_v18, %v1539_v17 }
 0x31d   : > { %v1589_v23 = vpack.c.bf16 %v1534_v21, %v1531_v20 }
 0x31f   : > { %v2560_v24 = vpop.f32.mrb[124].mxu0  ;;  %2634 = vmatprep.mubr.bf16.mxu1 %v1589_v23 }
 0x320   : > { %v1546_v25 = vpop.f32.mrb[125].mxu0  ;;  %2635 = vmatmul.mubr.bf16.gmra.mrb[116].mxu1 %v1590_v22  ;;  %v1555_v27 = vadd.f32 %v2560_v24, %v3197_v1 }
 0x321   : > { %v2561_v26 = vpop.f32.mrb[126].mxu0  ;;  %v1547_v30 = vadd.f32 %v3197_v1, %v1546_v25 }
 0x322   : > { %v1558_v28 = vadd.f32 %v2561_v26, %v3197_v1  ;;  %v1549_v29 = vpop.f32.mrb[127].mxu0 }
 0x323   : > { %v1550_v31 = vadd.f32 %v3197_v1, %v1549_v29 }
 0x324   : > { %v1592_v32 = vpack.c.bf16 %v1558_v28, %v1555_v27 }
 0x325   : > { %v1591_v33 = vpack.c.bf16 %v1550_v31, %v1547_v30 }
 0x327   : > { %2638 = vmatprep.mubr.bf16.mxu1 %v1591_v33 }
 0x328   : > { %2639 = vmatmul.mubr.bf16.gmra.mrb[120].mxu1 %v1592_v32 }
 0x383   : > { %v2580_v35 = vpop.f32.mrb[128].mxu0 }
 0x384   : > { %v1707_v36 = vadd.f32 %v2580_v35, %v3269_v34  ;;  %v1698_v37 = vpop.f32.mrb[129].mxu0 }
 0x385   : > { %v1699_v38 = vadd.f32 %v3269_v34, %v1698_v37  ;;  %v2581_v39 = vpop.f32.mrb[130].mxu0 }
 0x386   : > { %1955 = vst [vmem:[%s3273_s22 + $0x10] sm:$0xff] %v1707_v36  ;;  %v1710_v1 = vadd.f32 %v2581_v39, %v3269_v34  ;;  %v1701_v40 = vpop.f32.mrb[131].mxu0 }
 0x387   : > { %1953 = vst [vmem:[%s3273_s22] sm:$0xff] %v1699_v38  ;;  %v1702_v41 = vadd.f32 %v3269_v34, %v1701_v40 }
 0x388   : > { %1956 = vst [vmem:[%s3273_s22 + $0x18] sm:$0xff] %v1710_v1 }
 0x389   : > { %1954 = vst [vmem:[%s3273_s22 + $0x8] sm:$0xff] %v1702_v41 }
 0x38b   : > { %v2584_v42 = vpop.f32.mrb[64].mxu1 }
 0x38c   : > { %v1723_v43 = vadd.f32 %v2584_v42, %v3269_v34  ;;  %v1714_v44 = vpop.f32.mrb[65].mxu1 }
 0x38d   : > { %v1715_v46 = vadd.f32 %v3269_v34, %v1714_v44  ;;  %v2585_v47 = vpop.f32.mrb[66].mxu1 }
 0x38e   : > { %1959 = vst [vmem:[%s3273_s22 + $0x30] sm:$0xff] %v1723_v43  ;;  %v1726_v48 = vadd.f32 %v2585_v47, %v3269_v34  ;;  %v1717_v49 = vpop.f32.mrb[67].mxu1 }
 0x38f   : > { %1957 = vst [vmem:[%s3273_s22 + $0x20] sm:$0xff] %v1715_v46  ;;  %v1718_v50 = vadd.f32 %v3269_v34, %v1717_v49 }
 0x390   : > { %1960 = vst [vmem:[%s3273_s22 + $0x38] sm:$0xff] %v1726_v48 }
 0x391   : > { %1958 = vst [vmem:[%s3273_s22 + $0x28] sm:$0xff] %v1718_v50 }
 0x393   : > { %v2588_v51 = vpop.f32.mrb[68].mxu1 }
 0x394   : > { %v1739_v52 = vadd.f32 %v2588_v51, %v3269_v34  ;;  %v1730_v53 = vpop.f32.mrb[69].mxu1 }
 0x395   : > { %v1731_v54 = vadd.f32 %v3269_v34, %v1730_v53  ;;  %v2589_v55 = vpop.f32.mrb[70].mxu1 }
 0x396   : > { %1963 = vst [vmem:[%s3273_s22 + $0x50] sm:$0xff] %v1739_v52  ;;  %v1742_v56 = vadd.f32 %v2589_v55, %v3269_v34  ;;  %v1733_v57 = vpop.f32.mrb[71].mxu1 }
 0x397   : > { %1961 = vst [vmem:[%s3273_s22 + $0x40] sm:$0xff] %v1731_v54  ;;  %v1734_v58 = vadd.f32 %v3269_v34, %v1733_v57 }
 0x398   : > { %1964 = vst [vmem:[%s3273_s22 + $0x58] sm:$0xff] %v1742_v56 }
 0x399   : > { %1962 = vst [vmem:[%s3273_s22 + $0x48] sm:$0xff] %v1734_v58 }
 0x39b   : > { %v2592_v59 = vpop.f32.mrb[72].mxu1 }
 0x39c   : > { %v1755_v60 = vadd.f32 %v2592_v59, %v3269_v34  ;;  %v1746_v61 = vpop.f32.mrb[73].mxu1 }
 0x39d   : > { %v1747_v62 = vadd.f32 %v3269_v34, %v1746_v61  ;;  %v2593_v63 = vpop.f32.mrb[74].mxu1 }
 0x39e   : > { %1967 = vst [vmem:[%s3273_s22 + $0x70] sm:$0xff] %v1755_v60  ;;  %v1758_v0 = vadd.f32 %v2593_v63, %v3269_v34  ;;  %v1749_v2 = vpop.f32.mrb[75].mxu1 }
 0x39f   : > { %1965 = vst [vmem:[%s3273_s22 + $0x60] sm:$0xff] %v1747_v62  ;;  %v1750_v3 = vadd.f32 %v3269_v34, %v1749_v2 }
 0x3a0   : > { %1968 = vst [vmem:[%s3273_s22 + $0x78] sm:$0xff] %v1758_v0 }
 0x3a1   : > { %1966 = vst [vmem:[%s3273_s22 + $0x68] sm:$0xff] %v1750_v3 }
 0x3a3   : > { %v2596_v4 = vpop.f32.mrb[76].mxu1 }
 0x3a4   : > { %v1771_v5 = vadd.f32 %v2596_v4, %v3269_v34  ;;  %v1762_v6 = vpop.f32.mrb[77].mxu1 }
 0x3a5   : > { %v1763_v7 = vadd.f32 %v3269_v34, %v1762_v6  ;;  %v2597_v45 = vpop.f32.mrb[78].mxu1 }
 0x3a6   : > { %1971 = vst [vmem:[%s3273_s22 + $0x90] sm:$0xff] %v1771_v5  ;;  %v1774_v8 = vadd.f32 %v2597_v45, %v3269_v34  ;;  %v1765_v9 = vpop.f32.mrb[79].mxu1 }
 0x3a7   : > { %1969 = vst [vmem:[%s3273_s22 + $0x80] sm:$0xff] %v1763_v7  ;;  %v1766_v10 = vadd.f32 %v3269_v34, %v1765_v9 }
 0x3a8   : > { %1972 = vst [vmem:[%s3273_s22 + $0x98] sm:$0xff] %v1774_v8 }
 0x3a9   : > { %1970 = vst [vmem:[%s3273_s22 + $0x88] sm:$0xff] %v1766_v10 }
 0x3ab   : > { %v2600_v11 = vpop.f32.mrb[80].mxu1 }
 0x3ac   : > { %v1787_v12 = vadd.f32 %v2600_v11, %v3269_v34  ;;  %v1778_v13 = vpop.f32.mrb[81].mxu1 }
 0x3ad   : > { %v1779_v14 = vadd.f32 %v3269_v34, %v1778_v13  ;;  %v2601_v15 = vpop.f32.mrb[82].mxu1 }
 0x3ae   : > { %1975 = vst [vmem:[%s3273_s22 + $0xb0] sm:$0xff] %v1787_v12  ;;  %v1790_v16 = vadd.f32 %v2601_v15, %v3269_v34  ;;  %v1781_v17 = vpop.f32.mrb[83].mxu1 }
 0x3af   : > { %1973 = vst [vmem:[%s3273_s22 + $0xa0] sm:$0xff] %v1779_v14  ;;  %v1782_v18 = vadd.f32 %v3269_v34, %v1781_v17 }
 0x3b0   : > { %1976 = vst [vmem:[%s3273_s22 + $0xb8] sm:$0xff] %v1790_v16 }
 0x3b1   : > { %1974 = vst [vmem:[%s3273_s22 + $0xa8] sm:$0xff] %v1782_v18 }
 0x3b3   : > { %v2604_v19 = vpop.f32.mrb[84].mxu1 }
 0x3b4   : > { %v1803_v20 = vadd.f32 %v2604_v19, %v3269_v34  ;;  %v1794_v21 = vpop.f32.mrb[85].mxu1 }
 0x3b5   : > { %v1795_v22 = vadd.f32 %v3269_v34, %v1794_v21  ;;  %v2605_v23 = vpop.f32.mrb[86].mxu1 }
 0x3b6   : > { %1979 = vst [vmem:[%s3273_s22 + $0xd0] sm:$0xff] %v1803_v20  ;;  %v1806_v24 = vadd.f32 %v2605_v23, %v3269_v34  ;;  %v1797_v25 = vpop.f32.mrb[87].mxu1 }
 0x3b7   : > { %1977 = vst [vmem:[%s3273_s22 + $0xc0] sm:$0xff] %v1795_v22  ;;  %v1798_v26 = vadd.f32 %v3269_v34, %v1797_v25 }
 0x3b8   : > { %1980 = vst [vmem:[%s3273_s22 + $0xd8] sm:$0xff] %v1806_v24 }
 0x3b9   : > { %1978 = vst [vmem:[%s3273_s22 + $0xc8] sm:$0xff] %v1798_v26 }
 0x3bb   : > { %v2608_v27 = vpop.f32.mrb[88].mxu1 }
 0x3bc   : > { %v1819_v28 = vadd.f32 %v2608_v27, %v3269_v34  ;;  %v1810_v29 = vpop.f32.mrb[89].mxu1 }
 0x3bd   : > { %v1811_v30 = vadd.f32 %v3269_v34, %v1810_v29  ;;  %v2609_v31 = vpop.f32.mrb[90].mxu1 }
 0x3be   : > { %1983 = vst [vmem:[%s3273_s22 + $0xf0] sm:$0xff] %v1819_v28  ;;  %v1822_v32 = vadd.f32 %v2609_v31, %v3269_v34  ;;  %v1813_v33 = vpop.f32.mrb[91].mxu1 }
 0x3bf   : > { %1981 = vst [vmem:[%s3273_s22 + $0xe0] sm:$0xff] %v1811_v30  ;;  %v1814_v35 = vadd.f32 %v3269_v34, %v1813_v33 }
 0x3c0   : > { %1984 = vst [vmem:[%s3273_s22 + $0xf8] sm:$0xff] %v1822_v32 }
 0x3c1   : > { %1982 = vst [vmem:[%s3273_s22 + $0xe8] sm:$0xff] %v1814_v35 }
 0x3c3   : > { %v2612_v36 = vpop.f32.mrb[92].mxu1 }
 0x3c4   : > { %v1835_v37 = vadd.f32 %v2612_v36, %v3269_v34  ;;  %v1826_v38 = vpop.f32.mrb[93].mxu1 }
 0x3c5   : > { %v1827_v39 = vadd.f32 %v3269_v34, %v1826_v38  ;;  %v2613_v1 = vpop.f32.mrb[94].mxu1 }
 0x3c6   : > { %1987 = vst [vmem:[%s3273_s22 + $0x110] sm:$0xff] %v1835_v37  ;;  %v1838_v40 = vadd.f32 %v2613_v1, %v3269_v34  ;;  %v1829_v41 = vpop.f32.mrb[95].mxu1 }
 0x3c7   : > { %1985 = vst [vmem:[%s3273_s22 + $0x100] sm:$0xff] %v1827_v39  ;;  %v1830_v42 = vadd.f32 %v3269_v34, %v1829_v41 }
 0x3c8   : > { %1988 = vst [vmem:[%s3273_s22 + $0x118] sm:$0xff] %v1838_v40 }
 0x3c9   : > { %1986 = vst [vmem:[%s3273_s22 + $0x108] sm:$0xff] %v1830_v42 }
 0x3cb   : > { %v2616_v43 = vpop.f32.mrb[96].mxu1 }
 0x3cc   : > { %v1851_v44 = vadd.f32 %v2616_v43, %v3269_v34  ;;  %v1842_v46 = vpop.f32.mrb[97].mxu1 }
 0x3cd   : > { %v1843_v47 = vadd.f32 %v3269_v34, %v1842_v46  ;;  %v2617_v48 = vpop.f32.mrb[98].mxu1 }
 0x3ce   : > { %1991 = vst [vmem:[%s3273_s22 + $0x130] sm:$0xff] %v1851_v44  ;;  %v1854_v49 = vadd.f32 %v2617_v48, %v3269_v34  ;;  %v1845_v50 = vpop.f32.mrb[99].mxu1 }
 0x3cf   : > { %1989 = vst [vmem:[%s3273_s22 + $0x120] sm:$0xff] %v1843_v47  ;;  %v1846_v51 = vadd.f32 %v3269_v34, %v1845_v50 }
 0x3d0   : > { %1992 = vst [vmem:[%s3273_s22 + $0x138] sm:$0xff] %v1854_v49 }
 0x3d1   : > { %1990 = vst [vmem:[%s3273_s22 + $0x128] sm:$0xff] %v1846_v51 }
 0x3d3   : > { %v2620_v52 = vpop.f32.mrb[100].mxu1 }
 0x3d4   : > { %v1867_v53 = vadd.f32 %v2620_v52, %v3269_v34  ;;  %v1858_v54 = vpop.f32.mrb[101].mxu1 }
 0x3d5   : > { %v1859_v55 = vadd.f32 %v3269_v34, %v1858_v54  ;;  %v2621_v56 = vpop.f32.mrb[102].mxu1 }
 0x3d6   : > { %1995 = vst [vmem:[%s3273_s22 + $0x150] sm:$0xff] %v1867_v53  ;;  %v1870_v57 = vadd.f32 %v2621_v56, %v3269_v34  ;;  %v1861_v58 = vpop.f32.mrb[103].mxu1 }
 0x3d7   : > { %1993 = vst [vmem:[%s3273_s22 + $0x140] sm:$0xff] %v1859_v55  ;;  %v1862_v59 = vadd.f32 %v3269_v34, %v1861_v58 }
 0x3d8   : > { %1996 = vst [vmem:[%s3273_s22 + $0x158] sm:$0xff] %v1870_v57 }
 0x3d9   : > { %1994 = vst [vmem:[%s3273_s22 + $0x148] sm:$0xff] %v1862_v59 }
 0x3db   : > { %v2624_v60 = vpop.f32.mrb[104].mxu1 }
 0x3dc   : > { %v1883_v61 = vadd.f32 %v2624_v60, %v3269_v34  ;;  %v1874_v62 = vpop.f32.mrb[105].mxu1 }
 0x3dd   : > { %v1875_v63 = vadd.f32 %v3269_v34, %v1874_v62  ;;  %v2625_v0 = vpop.f32.mrb[106].mxu1 }
 0x3de   : > { %1999 = vst [vmem:[%s3273_s22 + $0x170] sm:$0xff] %v1883_v61  ;;  %v1886_v2 = vadd.f32 %v2625_v0, %v3269_v34  ;;  %v1877_v3 = vpop.f32.mrb[107].mxu1 }
 0x3df   : > { %1997 = vst [vmem:[%s3273_s22 + $0x160] sm:$0xff] %v1875_v63  ;;  %v1878_v4 = vadd.f32 %v3269_v34, %v1877_v3 }
 0x3e0   : > { %2000 = vst [vmem:[%s3273_s22 + $0x178] sm:$0xff] %v1886_v2 }
 0x3e1   : > { %1998 = vst [vmem:[%s3273_s22 + $0x168] sm:$0xff] %v1878_v4 }
 0x3e3   : > { %v2628_v5 = vpop.f32.mrb[108].mxu1 }
 0x3e4   : > { %v1899_v6 = vadd.f32 %v2628_v5, %v3269_v34  ;;  %v1890_v7 = vpop.f32.mrb[109].mxu1 }
 0x3e5   : > { %v1891_v45 = vadd.f32 %v3269_v34, %v1890_v7  ;;  %v2629_v8 = vpop.f32.mrb[110].mxu1 }
 0x3e6   : > { %2003 = vst [vmem:[%s3273_s22 + $0x190] sm:$0xff] %v1899_v6  ;;  %v1902_v9 = vadd.f32 %v2629_v8, %v3269_v34  ;;  %v1893_v10 = vpop.f32.mrb[111].mxu1 }
 0x3e7   : > { %2001 = vst [vmem:[%s3273_s22 + $0x180] sm:$0xff] %v1891_v45  ;;  %v1894_v11 = vadd.f32 %v3269_v34, %v1893_v10 }
 0x3e8   : > { %2004 = vst [vmem:[%s3273_s22 + $0x198] sm:$0xff] %v1902_v9 }
 0x3e9   : > { %2002 = vst [vmem:[%s3273_s22 + $0x188] sm:$0xff] %v1894_v11 }
 0x3eb   : > { %v2632_v12 = vpop.f32.mrb[112].mxu1 }
 0x3ec   : > { %v1915_v13 = vadd.f32 %v2632_v12, %v3269_v34  ;;  %v1906_v14 = vpop.f32.mrb[113].mxu1 }
 0x3ed   : > { %v1907_v15 = vadd.f32 %v3269_v34, %v1906_v14  ;;  %v2633_v16 = vpop.f32.mrb[114].mxu1 }
 0x3ee   : > { %2007 = vst [vmem:[%s3273_s22 + $0x1b0] sm:$0xff] %v1915_v13  ;;  %v1918_v17 = vadd.f32 %v2633_v16, %v3269_v34  ;;  %v1909_v18 = vpop.f32.mrb[115].mxu1 }
 0x3ef   : > { %2005 = vst [vmem:[%s3273_s22 + $0x1a0] sm:$0xff] %v1907_v15  ;;  %v1910_v19 = vadd.f32 %v3269_v34, %v1909_v18 }
 0x3f0   : > { %2008 = vst [vmem:[%s3273_s22 + $0x1b8] sm:$0xff] %v1918_v17 }
 0x3f1   : > { %2006 = vst [vmem:[%s3273_s22 + $0x1a8] sm:$0xff] %v1910_v19 }
 0x3f3   : > { %v2636_v20 = vpop.f32.mrb[116].mxu1 }
 0x3f4   : > { %v1931_v21 = vadd.f32 %v2636_v20, %v3269_v34  ;;  %v1922_v22 = vpop.f32.mrb[117].mxu1 }
 0x3f5   : > { %v1923_v23 = vadd.f32 %v3269_v34, %v1922_v22  ;;  %v2637_v24 = vpop.f32.mrb[118].mxu1 }
 0x3f6   : > { %2011 = vst [vmem:[%s3273_s22 + $0x1d0] sm:$0xff] %v1931_v21  ;;  %v1934_v25 = vadd.f32 %v2637_v24, %v3269_v34  ;;  %v1925_v26 = vpop.f32.mrb[119].mxu1 }
 0x3f7   : > { %2009 = vst [vmem:[%s3273_s22 + $0x1c0] sm:$0xff] %v1923_v23  ;;  %v1926_v27 = vadd.f32 %v3269_v34, %v1925_v26 }
 0x3f8   : > { %2012 = vst [vmem:[%s3273_s22 + $0x1d8] sm:$0xff] %v1934_v25 }
 0x3f9   : > { %2010 = vst [vmem:[%s3273_s22 + $0x1c8] sm:$0xff] %v1926_v27 }
 0x3fb   : > { %v2640_v28 = vpop.f32.mrb[120].mxu1 }
 0x3fc   : > { %v1947_v29 = vadd.f32 %v2640_v28, %v3269_v34  ;;  %v1938_v30 = vpop.f32.mrb[121].mxu1 }
 0x3fd   : > { %v1939_v31 = vadd.f32 %v3269_v34, %v1938_v30  ;;  %v2641_v32 = vpop.f32.mrb[122].mxu1 }
 0x3fe   : > { %2015 = vst [vmem:[%s3273_s22 + $0x1f0] sm:$0xff] %v1947_v29  ;;  %v1950_v33 = vadd.f32 %v2641_v32, %v3269_v34  ;;  %v1941_v35 = vpop.f32.mrb[123].mxu1 }
 0x3ff   : > { %2013 = vst [vmem:[%s3273_s22 + $0x1e0] sm:$0xff] %v1939_v31  ;;  %v1942_v36 = vadd.f32 %v3269_v34, %v1941_v35 }
 0x400   : > { %2016 = vst [vmem:[%s3273_s22 + $0x1f8] sm:$0xff] %v1950_v33 }
 0x401   : > { %2014 = vst [vmem:[%s3273_s22 + $0x1e8] sm:$0xff] %v1942_v36 }
 0x402   : > { %2737 = shalt.err (!%p2734_p3)
}
 0x403   : > { %s2738_s18 = scalar_lea.hbm %s3402_s14, 8192  ;;  %s2742_s21 = scalar_lea.hbm %s3460_s7, 32768 }
 0x404   : > { %p2739_p4 = scmp.ne.s32.totalorder %s3402_s14, %s2738_s18  ;;  %p2743_p9 = scmp.lt.u32.totalorder %s3402_s14, %s3460_s7 }
 0x405   : > { %p2744_p10 = scmp.lt.u32.totalorder %s2742_s21, %s2738_s18  ;;  %p2746_p12 = scmp.lt.u32.totalorder %s2738_s18, %s3402_s14 }
 0x406   : > { %p2740_p7 = pnand %p2739_p4, %p2869_p5 }
 0x407   : > { %p2745_p11 = por %p2744_p10, %p2743_p9 }
 0x408   : > { %p2741_p8 = pneg %p2740_p7 }
 0x409   : > { %p2747_p13 = por %p2746_p12, %p2745_p11 }
 0x40b   : > { %p2748_p0 = pnand %p2747_p13, %p2741_p8 }
 0x40d   : > { %2751 = shalt.err (!%p2748_p0)
}
 0x40e   : > { %s2789_s9 = smov 128   ;;  %s2790_s13 = smov 8  }
 0x40f   : > { %2659 = dma.vmem_to_hbm [thread:$0]  (%p2869_p5), %s3404_s8, 8192, %s3402_s14, %s3412_s28, %s2789_s9, %s2789_s9, %s2790_s13  }
 0x410 PF: > { %p2665_p1 = scmp.ge.s32.totalorder %s2786_s27, 2  ;;  %s2046_s23 = sand.u32 1, %s2774_s24  }
 0x411   : > { %s2047_s15 = scalar_lea.sflag [#allocation3], %s2046_s23 }
 0x412   : > { %p2662_p2 = pnand %p2665_p1, %p2873_p6 }
 0x414   : > { %2769 = dma.done.wait (!%p2662_p2), %s2047_s15, 8192  }
 0x415   : > { %2771 = vsyncadd (!%p2662_p2), %s2047_s15, 4294959104  ;;  %p17_p3 = scmp.ge.s32.totalorder %s2856_s30, 6   ;;  %s3463_s24 = smov %s2778_s25 }
 0x416   : > { %s3464_s25 = smov %s2782_s26  ;;  %s3465_s26 = smov %s2867_s10 }
 0x417   : > { %s3466_s27 = smov %s2856_s30  ;;  %19 = sbr.rel (!%p17_p3) target bundleno = 3 (0x3), region = 85 }
 0x41e   :  { %2052 = vsyncpa [#allocation3], 1 }
 0x41f   :  { %2054 = vsyncpa [#allocation3 + $0x1], 1 }

</bundles_post_ra>
